<compile_context>
chip_gen: v7x
topology: tpu7x:2x2x1
jax: 0.10.0
libtpu: 0.0.40
codegen_flags: <defaults>
</compile_context>

<pallas_src>
import functools

import jax
import jax.numpy as jnp
from jax.experimental import pallas as pl
from jax.experimental.pallas import tpu as pltpu

# ----------------------------- sizes -----------------------------------
S = 4        # num likelihood samples
N = 64       # batch points
D_IN = 8     # input dims of the IDGP layer
M = 128      # number of inter-domain (Fourier) inducing features
T = 4        # output dims (tasks) of the IDGP layer
T_PAD = 8    # sublane-aligned padding for the fused mean rows
SN = S * N   # flattened batch (lane axis inside the kernel)
L_BLK = 128  # lane block per grid step (2 steps -> parallel across v7x TCs)


# ----------------------------- kernel -----------------------------------
def _idgp_kernel(xT_ref, wT_ref, bT_ref, c_ref,
                 fnorT_ref, meanT_ref, varT_ref, *, scale):
    # xT block: [D_IN, L]   (feature-major; L = lane block of flattened S*N)
    # --- layer_normalize (Tanh_Normalization) ---
    fT = jnp.tanh(xT_ref[...])                                   # [D_IN, L] f32
    fnorT_ref[...] = fT                                          # lane-dense store

    # --- inter-domain features  phi^T = cos(W^T f^T + b^T) * sqrt(2/M) ---
    proj = jnp.dot(wT_ref[...], fT,
                   preferred_element_type=jnp.float32)           # [M, L]
    proj = proj + bT_ref[...]                                    # lane-broadcast [M,1]
    phiT = jnp.cos(proj) * jnp.float32(scale)                    # [M, L] f32

    # --- fused (mean | covariance-factor) matmul on the MXU ---
    # c_ref = [ m^T (padded to T_PAD rows) ; L_0^T ; ... ; L_{T-1}^T ]  (bf16)
    combined = jnp.dot(c_ref[...], phiT.astype(c_ref.dtype),
                       preferred_element_type=jnp.float32)       # [T_PAD+T*M, L]

    # predictive mean (transposed): rows 0..T-1
    meanT_ref[...] = combined[:T, :]                             # [T, L]

    # predictive diagonal variance: var_t = sum_j (phi L_t)_{.,j}^2
    # slice at sublane-aligned 128-row boundaries, square on VPU, reduce sublanes.
    rows = []
    for t in range(T):
        blk = combined[T_PAD + t * M: T_PAD + (t + 1) * M, :]    # [M, L]
        rows.append(jnp.sum(blk * blk, axis=0, keepdims=True))   # [1, L]
    varT_ref[...] = jnp.concatenate(rows, axis=0)                # [T, L]


# ----------------------------- wrapper -----------------------------------
def norm_idgp_forward(x, w_t, b_t, c_packed):
    """x: [S, N, D_in].  Returns (unnormalized, normalized, (mean, diag_var))."""
    s, n, d = x.shape
    sn = s * n
    scale = (2.0 / M) ** 0.5

    # Feature-major view of the flattened samples (tiny transpose done by XLA).
    xT = x.reshape(sn, d).T                                       # [D_IN, S*N]

    kernel = functools.partial(_idgp_kernel, scale=scale)

    out_shape = (
        jax.ShapeDtypeStruct((D_IN, sn), jnp.float32),            # tanh-normalized^T
        jax.ShapeDtypeStruct((T, sn), jnp.float32),               # mean^T
        jax.ShapeDtypeStruct((T, sn), jnp.float32),               # diag variance^T
    )

    grid_spec = pltpu.PrefetchScalarGridSpec(
        num_scalar_prefetch=0,
        grid=(sn // L_BLK,),                                      # 2 lane blocks
        in_specs=[
            pl.BlockSpec((D_IN, L_BLK), lambda i: (0, i)),        # x^T
            pl.BlockSpec((M, D_IN), lambda i: (0, 0)),            # W^T   (invariant)
            pl.BlockSpec((M, 1), lambda i: (0, 0)),               # b^T   (invariant)
            pl.BlockSpec((T_PAD + T * M, M), lambda i: (0, 0)),   # [m^T ; L^T] bf16
        ],
        out_specs=[
            pl.BlockSpec((D_IN, L_BLK), lambda i: (0, i)),
            pl.BlockSpec((T, L_BLK), lambda i: (0, i)),
            pl.BlockSpec((T, L_BLK), lambda i: (0, i)),
        ],
    )

    fnorT, meanT, varT = pl.pallas_call(
        kernel,
        out_shape=out_shape,
        grid_spec=grid_spec,
        compiler_params=pltpu.CompilerParams(
            dimension_semantics=("parallel",)),
    )(xT, w_t, b_t, c_packed)

    unnormalized_input_samples = x                                # inputs.detach().clone()
    normalized_input_samples = fnorT.T.reshape(s, n, d)           # [..., :D_in] is a no-op here
    mean = meanT.T.reshape(s, n, T)
    var = varT.T.reshape(s, n, T)
    # TODO(synk): gpytorch MultitaskMultivariateNormal / BlockDiagLinearOperator
    # object construction has no Pallas equivalent; returning (mean, diag_var).
    return unnormalized_input_samples, normalized_input_samples, (mean, var)


# ----------------------------- parameters -----------------------------------
def make_params(key):
    k_w, k_b, k_m, k_l = jax.random.split(key, 4)
    w = jax.random.normal(k_w, (D_IN, M), dtype=jnp.float32)          # RFF/VFF freqs
    b = jax.random.uniform(k_b, (1, M), dtype=jnp.float32,
                           minval=0.0, maxval=2.0 * jnp.pi)           # phases
    m_t = 0.1 * jax.random.normal(k_m, (T, M), dtype=jnp.float32)     # variational means

    # variational Cholesky factors L_t: [T, M, M], lower-triangular + jitter
    l_raw = 0.05 * jax.random.normal(k_l, (T, M, M), dtype=jnp.float32)
    l_tri = jnp.tril(l_raw) + 0.1 * jnp.eye(M, dtype=jnp.float32)[None]

    # feature-major packing (done once on the host):
    w_t = jnp.transpose(w, (1, 0))                                    # [M, D_IN]
    b_t = jnp.transpose(b, (1, 0))                                    # [M, 1]
    # rows [t*M:(t+1)*M] of lflat^T = L_t^T
    lflat_t = jnp.transpose(l_tri, (0, 2, 1)).reshape(T * M, M)       # [T*M, M]
    m_pad = jnp.zeros((T_PAD, M), jnp.float32).at[:T].set(m_t)        # [T_PAD, M]
    c_packed = jnp.concatenate([m_pad, lflat_t], axis=0)              # [T_PAD+T*M, M]
    c_packed = c_packed.astype(jnp.bfloat16)                          # bf16 MXU operand
    return w_t, b_t, c_packed


# ----------------------------- main -----------------------------------
if __name__ == "__main__":
    key = jax.random.PRNGKey(0)
    k_x, k_p = jax.random.split(key)

    # are_samples=True path: inputs are [S, N, D_in] samples -> normalization applied.
    # TODO(synk): the MultitaskMultivariateNormal-input rsample path is plain
    # reparameterized sampling and would live in JAX glue, not the kernel.
    x = jax.random.normal(k_x, (S, N, D_IN), dtype=jnp.float32)
    params = make_params(k_p)

    unnorm, norm, (mean, var) = norm_idgp_forward(x, *params)
    jax.block_until_ready((unnorm, norm, mean, var))

    assert unnorm.shape == (S, N, D_IN)
    assert norm.shape == (S, N, D_IN)
    assert mean.shape == (S, N, T)
    assert var.shape == (S, N, T)
    assert bool(jnp.all(jnp.isfinite(mean)))
    assert bool(jnp.all(var > 0.0))

    print("KERNEL_OK")
</pallas_src>

<mosaic_0001>
module attributes {stable_mosaic.version = 11 : i64} {
  func.func @_idgp_kernel(%arg0: i32, %arg1: memref<8x128xf32, #tpu.memory_space<vmem>>, %arg2: memref<128x8xf32, #tpu.memory_space<vmem>>, %arg3: memref<128x1xf32, #tpu.memory_space<vmem>>, %arg4: memref<520x128xbf16, #tpu.memory_space<vmem>>, %arg5: memref<8x128xf32, #tpu.memory_space<vmem>>, %arg6: memref<4x128xf32, #tpu.memory_space<vmem>>, %arg7: memref<4x128xf32, #tpu.memory_space<vmem>>) attributes {dimension_semantics = [#tpu.dimension_semantics<parallel>], iteration_bounds = array<i64: 2>, scalar_prefetch = 0 : i64, scratch_operands = 0 : i64, tpu.core_type = #tpu.core_type<tc>, window_params = [{transform_indices = @transform_0, window_bounds = array<i64: 8, 128>}, {pipeline_mode = #tpu.pipeline_mode<synchronous>, transform_indices = @transform_1, window_bounds = array<i64: 128, 8>}, {pipeline_mode = #tpu.pipeline_mode<synchronous>, transform_indices = @transform_2, window_bounds = array<i64: 128, 1>}, {pipeline_mode = #tpu.pipeline_mode<synchronous>, transform_indices = @transform_3, window_bounds = array<i64: 520, 128>}, {transform_indices = @transform_4, window_bounds = array<i64: 8, 128>}, {transform_indices = @transform_5, window_bounds = array<i64: 4, 128>}, {transform_indices = @transform_6, window_bounds = array<i64: 4, 128>}]} {
    %c0 = arith.constant 0 : index
    %c0_0 = arith.constant 0 : index
    %0 = vector.load %arg1[%c0, %c0_0] : memref<8x128xf32, #tpu.memory_space<vmem>>, vector<8x128xf32>
    %1 = math.tanh %0 : vector<8x128xf32>
    %c0_1 = arith.constant 0 : index
    %c0_2 = arith.constant 0 : index
    %2 = vector.load %arg5[%c0_1, %c0_2] : memref<8x128xf32, #tpu.memory_space<vmem>>, vector<8x128xf32>
    tpu.vector_store %arg5[%c0_1, %c0_2], %1 {strides = array<i32>} : memref<8x128xf32, #tpu.memory_space<vmem>>, vector<8x128xf32>,
    %c0_3 = arith.constant 0 : index
    %c0_4 = arith.constant 0 : index
    %3 = vector.load %arg2[%c0_3, %c0_4] : memref<128x8xf32, #tpu.memory_space<vmem>>, vector<128x8xf32>
    %cst = arith.constant dense<0.000000e+00> : vector<128x128xf32>
    %4 = tpu.matmul %3, %1, %cst {dimension_numbers = #tpu.dot_dimension_numbers<[1], [0], [0], [1], [0, 0, 1, 1], [], []>} : vector<128x8xf32>, vector<8x128xf32>, vector<128x128xf32> -> vector<128x128xf32>
    %c0_5 = arith.constant 0 : index
    %c0_6 = arith.constant 0 : index
    %5 = vector.load %arg3[%c0_5, %c0_6] : memref<128x1xf32, #tpu.memory_space<vmem>>, vector<128x1xf32>
    %6 = vector.broadcast %5 : vector<128x1xf32> to vector<128x128xf32>
    %7 = arith.addf %4, %6 : vector<128x128xf32>
    %8 = math.cos %7 : vector<128x128xf32>
    %cst_7 = arith.constant 1.250000e-01 : f32
    %9 = vector.broadcast %cst_7 : f32 to vector<128x128xf32>
    %10 = arith.mulf %8, %9 : vector<128x128xf32>
    %c0_8 = arith.constant 0 : index
    %c0_9 = arith.constant 0 : index
    %11 = vector.load %arg4[%c0_8, %c0_9] : memref<520x128xbf16, #tpu.memory_space<vmem>>, vector<520x128xbf16>
    %12 = arith.truncf %10 : vector<128x128xf32> to vector<128x128xbf16>
    %cst_10 = arith.constant dense<0.000000e+00> : vector<520x128xf32>
    %13 = tpu.matmul %11, %12, %cst_10 {dimension_numbers = #tpu.dot_dimension_numbers<[1], [0], [0], [1], [0, 0, 1, 1], [], []>} : vector<520x128xbf16>, vector<128x128xbf16>, vector<520x128xf32> -> vector<520x128xf32>
    %14 = vector.extract_strided_slice %13 {offsets = [0, 0], sizes = [4, 128], strides = [1, 1]} : vector<520x128xf32> to vector<4x128xf32>
    %c0_11 = arith.constant 0 : index
    %c0_12 = arith.constant 0 : index
    %15 = vector.load %arg6[%c0_11, %c0_12] : memref<4x128xf32, #tpu.memory_space<vmem>>, vector<4x128xf32>
    tpu.vector_store %arg6[%c0_11, %c0_12], %14 {strides = array<i32>} : memref<4x128xf32, #tpu.memory_space<vmem>>, vector<4x128xf32>,
    %16 = vector.extract_strided_slice %13 {offsets = [8, 0], sizes = [128, 128], strides = [1, 1]} : vector<520x128xf32> to vector<128x128xf32>
    %17 = arith.mulf %16, %16 : vector<128x128xf32>
    %cst_13 = arith.constant dense<0.000000e+00> : vector<128xf32>
    %18 = vector.multi_reduction <add>, %17, %cst_13 [0] : vector<128x128xf32> to vector<128xf32>
    %19 = vector.shape_cast %18 : vector<128xf32> to vector<1x128xf32>
    %20 = vector.extract_strided_slice %13 {offsets = [136, 0], sizes = [128, 128], strides = [1, 1]} : vector<520x128xf32> to vector<128x128xf32>
    %21 = arith.mulf %20, %20 : vector<128x128xf32>
    %cst_14 = arith.constant dense<0.000000e+00> : vector<128xf32>
    %22 = vector.multi_reduction <add>, %21, %cst_14 [0] : vector<128x128xf32> to vector<128xf32>
    %23 = vector.shape_cast %22 : vector<128xf32> to vector<1x128xf32>
    %24 = vector.extract_strided_slice %13 {offsets = [264, 0], sizes = [128, 128], strides = [1, 1]} : vector<520x128xf32> to vector<128x128xf32>
    %25 = arith.mulf %24, %24 : vector<128x128xf32>
    %cst_15 = arith.constant dense<0.000000e+00> : vector<128xf32>
    %26 = vector.multi_reduction <add>, %25, %cst_15 [0] : vector<128x128xf32> to vector<128xf32>
    %27 = vector.shape_cast %26 : vector<128xf32> to vector<1x128xf32>
    %28 = vector.extract_strided_slice %13 {offsets = [392, 0], sizes = [128, 128], strides = [1, 1]} : vector<520x128xf32> to vector<128x128xf32>
    %29 = arith.mulf %28, %28 : vector<128x128xf32>
    %cst_16 = arith.constant dense<0.000000e+00> : vector<128xf32>
    %30 = vector.multi_reduction <add>, %29, %cst_16 [0] : vector<128x128xf32> to vector<128xf32>
    %31 = vector.shape_cast %30 : vector<128xf32> to vector<1x128xf32>
    %32 = tpu.concatenate %19, %23, %27, %31 in 0 : vector<1x128xf32>, vector<1x128xf32>, vector<1x128xf32>, vector<1x128xf32> -> vector<4x128xf32>
    %c0_17 = arith.constant 0 : index
    %c0_18 = arith.constant 0 : index
    %33 = vector.load %arg7[%c0_17, %c0_18] : memref<4x128xf32, #tpu.memory_space<vmem>>, vector<4x128xf32>
    tpu.vector_store %arg7[%c0_17, %c0_18], %32 {strides = array<i32>} : memref<4x128xf32, #tpu.memory_space<vmem>>, vector<4x128xf32>,
    return
  }
  func.func @transform_0(%arg0: i32) -> (i32, i32) {
    %c0_i32 = arith.constant 0 : i32
    %c0_i32_0 = arith.constant 0 : i32
    return %c0_i32, %arg0 : i32, i32
  }
  func.func @transform_1(%arg0: i32) -> (i32, i32) {
    %c0_i32 = arith.constant 0 : i32
    %c0_i32_0 = arith.constant 0 : i32
    %c0_i32_1 = arith.constant 0 : i32
    return %c0_i32, %c0_i32_0 : i32, i32
  }
  func.func @transform_2(%arg0: i32) -> (i32, i32) {
    %c0_i32 = arith.constant 0 : i32
    %c0_i32_0 = arith.constant 0 : i32
    %c0_i32_1 = arith.constant 0 : i32
    return %c0_i32, %c0_i32_0 : i32, i32
  }
  func.func @transform_3(%arg0: i32) -> (i32, i32) {
    %c0_i32 = arith.constant 0 : i32
    %c0_i32_0 = arith.constant 0 : i32
    %c0_i32_1 = arith.constant 0 : i32
    return %c0_i32, %c0_i32_0 : i32, i32
  }
  func.func @transform_4(%arg0: i32) -> (i32, i32) {
    %c0_i32 = arith.constant 0 : i32
    %c0_i32_0 = arith.constant 0 : i32
    return %c0_i32, %arg0 : i32, i32
  }
  func.func @transform_5(%arg0: i32) -> (i32, i32) {
    %c0_i32 = arith.constant 0 : i32
    %c0_i32_0 = arith.constant 0 : i32
    return %c0_i32, %arg0 : i32, i32
  }
  func.func @transform_6(%arg0: i32) -> (i32, i32) {
    %c0_i32 = arith.constant 0 : i32
    %c0_i32_0 = arith.constant 0 : i32
    return %c0_i32, %arg0 : i32, i32
  }
}

</mosaic_0001>

<bundles_post_ra>
// kernel: tpu_custom_call.1
= control target key start
LH: loop header
LB: loop body
LE: loop exit
PB: predicated region body
PF: predicated region fallthrough
CT: control target
= control target key end

     0   :  { %12 = vsyncpa [#allocation3], 0  ;;  %s5886_s0 = inlined_call_operand.vmem [shape: f32[8,256], index: 0, kind: input, shape index: {}]   ;;  %s5887_s1 = inlined_call_operand.vmem [shape: f32[128,8], index: 1, kind: input, shape index: {}]   ;;  %s5888_s2 = inlined_call_operand.vmem [shape: f32[128,1], index: 2, kind: input, shape index: {}]   ;;  %s5889_s3 = inlined_call_operand.vmem [shape: bf16[520,128], index: 3, kind: input, shape index: {}]   ;;  %s5890_s4 = inlined_call_operand.hbm [shape: f32[8,256], index: 4, kind: output, shape index: {0}]   ;;  %s5891_s5 = inlined_call_operand.hbm [shape: f32[4,256], index: 5, kind: output, shape index: {1}]   ;;  %s5892_s6 = inlined_call_operand.hbm [shape: f32[4,256], index: 6, kind: output, shape index: {2}]  }
   0x1   :  { %14 = vsyncpa [#allocation3 + $0x1], 0 }
   0x2   :  { %15 = vsyncpa [#allocation5], 0 }
   0x3   :  { %17 = vsyncpa [#allocation5 + $0x1], 0  ;;  %s3901_s21 = smov 0   ;;  %s3903_s22 = smov 0  }
   0x4   :  { %s3905_s23 = smov 0   ;;  %s3907_s24 = smov 0  }
   0x5 LB: > { %s3922_s25 = sadd.s32 4294967295, %s3852_s24   ;;  %s5946_s26 = sadd.s32 4294967294, %s3852_s24   ;;  %s3852_s24 = sphi %s3907_s24, %s6069_s24   ;;  %s3848_s23 = sphi %s3905_s23, %s6068_s23   ;;  %s3844_s22 = sphi %s3903_s22, %s6067_s22   ;;  %s3840_s21 = sphi %s3901_s21, %s6066_s21  }
   0x6   : > { %s3926_s27 = sadd.s32 1, %s3852_s24   ;;  %s119_s28 = sadd.s32 1, %s3848_s23 }
   0x7   : > { %s116_s29 = ssub.s32 %s3852_s24, %s3926_s27  ;;  %p129_p0 = scmp.ne.s32.totalorder %s3848_s23, %s3844_s22 }
   0x8   : > { %p117_p1 = scmp.eq.s32.totalorder %s116_s29, 0  ;;  %p130_p2 = scmp.eq.s32.totalorder %s3922_s25, 1 }
   0x9   : > { %p135_p3 = scmp.ne.s32.totalorder %s3844_s22, %s3840_s21  ;;  %p136_p4 = scmp.eq.s32.totalorder %s5946_s26, 1 }
   0xa   : > { %s3939_s30 = scalar_select %p117_p1, %s3848_s23, %s119_s28  }
   0xb   : > { %p3941_p5 = por %p130_p2, %p129_p0  ;;  %p3945_p6 = por %p136_p4, %p135_p3 }
   0xc   : > { %p3133_p7 = scmp.ge.s32.totalorder %s3852_s24, 1  ;;  %p222_p8 = scmp.lt.s32.totalorder %s3852_s24, 3 }
   0xe   : > { %p223_p9 = pnand %p3133_p7, %p222_p8 }
  0x10   : > { %226 = sbr.rel (%p223_p9) target bundleno = 1043 (0x413), region = 36 }
  0x17   : > { %p261_p10 = scmp.lt.s32.totalorder %s3922_s25, 1  ;;  %v269_v0 = vld [vmem:[%s5887_s1] sm:$0xff]  ;;  %vm381_vm0 = vcmask 64512   ;;  %v3854_v1 = vmov 0   ;;  %v287_v3 = vld [vmem:[%s5888_s2 + $0x10] sm:$0xff]  ;;  %v286_v5 = vld [vmem:[%s5888_s2 + $0x8] sm:$0xff] }
  0x18   : > { %3319 = vmatprep.mubr.msk.f32.mxu0 %vm381_vm0, %v269_v0  ;;  %3629 = vset.pattern.permute.xlu0 %v3854_v1  ;;  %v285_v2 = vld [vmem:[%s5888_s2] sm:$0xff]  ;;  %v288_v6 = vld [vmem:[%s5888_s2 + $0x18] sm:$0xff]  ;;  %v290_v8 = vld [vmem:[%s5888_s2 + $0x28] sm:$0xff]  ;;  %s5756_s18 = sand.u32 1, %s3844_s22   ;;  %s2965_s29 = sand.u32 1, %s3922_s25  }
  0x19   : > { %s262_s11 = scalar_select %p261_p10, %s3922_s25, 1  ;;  %3630 = vset.pattern.permute.xlu1 %v3854_v1  ;;  %303 = vperm.xlu0 %3629, %v285_v2   ;;  %v289_v7 = vld [vmem:[%s5888_s2 + $0x20] sm:$0xff]  ;;  %v291_v9 = vld [vmem:[%s5888_s2 + $0x30] sm:$0xff]  ;;  %v292_v10 = vld [vmem:[%s5888_s2 + $0x38] sm:$0xff] }
  0x1a   : > { %313 = vperm.xlu1 %3630, %v287_v3   ;;  %v270_v11 = vld [vmem:[%s5887_s1 + $0x8] sm:$0xff]  ;;  %v271_v12 = vld [vmem:[%s5887_s1 + $0x10] sm:$0xff]  ;;  %v293_v14 = vld [vmem:[%s5888_s2 + $0x40] sm:$0xff]  ;;  %s3135_s19 = sshll.u32 %s5756_s18, 2  ;;  %s3255_s9 = sshll.u32 %s3922_s25, 6 }
  0x1b   : > { %s3137_s12 = sshll.u32 %s262_s11, 3  ;;  %v294_v15 = vld [vmem:[%s5888_s2 + $0x48] sm:$0xff]  ;;  %v272_v16 = vld [vmem:[%s5887_s1 + $0x18] sm:$0xff]  ;;  %v273_v17 = vld [vmem:[%s5887_s1 + $0x20] sm:$0xff]  ;;  %s253_s20 = scalar_lea.vmem [#allocation4], %s3135_s19 }
  0x1c   : > { %s264_s15 = scalar_lea.vmem %s5886_s0, %s3137_s12  ;;  %v295_v18 = vld [vmem:[%s5888_s2 + $0x50] sm:$0xff]  ;;  %v296_v19 = vld [vmem:[%s5888_s2 + $0x58] sm:$0xff]  ;;  %v274_v20 = vld [vmem:[%s5887_s1 + $0x28] sm:$0xff]  ;;  %s2997_s28 = sshll.u32 %s253_s20, 4  ;;  %s5763_s28 = int_to_ptr.vmem [resolvable:$true] %s2997_s28 }
  0x1d   : > { %v266_v4 = vld [vmem:[%s264_s15] sm:$0xff]  ;;  %308 = vperm.xlu0 %3629, %v286_v5   ;;  %v275_v21 = vld [vmem:[%s5887_s1 + $0x30] sm:$0xff]  ;;  %v298_v23 = vld [vmem:[%s5888_s2 + $0x68] sm:$0xff]  ;;  %s5772_s12 = scalar_lea.hbm %s5891_s5, %s3255_s9  ;;  %s5774_s13 = scalar_lea.sflag [#allocation5], %s2965_s29 }
  0x1e   : > { %3664 = vtanh.f32 %v266_v4  ;;  %318 = vperm.xlu1 %3630, %v288_v6   ;;  %v297_v22 = vld [vmem:[%s5888_s2 + $0x60] sm:$0xff]  ;;  %v276_v24 = vld [vmem:[%s5887_s1 + $0x38] sm:$0xff]  ;;  %v299_v26 = vld [vmem:[%s5888_s2 + $0x70] sm:$0xff]  ;;  %s3730_s14 = scalar_lea.vmem %s5763_s28, 64  ;;  %s3863_s15 = smov [#allocation4]  }
  0x1f   : > { %v277_v25 = vld [vmem:[%s5887_s1 + $0x40] sm:$0xff]  ;;  %v300_v27 = vld [vmem:[%s5888_s2 + $0x78] sm:$0xff]  ;;  %v278_v28 = vld [vmem:[%s5887_s1 + $0x48] sm:$0xff]  ;;  %p3731_p11 = scmp.ne.s32.totalorder %s5763_s28, %s3730_s14  ;;  %s3734_s16 = sshll.u32 %s3863_s15, 4  ;;  %s3735_s16 = int_to_ptr.vmem [resolvable:$false] %s3734_s16 }
  0x20   : > { %v279_v29 = vld [vmem:[%s5887_s1 + $0x50] sm:$0xff]  ;;  %v280_v30 = vld [vmem:[%s5887_s1 + $0x58] sm:$0xff]  ;;  %v281_v31 = vld [vmem:[%s5887_s1 + $0x60] sm:$0xff]  ;;  %s3736_s17 = scalar_lea.vmem %s3735_s16, 128  ;;  %p3737_p0 = scmp.lt.s32.totalorder %s5763_s28, %s3735_s16 }
  0x21   : > { %323 = vperm.xlu0 %3629, %v289_v7   ;;  %v282_v32 = vld [vmem:[%s5887_s1 + $0x68] sm:$0xff]  ;;  %v283_v33 = vld [vmem:[%s5887_s1 + $0x70] sm:$0xff]  ;;  %v284_v34 = vld [vmem:[%s5887_s1 + $0x78] sm:$0xff]  ;;  %p3732_p12 = pnand %p3731_p11, %p3941_p5  ;;  %p3738_p1 = scmp.lt.s32.totalorder %s3736_s17, %s3730_s14 }
  0x22   : > { %328 = vperm.xlu1 %3630, %v290_v8  }
  0x23   : > { %p3733_p13 = pneg %p3732_p12  ;;  %p3739_p2 = por %p3738_p1, %p3737_p0 }
  0x25   : > { %333 = vperm.xlu0 %3629, %v291_v9   ;;  %p3740_p3 = pnand %p3739_p2, %p3733_p13 }
  0x26   : > { %338 = vperm.xlu1 %3630, %v292_v10  }
  0x28   : > { %v3990_v13 = vpop.eup %3664 }
  0x29   : > { %5949 = vst [vmem:[#allocation9_spill] sm:$0xff] %v3990_v13  ;;  %3317 = vmatprep.subr.mxu0 %v3990_v13  ;;  %343 = vperm.xlu0 %3629, %v293_v14  }
  0x2a   : > { %3318 = vmatpush3.msra.mxu0 %v3990_v13  ;;  %348 = vperm.xlu1 %3630, %v294_v15  }
  0x2b   : > { %3320 = vmatmul.mubr.msk.f32.vlgmr.msra.gmra.mrb[0].mxu0 %vm381_vm0, %v270_v11  ;;  %v5907_v11 = vmov 683565275  }
  0x2c   : > { %3322 = vmatprep.mubr.msk.f32.mxu0 %vm381_vm0, %v271_v12 }
  0x2d   : > { %353 = vperm.xlu0 %3629, %v295_v18   ;;  %v5895_v18 = vmov 2131351028  }
  0x2e   : > { %358 = vperm.xlu1 %3630, %v296_v19  }
  0x2f   : > { %3323 = vmatmul.mubr.msk.f32.gmra.mrb[2].mxu0 %vm381_vm0, %v272_v16  ;;  %v5904_v16 = vmov 2475754826  }
  0x30   : > { %3325 = vmatprep.mubr.msk.f32.mxu0 %vm381_vm0, %v273_v17 }
  0x31   : > { %363 = vperm.xlu0 %3629, %v297_v22   ;;  %v5900_v22 = vmov 920167782  }
  0x32   : > { %368 = vperm.xlu1 %3630, %v298_v23  }
  0x33   : > { %3326 = vmatmul.mubr.msk.f32.gmra.mrb[4].mxu0 %vm381_vm0, %v274_v20  ;;  %v5902_v20 = vmov 2102212464  }
  0x34   : > { %3328 = vmatprep.mubr.msk.f32.mxu0 %vm381_vm0, %v275_v21 }
  0x35   : > { %373 = vperm.xlu0 %3629, %v299_v26  }
  0x36   : > { %378 = vperm.xlu1 %3630, %v300_v27  }
  0x37   : > { %3329 = vmatmul.mubr.msk.f32.gmra.mrb[6].mxu0 %vm381_vm0, %v276_v24 }
  0x38   : > { %3331 = vmatprep.mubr.msk.f32.mxu0 %vm381_vm0, %v277_v25 }
  0x3b   : > { %3332 = vmatmul.mubr.msk.f32.gmra.mrb[8].mxu0 %vm381_vm0, %v278_v28 }
  0x3c   : > { %3334 = vmatprep.mubr.msk.f32.mxu0 %vm381_vm0, %v279_v29  ;;  %v5897_v29 = vmov 1326507024  }
  0x3f   : > { %3335 = vmatmul.mubr.msk.f32.gmra.mrb[10].mxu0 %vm381_vm0, %v280_v30 }
  0x40   : > { %3337 = vmatprep.mubr.msk.f32.mxu0 %vm381_vm0, %v281_v31 }
  0x43   : > { %3338 = vmatmul.mubr.msk.f32.gmra.mrb[12].mxu0 %vm381_vm0, %v282_v32 }
  0x44   : > { %3340 = vmatprep.mubr.msk.f32.mxu0 %vm381_vm0, %v283_v33 }
  0x47   : > { %3341 = vmatmul.mubr.msk.f32.gmra.mrb[14].mxu0 %vm381_vm0, %v284_v34 }
  0x98   : > { %v304_v35 = vpop.permute.xlu0 %303 }
  0x99   : > { %v4072_v36 = vpop.permute.xlu1 %313 }
  0x9c   : > { %v309_v37 = vpop.permute.xlu0 %308 }
  0x9d   : > { %v319_v44 = vpop.permute.xlu1 %318 }
  0xfe   : > { %v3321_v38 = vpop.f32.mrb[0].mxu0 }
  0xff   : > { %v4074_v39 = vadd.f32 %v3321_v38, %v309_v37  ;;  %v496_v40 = vpop.f32.mrb[1].mxu0 }
 0x100   : > { %v4076_v41 = vadd.f32 %v496_v40, %v304_v35 }
 0x101   : > { %v678_v42 = vand.u32 2147483647, %v4074_v39  ;;  %v681_v43 = vand.u32 2139095040, %v4074_v39 }
 0x102   : > { %v575_v45 = vand.u32 2147483647, %v4076_v41  ;;  %v578_v46 = vand.u32 2139095040, %v4076_v41  ;;  %v3324_v47 = vpop.f32.mrb[2].mxu0 }
 0x103   : > { %v682_v48 = vshrl.u32 %v681_v43, 23  ;;  %v4082_v49 = vadd.f32 %v3324_v47, %v319_v44  ;;  %v4084_v50 = vpop.f32.mrb[3].mxu0  ;;  %v685_v51 = vand.u32 8388607, %v678_v42 }
 0x104   : > { %v579_v52 = vshrl.u32 %v578_v46, 23  ;;  %v582_v53 = vand.u32 8388607, %v575_v45 }
 0x105   : > { %5950 = vst [vmem:[#allocation10_spill] sm:$0xff] %v4082_v49  ;;  %v3158_v54 = vadd.s32 4294967169, %v682_v48  ;;  %v887_v56 = vand.u32 2139095040, %v4082_v49  ;;  %v686_v59 = vor.u32 8388608, %v685_v51 }
 0x106   : > { %v3154_v55 = vadd.s32 4294967169, %v579_v52  ;;  %v4091_v57 = vpop.f32.mrb[4].mxu0  ;;  %v583_v60 = vor.u32 8388608, %v582_v53 }
 0x107   : > { %v688_v58 = vadd.s32 1, %v3158_v54  ;;  %v888_v62 = vshrl.u32 %v887_v56, 23  ;;  %v4093_v63 = vpop.f32.mrb[5].mxu0  ;;  %v4099_v7 = vshll.u32 %v686_v59, 8 }
 0x108   : > { %v585_v61 = vadd.s32 1, %v3154_v55  ;;  %v4103_v9 = vshll.u32 %v583_v60, 8 }
 0x109   : > { %vm689_vm1 = vcmp.gt.s32.totalorder %v688_v58, 0  ;;  %v3166_v1 = vadd.s32 4294967169, %v888_v62 }
 0x10a   : > { %v690_v0 = vsel %vm689_vm1, %v688_v58, 0  ;;  %vm586_vm2 = vcmp.gt.s32.totalorder %v585_v61, 0  ;;  %v4095_v2 = vpop.f32.mrb[6].mxu0 }
 0x10b   : > { %v691_v3 = vshrl.u32 %v690_v0, 5  ;;  %v692_v4 = vand.u32 31, %v690_v0  ;;  %v587_v5 = vsel %vm586_vm2, %v585_v61, 0  ;;  %v4097_v6 = vpop.f32.mrb[7].mxu0  ;;  %v4106_v15 = vadd.s32 1, %v3166_v1 }
 0x10c   : > { %v4101_v8 = vshrl.u32 %v587_v5, 5  ;;  %v589_v14 = vand.u32 31, %v587_v5 }
 0x10d   : > { %v693_v10 = vsub.s32 32, %v692_v4  ;;  %v695_v12 = vshll.u32 %v5907_v11, %v692_v4  ;;  %v698_v17 = vshll.u32 %v5904_v16, %v692_v4  ;;  %v701_v19 = vshll.u32 %v5895_v18, %v692_v4 }
 0x10e   : > { %v704_v21 = vshll.u32 %v5902_v20, %v692_v4  ;;  %v707_v23 = vshll.u32 %v5900_v22, %v692_v4  ;;  %vm710_vm3 = vcmp.lt.s32.totalorder %v691_v3, 1  ;;  %vm711_vm4 = vcmp.lt.s32.totalorder %v691_v3, 2  ;;  %v4124_v56 = vpop.f32.mrb[8].mxu0 }
 0x10f   : > { %v696_v24 = vshrl.u32 %v5904_v16, %v693_v10  ;;  %v699_v25 = vshrl.u32 %v5895_v18, %v693_v10  ;;  %v702_v26 = vshrl.u32 %v5902_v20, %v693_v10  ;;  %v694_v27 = vshrl.u32 %v5907_v11, %v693_v10 }
 0x110   : > { %v705_v28 = vshrl.u32 %v5900_v22, %v693_v10  ;;  %v708_v30 = vshrl.u32 %v5897_v29, %v693_v10  ;;  %v590_v34 = vsub.s32 32, %v589_v14  ;;  %vm712_vm5 = vcmp.lt.s32.totalorder %v691_v3, 3 }
 0x111   : > { %v697_v31 = vor.u32 %v696_v24, %v695_v12  ;;  %v700_v32 = vor.u32 %v699_v25, %v698_v17  ;;  %v703_v33 = vor.u32 %v702_v26, %v701_v19  ;;  %vm713_vm6 = vcmp.lt.s32.totalorder %v691_v3, 4 }
 0x112   : > { %v706_v35 = vor.u32 %v705_v28, %v704_v21  ;;  %v709_v37 = vor.u32 %v708_v30, %v707_v23  ;;  %v592_v51 = vshll.u32 %v5907_v11, %v589_v14  ;;  %v593_v54 = vshrl.u32 %v5904_v16, %v590_v34 }
 0x113   : > { %v714_v38 = vsel %vm710_vm3, %v694_v27, %v697_v31  ;;  %v715_v40 = vsel %vm713_vm6, %v703_v33, 2102212464  ;;  %v718_v43 = vsel %vm710_vm3, %v697_v31, %v700_v32  ;;  %v722_v44 = vsel %vm710_vm3, %v700_v32, %v703_v33 }
 0x114   : > { %v716_v46 = vsel %vm712_vm5, %v700_v32, %v715_v40  ;;  %v719_v47 = vsel %vm713_vm6, %v706_v35, 920167782  ;;  %v723_v48 = vsel %vm713_vm6, %v709_v37, 1326507024  ;;  %v595_v55 = vshll.u32 %v5904_v16, %v589_v14 }
 0x115   : > { %v720_v52 = vsel %vm712_vm5, %v703_v33, %v719_v47  ;;  %v724_v53 = vsel %vm712_vm5, %v706_v35, %v723_v48  ;;  %v717_v58 = vsel %vm711_vm4, %v714_v38, %v716_v46  ;;  %v596_v61 = vshrl.u32 %v5895_v18, %v590_v34 }
 0x116   : > { %v721_v59 = vsel %vm711_vm4, %v718_v43, %v720_v52  ;;  %v725_v60 = vsel %vm711_vm4, %v722_v44, %v724_v53  ;;  %v594_v5 = vor.u32 %v593_v54, %v592_v51  ;;  %v598_v12 = vshll.u32 %v5895_v18, %v589_v14 }
 0x117   : > { %v4131_v62 = vmul.u32.u64.low %v4099_v7, %v725_v60  ;;  %v4132_v0 = vmul.u32.u64.high %v4099_v7, %v725_v60, %v4131_v62  ;;  %v4135_v1 = vmul.u32.u64.low %v4099_v7, %v721_v59  ;;  %v4136_v4 = vmul.u32.u64.high %v4099_v7, %v721_v59, %v4135_v1 }
 0x118   : > { %v597_v10 = vor.u32 %v596_v61, %v595_v55  ;;  %v599_v17 = vshrl.u32 %v5902_v20, %v590_v34  ;;  %v591_v3 = vshrl.u32 %v5907_v11, %v590_v34  ;;  %v601_v19 = vshll.u32 %v5902_v20, %v589_v14 }
 0x119   : > { %v602_v21 = vshrl.u32 %v5900_v22, %v590_v34  ;;  %v605_v23 = vshrl.u32 %v5897_v29, %v590_v34  ;;  %v733_v24 = vmul.u32 %v4099_v7, %v717_v58  ;;  %v604_v26 = vshll.u32 %v5900_v22, %v589_v14 }
 0x11a   : > { %v600_v25 = vor.u32 %v599_v17, %v598_v12  ;;  %vm607_vm7 = vcmp.lt.s32.totalorder %v4101_v8, 1  ;;  %vm735_vm8 = vc.u32 %v4132_v0, %v4135_v1  ;;  %v736_v27 = vadd.s32 1, %v4136_v4 }
 0x11b   : > { %v603_v28 = vor.u32 %v602_v21, %v601_v19  ;;  %vm608_vm9 = vcmp.lt.s32.totalorder %v4101_v8, 2  ;;  %v606_v30 = vor.u32 %v605_v23, %v604_v26  ;;  %vm609_vm10 = vcmp.lt.s32.totalorder %v4101_v8, 3 }
 0x11c   : > { %vm610_vm11 = vcmp.lt.s32.totalorder %v4101_v8, 4  ;;  %v615_v31 = vsel %vm607_vm7, %v594_v5, %v597_v10  ;;  %v737_v7 = vsel %vm735_vm8, %v736_v27, %v4136_v4  ;;  %v619_v33 = vsel %vm607_vm7, %v597_v10, %v600_v25 }
 0x11d   : > { %v612_v32 = vsel %vm610_vm11, %v600_v25, 2102212464  ;;  %v616_v14 = vsel %vm610_vm11, %v603_v28, 920167782  ;;  %v738_v34 = vadd.s32 %v737_v7, %v733_v24  ;;  %v611_v35 = vsel %vm607_vm7, %v591_v3, %v594_v5 }
 0x11e   : > { %v617_v37 = vsel %vm609_vm10, %v600_v25, %v616_v14  ;;  %v620_v38 = vsel %vm610_vm11, %v606_v30, 1326507024  ;;  %v613_v40 = vsel %vm609_vm10, %v597_v10, %v612_v32  ;;  %vm895_vm12 = vcmp.gt.s32.totalorder %v4106_v15, 0 }
 0x11f   : > { %v618_v43 = vsel %vm608_vm9, %v615_v31, %v617_v37  ;;  %v621_v44 = vsel %vm609_vm10, %v603_v28, %v620_v38  ;;  %v739_v46 = vadd.s32 536870912, %v738_v34  ;;  %v896_v54 = vsel %vm895_vm12, %v4106_v15, 0  ;;  %v4184_v15 = vpop.f32.mrb[9].mxu0 }
 0x120   : > { %v622_v47 = vsel %vm608_vm9, %v619_v33, %v621_v44  ;;  %v4161_v48 = vmul.u32.u64.low %v4103_v9, %v618_v43  ;;  %v4162_v51 = vmul.u32.u64.high %v4103_v9, %v618_v43, %v4161_v48  ;;  %v614_v58 = vsel %vm608_vm9, %v611_v35, %v613_v40 }
 0x121   : > { %v4166_v52 = vmul.u32.u64.low %v4103_v9, %v622_v47  ;;  %v4167_v53 = vmul.u32.u64.high %v4103_v9, %v622_v47, %v4166_v52  ;;  %v4170_v55 = vshrl.u32 %v739_v46, 30  ;;  %v884_v59 = vand.u32 2147483647, %v4082_v49 }
 0x122   : > { %v898_v60 = vand.u32 31, %v896_v54  ;;  %v633_v62 = vadd.s32 1, %v4162_v51  ;;  %v4179_v5 = vadd.f32 %v4084_v50, %v4072_v36  ;;  %v630_v10 = vmul.u32 %v4103_v9, %v614_v58 }
 0x123   : > { %v741_v61 = vshll.u32 %v4170_v55, 30  ;;  %vm632_vm13 = vc.u32 %v4167_v53, %v4161_v48  ;;  %v891_v17 = vand.u32 8388607, %v884_v59  ;;  %v897_v26 = vshrl.u32 %v896_v54, 5 }
 0x124   : > { %v899_v4 = vsub.s32 32, %v898_v60  ;;  %5951 = vst [vmem:[#allocation11_spill] sm:$0xff] %v4179_v5  ;;  %v634_v12 = vsel %vm632_vm13, %v633_v62, %v4162_v51  ;;  %v901_v19 = vshll.u32 %v5907_v11, %v898_v60  ;;  %v904_v21 = vshll.u32 %v5904_v16, %v898_v60 }
 0x125   : > { %v4186_v8 = vsub.s32 %v738_v34, %v741_v61  ;;  %v635_v3 = vadd.s32 %v634_v12, %v630_v10  ;;  %v784_v24 = vand.u32 2139095040, %v4179_v5  ;;  %v907_v28 = vshll.u32 %v5895_v18, %v898_v60 }
 0x126   : > { %v902_v36 = vshrl.u32 %v5904_v16, %v899_v4  ;;  %v905_v50 = vshrl.u32 %v5895_v18, %v899_v4  ;;  %v908_v23 = vshrl.u32 %v5902_v20, %v899_v4  ;;  %v910_v7 = vshll.u32 %v5902_v20, %v898_v60 }
 0x127   : > { %v744_v9 = vsub.s32 0, %v4186_v8  ;;  %v636_v25 = vadd.s32 536870912, %v635_v3  ;;  %v911_v32 = vshrl.u32 %v5900_v22, %v899_v4  ;;  %v892_v33 = vor.u32 8388608, %v891_v17 }
 0x128   : > { %v903_v27 = vor.u32 %v902_v36, %v901_v19  ;;  %v906_v31 = vor.u32 %v905_v50, %v904_v21  ;;  %v909_v34 = vor.u32 %v908_v23, %v907_v28  ;;  %v914_v35 = vshrl.u32 %v5897_v29, %v899_v4 }
 0x129   : > { %v3159_v30 = vmin.u32 %v744_v9, %v4186_v8  ;;  %v4202_v14 = vshrl.u32 %v636_v25, 30  ;;  %v912_v38 = vor.u32 %v911_v32, %v910_v7  ;;  %v913_v40 = vshll.u32 %v5900_v22, %v898_v60 }
 0x12a   : > { %v785_v43 = vshrl.u32 %v784_v24, 23  ;;  %vm916_vm14 = vcmp.lt.s32.totalorder %v897_v26, 1  ;;  %vm918_vm15 = vcmp.lt.s32.totalorder %v897_v26, 3  ;;  %vm919_vm0 = vcmp.lt.s32.totalorder %v897_v26, 4 }
 0x12b   : > { %v746_v37 = vclz %v3159_v30  ;;  %v638_v44 = vshll.u32 %v4202_v14, 30  ;;  %v915_v47 = vor.u32 %v914_v35, %v913_v40  ;;  %v924_v51 = vsel %vm916_vm14, %v903_v27, %v906_v31 }
 0x12c   : > { %v925_v52 = vsel %vm919_vm0, %v912_v38, 920167782  ;;  %vm917_vm1 = vcmp.lt.s32.totalorder %v897_v26, 2  ;;  %v921_v58 = vsel %vm919_vm0, %v909_v34, 2102212464  ;;  %v900_v60 = vshrl.u32 %v5907_v11, %v899_v4 }
 0x12d   : > { %v3160_v46 = vadd.s32 4294967294, %v746_v37  ;;  %v4209_v54 = vsub.s32 %v635_v3, %v638_v44  ;;  %v926_v61 = vsel %vm918_vm15, %v909_v34, %v925_v52  ;;  %v932_v10 = vshll.u32 %v892_v33, 8 }
 0x12e   : > { %v927_v62 = vsel %vm917_vm1, %v924_v51, %v926_v61  ;;  %v928_v19 = vsel %vm916_vm14, %v906_v31, %v909_v34  ;;  %v3162_v36 = vadd.s32 4294967169, %v785_v43  ;;  %v920_v3 = vsel %vm916_vm14, %v900_v60, %v903_v27 }
 0x12f   : > { %vm3161_vm2 = vcmp.lt.s32.totalorder %v3160_v46, 0  ;;  %v641_v17 = vsub.s32 0, %v4209_v54  ;;  %v922_v9 = vsel %vm918_vm15, %v906_v31, %v921_v58  ;;  %v929_v21 = vsel %vm919_vm0, %v915_v47, 1326507024 }
 0x130   : > { %v749_v12 = vsel %vm3161_vm2, 0, %v3160_v46  ;;  %v930_v4 = vsel %vm918_vm15, %v912_v38, %v929_v21  ;;  %v4222_v24 = vmul.u32.u64.low %v932_v10, %v927_v62  ;;  %v4223_v25 = vmul.u32.u64.high %v932_v10, %v927_v62, %v4222_v24 }
 0x131   : > { %v754_v50 = vsub.s32 4294967266, %v749_v12  ;;  %v3155_v23 = vmin.u32 %v641_v17, %v4209_v54  ;;  %v750_v28 = vsub.s32 32, %v749_v12  ;;  %v931_v7 = vsel %vm917_vm1, %v928_v19, %v930_v4  ;;  %v329_v17 = vpop.permute.xlu1 %328 }
 0x132   : > { %v4227_v33 = vmul.u32.u64.low %v932_v10, %v931_v7  ;;  %v4228_v34 = vmul.u32.u64.high %v932_v10, %v931_v7, %v4227_v33  ;;  %v791_v27 = vadd.s32 1, %v3162_v36  ;;  %v734_v31 = vadd.s32 %v4135_v1, %v4132_v0 }
 0x133   : > { %v755_v30 = vadd.s32 127, %v754_v50  ;;  %v643_v32 = vclz %v3155_v23  ;;  %v923_v35 = vsel %vm917_vm1, %v920_v3, %v922_v9  ;;  %v781_v37 = vand.u32 2147483647, %v4179_v5  ;;  %v4254_v23 = vpop.f32.mrb[10].mxu0 }
 0x134   : > { %v942_v40 = vadd.s32 1, %v4223_v25  ;;  %vm792_vm3 = vcmp.gt.s32.totalorder %v791_v27, 0  ;;  %v752_v43 = vshrl.u32 %v734_v31, %v750_v28  ;;  %v939_v47 = vmul.u32 %v932_v10, %v923_v35  ;;  %v324_v10 = vpop.permute.xlu0 %323 }
 0x135   : > { %v3156_v38 = vadd.s32 4294967294, %v643_v32  ;;  %v756_v44 = vshll.u32 %v755_v30, 23  ;;  %v793_v46 = vsel %vm792_vm3, %v791_v27, 0  ;;  %vm941_vm5 = vc.u32 %v4228_v34, %v4222_v24 }
 0x136   : > { %v751_v51 = vshll.u32 %v4186_v8, %v749_v12  ;;  %v943_v0 = vsel %vm941_vm5, %v942_v40, %v4223_v25  ;;  %v788_v1 = vand.u32 8388607, %v781_v37  ;;  %v795_v26 = vand.u32 31, %v793_v46 }
 0x137   : > { %vm3157_vm4 = vcmp.lt.s32.totalorder %v3156_v38, 0  ;;  %v944_v58 = vadd.s32 %v943_v0, %v939_v47  ;;  %v757_v60 = vor.u32 4788187, %v756_v44  ;;  %v4245_v8 = vadd.f32 %v4091_v57, %v329_v17 }
 0x138   : > { %v4241_v52 = vsel %vm3157_vm4, 0, %v3156_v38  ;;  %v753_v61 = vor.u32 %v752_v43, %v751_v51  ;;  %v796_v62 = vsub.s32 32, %v795_v26  ;;  %v789_v50 = vor.u32 8388608, %v788_v1 }
 0x139   : > { %v945_v19 = vadd.s32 536870912, %v944_v58  ;;  %v651_v36 = vsub.s32 4294967266, %v4241_v52  ;;  %v4252_v21 = vadd.f32 %v4093_v63, %v324_v10  ;;  %v758_v4 = vand.u32 2147483647, %v757_v60 }
 0x13a   : > { %v799_v3 = vshrl.u32 %v5904_v16, %v796_v62  ;;  %v802_v9 = vshrl.u32 %v5895_v18, %v796_v62  ;;  %v760_v25 = vcvt.s32.f32 %v753_v61  ;;  %v631_v28 = vadd.s32 %v4161_v48, %v4167_v53 }
 0x13b   : > { %v4247_v12 = vshrl.u32 %v945_v19, 30  ;;  %v805_v30 = vshrl.u32 %v5902_v20, %v796_v62  ;;  %v647_v57 = vsub.s32 32, %v4241_v52  ;;  %v798_v32 = vshll.u32 %v5907_v11, %v795_v26 }
 0x13c   : > { %v801_v33 = vshll.u32 %v5904_v16, %v795_v26  ;;  %v652_v27 = vadd.s32 127, %v651_v36  ;;  %v804_v63 = vshll.u32 %v5895_v18, %v795_v26  ;;  %v807_v31 = vshll.u32 %v5902_v20, %v795_v26 }
 0x13d   : > { %v947_v7 = vshll.u32 %v4247_v12, 30  ;;  %v808_v35 = vshrl.u32 %v5900_v22, %v796_v62  ;;  %v794_v48 = vshrl.u32 %v793_v46, 5  ;;  %v800_v53 = vor.u32 %v799_v3, %v798_v32 }
 0x13e   : > { %v803_v40 = vor.u32 %v802_v9, %v801_v33  ;;  %v806_v43 = vor.u32 %v805_v30, %v804_v63  ;;  %v810_v47 = vshll.u32 %v5900_v22, %v795_v26  ;;  %v811_v51 = vshrl.u32 %v5897_v29, %v796_v62 }
 0x13f   : > { %v4266_v38 = vsub.s32 %v944_v58, %v947_v7  ;;  %v809_v44 = vor.u32 %v808_v35, %v807_v31  ;;  %vm680_vm6 = vcmp.lt.s32.totalorder %v4074_v39, 0  ;;  %v764_v0 = vsub.s32 4, %v4170_v55 }
 0x140   : > { %v648_v1 = vshll.u32 %v4209_v54, %v4241_v52  ;;  %v829_v58 = vshll.u32 %v789_v50, 8  ;;  %v761_v60 = vmul.f32 %v760_v25, %v758_v4  ;;  %v649_v46 = vshrl.u32 %v631_v28, %v647_v57 }
 0x141   : > { %v950_v61 = vsub.s32 0, %v4266_v38  ;;  %v653_v17 = vshll.u32 %v652_v27, 23  ;;  %v812_v19 = vor.u32 %v811_v51, %v810_v47  ;;  %v797_v26 = vshrl.u32 %v5907_v11, %v796_v62 }
 0x142   : > { %vm813_vm7 = vcmp.lt.s32.totalorder %v794_v48, 1  ;;  %vm816_vm8 = vcmp.lt.s32.totalorder %v794_v48, 4  ;;  %vm815_vm9 = vcmp.lt.s32.totalorder %v794_v48, 3  ;;  %vm814_vm10 = vcmp.lt.s32.totalorder %v794_v48, 2 }
 0x143   : > { %v3167_v10 = vmin.u32 %v950_v61, %v4266_v38  ;;  %v818_v36 = vsel %vm816_vm8, %v806_v43, 2102212464  ;;  %v821_v3 = vsel %vm813_vm7, %v800_v53, %v803_v40  ;;  %v822_v9 = vsel %vm816_vm8, %v809_v44, 920167782 }
 0x144   : > { %v823_v54 = vsel %vm815_vm9, %v806_v43, %v822_v9  ;;  %v825_v52 = vsel %vm813_vm7, %v803_v40, %v806_v43  ;;  %vm577_vm11 = vcmp.lt.s32.totalorder %v4076_v41, 0  ;;  %v654_v50 = vor.u32 4788187, %v653_v17 }
 0x145   : > { %v952_v30 = vclz %v3167_v10  ;;  %v817_v4 = vsel %vm813_vm7, %v797_v26, %v800_v53  ;;  %v824_v25 = vsel %vm814_vm10, %v821_v3, %v823_v54  ;;  %v826_v28 = vsel %vm816_vm8, %v812_v19, 1326507024 }
 0x146   : > { %v819_v7 = vsel %vm815_vm9, %v803_v40, %v818_v36  ;;  %v827_v62 = vsel %vm815_vm9, %v809_v44, %v826_v28  ;;  %v1093_v32 = vand.u32 2139095040, %v4245_v8  ;;  %v650_v33 = vor.u32 %v649_v46, %v648_v1 }
 0x147   : > { %v3168_v57 = vadd.s32 4294967294, %v952_v30  ;;  %v828_v27 = vsel %vm814_vm10, %v825_v52, %v827_v62  ;;  %v4281_v63 = vmul.u32.u64.low %v829_v58, %v824_v25  ;;  %v4282_v31 = vmul.u32.u64.high %v829_v58, %v824_v25, %v4281_v63 }
 0x148   : > { %v4285_v35 = vmul.u32.u64.low %v829_v58, %v828_v27  ;;  %v4286_v43 = vmul.u32.u64.high %v829_v58, %v828_v27, %v4285_v35  ;;  %v1094_v53 = vshrl.u32 %v1093_v32, 23  ;;  %v765_v47 = vsel %vm680_vm6, %v764_v0, %v4170_v55 }
 0x149   : > { %vm3169_vm12 = vcmp.lt.s32.totalorder %v3168_v57, 0  ;;  %v661_v40 = vsub.s32 4, %v4202_v14  ;;  %v820_v51 = vsel %vm814_vm10, %v817_v4, %v819_v7  ;;  %v762_v1 = vxor.u32 2147483648, %v761_v60  ;;  %v4325_v4 = vpop.f32.mrb[11].mxu0 }
 0x14a   : > { %v4292_v44 = vsel %vm3169_vm12, 0, %v3168_v57  ;;  %v655_v61 = vand.u32 2147483647, %v654_v50  ;;  %v3174_v17 = vadd.s32 4294967169, %v1094_v53  ;;  %vm4298_vm13 = vcmp.le.f32.partialorder %v678_v42, 0.7853982 }
 0x14b   : > { %v960_v46 = vsub.s32 4294967266, %v4292_v44  ;;  %v839_v10 = vadd.s32 1, %v4282_v31  ;;  %v5893_v55 = vand.u32 2147483647, %v4245_v8  ;;  %v990_v0 = vand.u32 2139095040, %v4252_v21 }
 0x14c   : > { %v657_v26 = vcvt.s32.f32 %v650_v33  ;;  %v836_v36 = vmul.u32 %v829_v58, %v820_v51  ;;  %vm838_vm14 = vc.u32 %v4286_v43, %v4281_v63  ;;  %v767_v3 = vsel %vm4298_vm13, 0, %v765_v47 }
 0x14d   : > { %v961_v48 = vadd.s32 127, %v960_v46  ;;  %vm4311_vm15 = vcmp.le.f32.partialorder %v575_v45, 0.7853982  ;;  %v840_v9 = vsel %vm838_vm14, %v839_v10, %v4282_v31  ;;  %v1100_v30 = vadd.s32 1, %v3174_v17  ;;  %v339_v45 = vpop.permute.xlu1 %338 }
 0x14e   : > { %v763_v54 = vsel %vm680_vm6, %v762_v1, %v761_v60  ;;  %v4318_v52 = vmul.f32 %v657_v26, %v655_v61  ;;  %v4323_v58 = vsel %vm577_vm11, %v661_v40, %v4202_v14  ;;  %v841_v50 = vadd.s32 %v840_v9, %v836_v36 }
 0x14f   : > { %v956_v25 = vsub.s32 32, %v4292_v44  ;;  %v1097_v28 = vand.u32 8388607, %v5893_v55  ;;  %vm1101_vm0 = vcmp.gt.s32.totalorder %v1100_v30, 0  ;;  %v991_v57 = vshrl.u32 %v990_v0, 23 }
 0x150   : > { %v962_v7 = vshll.u32 %v961_v48, 23  ;;  %v842_v60 = vadd.s32 536870912, %v841_v50  ;;  %v1102_v62 = vsel %vm1101_vm0, %v1100_v30, 0  ;;  %v4331_v32 = vadd.f32 %v4095_v2, %v339_v45 }
 0x151   : > { %v4333_v33 = vand.u32 3, %v767_v3  ;;  %v664_v14 = vsel %vm4311_vm15, 0, %v4323_v58  ;;  %v940_v27 = vadd.s32 %v4222_v24, %v4228_v34  ;;  %v1104_v31 = vand.u32 31, %v1102_v62 }
 0x152   : > { %5956 = vst [vmem:[#allocation12_spill] sm:$0xff] %v4331_v32  ;;  %v4343_v35 = vsel %vm4298_vm13, %v4074_v39, %v763_v54  ;;  %v659_v53 = vxor.u32 2147483648, %v4318_v52  ;;  %v970_v2 = vsub.s32 4, %v4247_v12  ;;  %v4347_v47 = vshrl.u32 %v842_v60, 30 }
 0x153   : > { %v958_v40 = vshrl.u32 %v940_v27, %v956_v25  ;;  %v1098_v51 = vor.u32 8388608, %v1097_v28  ;;  %v1105_v1 = vsub.s32 32, %v1104_v31  ;;  %v3170_v61 = vadd.s32 4294967169, %v991_v57 }
 0x154   : > { %v963_v46 = vor.u32 4788187, %v962_v7  ;;  %v844_v17 = vshll.u32 %v4347_v47, 30  ;;  %v1103_v24 = vshrl.u32 %v1102_v62, 5  ;;  %v1107_v34 = vshll.u32 %v5907_v11, %v1104_v31 }
 0x155   : > { %v1108_v19 = vshrl.u32 %v5904_v16, %v1105_v1  ;;  %v1110_v10 = vshll.u32 %v5904_v16, %v1104_v31  ;;  %v1111_v0 = vshrl.u32 %v5895_v18, %v1105_v1  ;;  %v1114_v26 = vshrl.u32 %v5902_v20, %v1105_v1 }
 0x156   : > { %v4355_v48 = vsub.s32 %v841_v50, %v844_v17  ;;  %v1113_v36 = vshll.u32 %v5895_v18, %v1104_v31  ;;  %v1116_v3 = vshll.u32 %v5902_v20, %v1104_v31  ;;  %v1117_v9 = vshrl.u32 %v5900_v22, %v1105_v1 }
 0x157   : > { %v957_v30 = vshll.u32 %v4266_v38, %v4292_v44  ;;  %v1109_v54 = vor.u32 %v1108_v19, %v1107_v34  ;;  %v4362_v45 = vshll.u32 %v1098_v51, 8  ;;  %v5894_v25 = vand.u32 2147483647, %v4252_v21 }
 0x158   : > { %v847_v28 = vsub.s32 0, %v4355_v48  ;;  %v1112_v57 = vor.u32 %v1111_v0, %v1110_v10  ;;  %v1115_v7 = vor.u32 %v1114_v26, %v1113_v36  ;;  %v1118_v50 = vor.u32 %v1117_v9, %v1116_v3 }
 0x159   : > { %v959_v60 = vor.u32 %v958_v40, %v957_v30  ;;  %v1119_v62 = vshll.u32 %v5900_v22, %v1104_v31  ;;  %v1120_v27 = vshrl.u32 %v5897_v29, %v1105_v1  ;;  %v997_v17 = vadd.s32 1, %v3170_v61 }
 0x15a   : > { %vm886_vm1 = vcmp.lt.s32.totalorder %v4082_v49, 0  ;;  %v964_v55 = vand.u32 2147483647, %v963_v46  ;;  %v3163_v38 = vmin.u32 %v847_v28, %v4355_v48  ;;  %v1106_v44 = vshrl.u32 %v5907_v11, %v1105_v1 }
 0x15b   : > { %vm1122_vm2 = vcmp.lt.s32.totalorder %v1103_v24, 1  ;;  %v1121_v51 = vor.u32 %v1120_v27, %v1119_v62  ;;  %vm1123_vm3 = vcmp.lt.s32.totalorder %v1103_v24, 2  ;;  %vm1124_vm4 = vcmp.lt.s32.totalorder %v1103_v24, 3 }
 0x15c   : > { %vm1125_vm5 = vcmp.lt.s32.totalorder %v1103_v24, 4  ;;  %v849_v34 = vclz %v3163_v38  ;;  %v1130_v40 = vsel %vm1122_vm2, %v1109_v54, %v1112_v57  ;;  %v1126_v31 = vsel %vm1122_vm2, %v1106_v44, %v1109_v54 }
 0x15d   : > { %v1127_v19 = vsel %vm1125_vm5, %v1115_v7, 2102212464  ;;  %v1131_v10 = vsel %vm1125_vm5, %v1118_v50, 920167782  ;;  %v1134_v26 = vsel %vm1122_vm2, %v1112_v57, %v1115_v7  ;;  %v1135_v61 = vsel %vm1125_vm5, %v1121_v51, 1326507024 }
 0x15e   : > { %v1132_v0 = vsel %vm1124_vm4, %v1115_v7, %v1131_v10  ;;  %v3164_v36 = vadd.s32 4294967294, %v849_v34  ;;  %v1128_v3 = vsel %vm1124_vm4, %v1112_v57, %v1127_v19  ;;  %v1136_v9 = vsel %vm1124_vm4, %v1118_v50, %v1135_v61  ;;  %v4395_v34 = vpop.f32.mrb[12].mxu0 }
 0x15f   : > { %v1133_v46 = vsel %vm1123_vm3, %v1130_v40, %v1132_v0  ;;  %v966_v30 = vcvt.s32.f32 %v959_v60  ;;  %v1137_v1 = vsel %vm1123_vm3, %v1134_v26, %v1136_v9  ;;  %vm998_vm7 = vcmp.gt.s32.totalorder %v997_v17, 0 }
 0x160   : > { %v4374_v28 = vmul.u32.u64.low %v4362_v45, %v1133_v46  ;;  %v4375_v62 = vmul.u32.u64.high %v4362_v45, %v1133_v46, %v4374_v28  ;;  %vm3165_vm6 = vcmp.lt.s32.totalorder %v3164_v36, 0  ;;  %v1129_v57 = vsel %vm1123_vm3, %v1126_v31, %v1128_v3 }
 0x161   : > { %v4379_v27 = vmul.u32.u64.low %v4362_v45, %v1137_v1  ;;  %v4380_v54 = vmul.u32.u64.high %v4362_v45, %v1137_v1, %v4379_v27  ;;  %v4382_v7 = vsel %vm3165_vm6, 0, %v3164_v36  ;;  %v994_v50 = vand.u32 8388607, %v5894_v25 }
 0x162   : > { %v999_v60 = vsel %vm998_vm7, %v997_v17, 0  ;;  %3666 = vcosq.f32 %v4343_v35  ;;  %v4392_v38 = vand.u32 3, %v664_v14  ;;  %v967_v44 = vmul.f32 %v966_v30, %v964_v55 }
 0x163   : > { %v857_v51 = vsub.s32 4294967266, %v4382_v7  ;;  %v4402_v24 = vsel %vm886_vm1, %v970_v2, %v4247_v12  ;;  %vm783_vm8 = vcmp.lt.s32.totalorder %v4179_v5, 0  ;;  %v1148_v17 = vadd.s32 1, %v4375_v62 }
 0x164   : > { %v1001_v19 = vand.u32 31, %v999_v60  ;;  %v1299_v58 = vand.u32 2139095040, %v4331_v32  ;;  %v4412_v55 = vsel %vm577_vm11, %v659_v53, %v4318_v52  ;;  %v837_v14 = vadd.s32 %v4281_v63, %v4286_v43 }
 0x165   : > { %v1145_v12 = vmul.u32 %v4362_v45, %v1129_v57  ;;  %vm1147_vm9 = vc.u32 %v4380_v54, %v4374_v28  ;;  %v995_v40 = vor.u32 8388608, %v994_v50  ;;  %v5899_v31 = vand.u32 2147483647, %v4331_v32 }
 0x166   : > { %v1149_v2 = vsel %vm1147_vm9, %v1148_v17, %v4375_v62  ;;  %v1002_v10 = vsub.s32 32, %v1001_v19  ;;  %v968_v0 = vxor.u32 2147483648, %v967_v44  ;;  %v858_v26 = vadd.s32 127, %v857_v51 }
 0x167   : > { %v867_v61 = vsub.s32 4, %v4347_v47  ;;  %v1150_v52 = vadd.s32 %v1149_v2, %v1145_v12  ;;  %v1300_v45 = vshrl.u32 %v1299_v58, 23  ;;  %v853_v36 = vsub.s32 32, %v4382_v7 }
 0x168   : > { %v1005_v53 = vshrl.u32 %v5904_v16, %v1002_v10  ;;  %v1008_v63 = vshrl.u32 %v5895_v18, %v1002_v10  ;;  %v1011_v43 = vshrl.u32 %v5902_v20, %v1002_v10  ;;  %v1000_v46 = vshrl.u32 %v999_v60, 5 }
 0x169   : > { %v1151_v3 = vadd.s32 536870912, %v1150_v52  ;;  %v1004_v9 = vshll.u32 %v5907_v11, %v1001_v19  ;;  %v1007_v30 = vshll.u32 %v5904_v16, %v1001_v19  ;;  %v1010_v1 = vshll.u32 %v5895_v18, %v1001_v19 }
 0x16a   : > { %v1013_v62 = vshll.u32 %v5902_v20, %v1001_v19  ;;  %v1014_v27 = vshrl.u32 %v5900_v22, %v1002_v10  ;;  %v859_v57 = vshll.u32 %v858_v26, 23  ;;  %v1016_v51 = vshll.u32 %v5900_v22, %v1001_v19 }
 0x16b   : > { %v4431_v50 = vshrl.u32 %v1151_v3, 30  ;;  %v1017_v17 = vshrl.u32 %v5897_v29, %v1002_v10  ;;  %v1006_v58 = vor.u32 %v1005_v53, %v1004_v9  ;;  %v1009_v12 = vor.u32 %v1008_v63, %v1007_v30 }
 0x16c   : > { %v1012_v60 = vor.u32 %v1011_v43, %v1010_v1  ;;  %v1015_v2 = vor.u32 %v1014_v27, %v1013_v62  ;;  %v4435_v25 = vpop.eup %3666  ;;  %vm4439_vm10 = vcmp.le.f32.partialorder %v884_v59, 0.7853982  ;;  %vm4445_vm11 = vcmp.le.f32.partialorder %v781_v37, 0.7853982 }
 0x16d   : > { %5957 = vst [vmem:[#allocation13_spill] sm:$0xff] %v4435_v25  ;;  %v855_v19 = vshrl.u32 %v837_v14, %v853_v36  ;;  %v868_v53 = vsel %vm783_vm8, %v867_v61, %v4347_v47  ;;  %v1153_v63 = vshll.u32 %v4431_v50, 30  ;;  %v1018_v43 = vor.u32 %v1017_v17, %v1016_v51 }
 0x16e   : > { %v969_v59 = vsel %vm886_vm1, %v968_v0, %v967_v44  ;;  %v854_v3 = vshll.u32 %v4355_v48, %v4382_v7  ;;  %v1035_v9 = vshll.u32 %v995_v40, 8  ;;  %v3182_v30 = vadd.s32 4294967169, %v1300_v45 }
 0x16f   : > { %v860_v37 = vor.u32 4788187, %v859_v57  ;;  %v4457_v1 = vsub.s32 %v1150_v52, %v1153_v63  ;;  %vm1019_vm12 = vcmp.lt.s32.totalorder %v1000_v46, 1  ;;  %vm1022_vm13 = vcmp.lt.s32.totalorder %v1000_v46, 4 }
 0x170   : > { %v1027_v14 = vsel %vm1019_vm12, %v1006_v58, %v1009_v12  ;;  %v1028_v36 = vsel %vm1022_vm13, %v1015_v2, 920167782  ;;  %v1031_v47 = vsel %vm1019_vm12, %v1009_v12, %v1012_v60  ;;  %v1032_v61 = vsel %vm1022_vm13, %v1018_v43, 1326507024 }
 0x171   : > { %v856_v62 = vor.u32 %v855_v19, %v854_v3  ;;  %v1156_v27 = vsub.s32 0, %v4457_v1  ;;  %vm1021_vm14 = vcmp.lt.s32.totalorder %v1000_v46, 3  ;;  %v1024_v44 = vsel %vm1022_vm13, %v1012_v60, 2102212464 }
 0x172   : > { %v1003_v48 = vshrl.u32 %v5907_v11, %v1002_v10  ;;  %vm1020_vm0 = vcmp.lt.s32.totalorder %v1000_v46, 2  ;;  %v1029_v7 = vsel %vm1021_vm14, %v1012_v60, %v1028_v36  ;;  %v1033_v40 = vsel %vm1021_vm14, %v1015_v2, %v1032_v61 }
 0x173   : > { %v861_v0 = vand.u32 2147483647, %v860_v37  ;;  %v3175_v52 = vmin.u32 %v1156_v27, %v4457_v1  ;;  %v1030_v45 = vsel %vm1020_vm0, %v1027_v14, %v1029_v7  ;;  %v1034_v57 = vsel %vm1020_vm0, %v1031_v47, %v1033_v40  ;;  %v334_v27 = vpop.permute.xlu0 %333 }
 0x174   : > { %v1023_v51 = vsel %vm1019_vm12, %v1003_v48, %v1006_v58  ;;  %v1025_v17 = vsel %vm1021_vm14, %v1009_v12, %v1024_v44  ;;  %v4467_v19 = vmul.u32.u64.low %v1035_v9, %v1034_v57  ;;  %v4468_v63 = vmul.u32.u64.high %v1035_v9, %v1034_v57, %v4467_v19 }
 0x175   : > { %v1158_v43 = vclz %v3175_v52  ;;  %v4470_v3 = vmul.u32.u64.low %v1035_v9, %v1030_v45  ;;  %v4471_v29 = vmul.u32.u64.high %v1035_v9, %v1030_v45, %v4470_v3  ;;  %v1306_v10 = vadd.s32 1, %v3182_v30 }
 0x176   : > { %3668 = vsinq.f32 %v4343_v35  ;;  %v663_v60 = vsel %vm4311_vm15, %v4076_v41, %v4412_v55  ;;  %v973_v58 = vsel %vm4439_vm10, 0, %v4402_v24  ;;  %v870_v12 = vsel %vm4445_vm11, 0, %v868_v53 }
 0x177   : > { %v863_v2 = vcvt.s32.f32 %v856_v62  ;;  %v3176_v37 = vadd.s32 4294967294, %v1158_v43  ;;  %v1026_v14 = vsel %vm1020_vm0, %v1023_v51, %v1025_v17  ;;  %vm1307_vm1 = vcmp.gt.s32.totalorder %v1306_v10, 0  ;;  %v4506_v62 = vpop.f32.mrb[13].mxu0 }
 0x178   : > { %v4488_v35 = vsel %vm4439_vm10, %v4082_v49, %v969_v59  ;;  %vm1044_vm15 = vc.u32 %v4468_v63, %v4470_v3  ;;  %v1303_v42 = vand.u32 8388607, %v5899_v31  ;;  %v1308_v24 = vsel %vm1307_vm1, %v1306_v10, 0 }
 0x179   : > { %v4494_v55 = vmul.f32 %v863_v2, %v861_v0  ;;  %vm3177_vm2 = vcmp.lt.s32.totalorder %v3176_v37, 0  ;;  %v1045_v53 = vadd.s32 1, %v4471_v29  ;;  %v1310_v46 = vand.u32 31, %v1308_v24 }
 0x17a   : > { %3670 = vcosq.f32 %v663_v60  ;;  %v4497_v30 = vand.u32 3, %v973_v58  ;;  %vm1092_vm3 = vcmp.lt.s32.totalorder %v4245_v8, 0  ;;  %v4500_v18 = vsel %vm3177_vm2, 0, %v3176_v37 }
 0x17b   : > { %v1042_v59 = vmul.u32 %v1035_v9, %v1026_v14  ;;  %3672 = vsinq.f32 %v663_v60  ;;  %v4502_v36 = vand.u32 3, %v870_v12  ;;  %v1166_v47 = vsub.s32 4294967266, %v4500_v18 }
 0x17c   : > { %5962 = vst [vmem:[#allocation14_spill] sm:$0xff] %v4497_v30  ;;  %v1046_v61 = vsel %vm1044_vm15, %v1045_v53, %v4471_v29  ;;  %3674 = vcosq.f32 %v4488_v35  ;;  %v1146_v44 = vadd.s32 %v4374_v28, %v4380_v54  ;;  %v1311_v7 = vsub.s32 32, %v1310_v46 }
 0x17d   : > { %5963 = vst [vmem:[#allocation15_spill] sm:$0xff] %v4502_v36  ;;  %v1047_v48 = vadd.s32 %v1046_v61, %v1042_v59  ;;  %v865_v40 = vxor.u32 2147483648, %v4494_v55  ;;  %v1176_v9 = vsub.s32 4, %v4431_v50  ;;  %v1304_v0 = vor.u32 8388608, %v1303_v42 }
 0x17e   : > { %v4514_v52 = vadd.f32 %v4097_v6, %v334_v27  ;;  %v1313_v29 = vshll.u32 %v5907_v11, %v1310_v46  ;;  %v1314_v57 = vshrl.u32 %v5904_v16, %v1311_v7  ;;  %v5964_v51 = vmov 2131351028  }
 0x17f   : > { %v1048_v45 = vadd.s32 536870912, %v1047_v48  ;;  %v1317_v17 = vshrl.u32 %v5964_v51, %v1311_v7  ;;  %v1167_v19 = vadd.s32 127, %v1166_v47  ;;  %v1316_v28 = vshll.u32 %v5904_v16, %v1310_v46 }
 0x180   : > { %v1320_v54 = vshrl.u32 %v5902_v20, %v1311_v7  ;;  %v1323_v43 = vshrl.u32 %v5900_v22, %v1311_v7  ;;  %v4522_v10 = vpop.eup %3668  ;;  %v1309_v6 = vshrl.u32 %v1308_v24, 5  ;;  %v1319_v58 = vshll.u32 %v5964_v51, %v1310_v46 }
 0x181   : > { %v4524_v60 = vshrl.u32 %v1048_v45, 30  ;;  %v1322_v12 = vshll.u32 %v5902_v20, %v1310_v46  ;;  %v1162_v2 = vsub.s32 32, %v4500_v18  ;;  %v1315_v37 = vor.u32 %v1314_v57, %v1313_v29 }
 0x182   : > { %v1318_v14 = vor.u32 %v1317_v17, %v1316_v28  ;;  %v1325_v42 = vshll.u32 %v5900_v22, %v1310_v46  ;;  %v1321_v59 = vor.u32 %v1320_v54, %v1319_v58  ;;  %v5965_v61 = vmov 1326507024  }
 0x183   : > { %v1050_v53 = vshll.u32 %v4524_v60, 30  ;;  %v1324_v47 = vor.u32 %v1323_v43, %v1322_v12  ;;  %v1326_v27 = vshrl.u32 %v5965_v61, %v1311_v7  ;;  %v5966_v45 = vand.u32 2147483647, %v4245_v8 }
 0x184   : > { %v1168_v31 = vshll.u32 %v1167_v19, 23  ;;  %v1177_v29 = vsel %vm1092_vm3, %v1176_v9, %v4431_v50  ;;  %v4541_v57 = vshll.u32 %v1304_v0, 8  ;;  %v1196_v46 = vand.u32 2139095040, %v4514_v52  ;;  %v4544_v17 = vpop.eup %3670 }
 0x185   : > { %vm4534_vm4 = vcmp.le.f32.partialorder %v5966_v45, 0.7853982  ;;  %v1163_v28 = vshll.u32 %v4457_v1, %v4500_v18  ;;  %v4548_v54 = vsub.s32 %v1047_v48, %v1050_v53  ;;  %v1327_v43 = vor.u32 %v1326_v27, %v1325_v42  ;;  %v4550_v58 = vpop.eup %3672 }
 0x186   : > { %vm1328_vm5 = vcmp.lt.s32.totalorder %v1309_v6, 1  ;;  %v1164_v19 = vshrl.u32 %v1146_v44, %v1162_v2  ;;  %v1312_v12 = vshrl.u32 %v5907_v11, %v1311_v7  ;;  %vm1331_vm6 = vcmp.lt.s32.totalorder %v1309_v6, 4  ;;  %v4554_v9 = vpop.eup %3674 }
 0x187   : > { %v1336_v50 = vsel %vm1328_vm5, %v1315_v37, %v1318_v14  ;;  %5969 = vst [vmem:[#allocation16_spill] sm:$0xff] %v4554_v9  ;;  %v1053_v0 = vsub.s32 0, %v4548_v54  ;;  %vm1330_vm7 = vcmp.lt.s32.totalorder %v1309_v6, 3  ;;  %v1333_v45 = vsel %vm1331_vm6, %v1321_v59, 2102212464 }
 0x188   : > { %v1337_v22 = vsel %vm1331_vm6, %v1324_v47, 920167782  ;;  %v1169_v1 = vor.u32 4788187, %v1168_v31  ;;  %vm1329_vm9 = vcmp.lt.s32.totalorder %v1309_v6, 2  ;;  %v1340_v48 = vsel %vm1328_vm5, %v1318_v14, %v1321_v59 }
 0x189   : > { %v1338_v18 = vsel %vm1330_vm7, %v1321_v59, %v1337_v22  ;;  %vm989_vm10 = vcmp.lt.s32.totalorder %v4252_v21, 0  ;;  %v3171_v44 = vmin.u32 %v1053_v0, %v4548_v54  ;;  %v1332_v7 = vsel %vm1328_vm5, %v1312_v12, %v1315_v37 }
 0x18a   : > { %v1339_v2 = vsel %vm1329_vm9, %v1336_v50, %v1338_v18  ;;  %v1341_v42 = vsel %vm1331_vm6, %v1327_v43, 1326507024  ;;  %v1334_v53 = vsel %vm1330_vm7, %v1318_v14, %v1333_v45  ;;  %v866_v22 = vsel %vm783_vm8, %v865_v40, %v4494_v55  ;;  %v344_v45 = vpop.permute.xlu0 %343 }
 0x18b   : > { %v1342_v27 = vsel %vm1330_vm7, %v1324_v47, %v1341_v42  ;;  %v4563_v20 = vmul.u32.u64.low %v4541_v57, %v1339_v2  ;;  %v4564_v16 = vmul.u32.u64.high %v4541_v57, %v1339_v2, %v4563_v20  ;;  %v1055_v31 = vclz %v3171_v44 }
 0x18c   : > { %v1343_v59 = vsel %vm1329_vm9, %v1340_v48, %v1342_v27  ;;  %v1197_v0 = vshrl.u32 %v1196_v46, 23  ;;  %3676 = vsinq.f32 %v4488_v35  ;;  %v1165_v37 = vor.u32 %v1164_v19, %v1163_v28  ;;  %v349_v35 = vpop.permute.xlu1 %348 }
 0x18d   : > { %v5970_v43 = vand.u32 2147483647, %v4252_v21  ;;  %v4579_v47 = vmul.u32.u64.low %v4541_v57, %v1343_v59  ;;  %v4580_v12 = vmul.u32.u64.high %v4541_v57, %v1343_v59, %v4579_v47  ;;  %v1179_v55 = vsel %vm4534_vm4, 0, %v1177_v29 }
 0x18e   : > { %v3172_v40 = vadd.s32 4294967294, %v1055_v31  ;;  %v1335_v50 = vsel %vm1329_vm9, %v1332_v7, %v1334_v53  ;;  %v3178_v46 = vadd.s32 4294967169, %v1197_v0  ;;  %v869_v28 = vsel %vm4445_vm11, %v4179_v5, %v866_v22 }
 0x18f   : > { %vm4574_vm12 = vcmp.le.f32.partialorder %v5970_v43, 0.7853982  ;;  %v1170_v19 = vand.u32 2147483647, %v1169_v1  ;;  %v1073_v18 = vsub.s32 4, %v4524_v60  ;;  %v1354_v48 = vadd.s32 1, %v4564_v16 }
 0x190   : > { %vm3173_vm8 = vcmp.lt.s32.totalorder %v3172_v40, 0  ;;  %v5906_v44 = vand.u32 2147483647, %v4514_v52  ;;  %v1203_v2 = vadd.s32 1, %v3178_v46  ;;  %v4592_v29 = vadd.f32 %v4124_v56, %v349_v35  ;;  %v359_v43 = vpop.permute.xlu1 %358  ;;  %v4625_v35 = vpop.f32.mrb[14].mxu0 }
 0x191   : > { %v1172_v6 = vcvt.s32.f32 %v1165_v37  ;;  %v4594_v7 = vsel %vm3173_vm8, 0, %v3172_v40  ;;  %v1351_v42 = vmul.u32 %v4541_v57, %v1335_v50  ;;  %vm1353_vm11 = vc.u32 %v4580_v12, %v4563_v20  ;;  %v354_v37 = vpop.permute.xlu0 %353 }
 0x192   : > { %5973 = vst [vmem:[#allocation17_spill] sm:$0xff] %v4592_v29  ;;  %3678 = vcosq.f32 %v869_v28  ;;  %v4599_v26 = vand.u32 3, %v1179_v55  ;;  %v1063_v1 = vsub.s32 4294967266, %v4594_v7  ;;  %v1355_v53 = vsel %vm1353_vm11, %v1354_v48, %v4564_v16 }
 0x193   : > { %v1173_v27 = vmul.f32 %v1172_v6, %v1170_v19  ;;  %v4606_v56 = vsel %vm989_vm10, %v1073_v18, %v4524_v60  ;;  %v1356_v22 = vadd.s32 %v1355_v53, %v1351_v42  ;;  %vm1204_vm13 = vcmp.gt.s32.totalorder %v1203_v2, 0 }
 0x194   : > { %5974 = vst [vmem:[#allocation18_spill] sm:$0xff] %v4599_v26  ;;  %v1064_v31 = vadd.s32 127, %v1063_v1  ;;  %v1200_v57 = vand.u32 8388607, %v5906_v44  ;;  %v1205_v59 = vsel %vm1204_vm13, %v1203_v2, 0  ;;  %v1505_v0 = vand.u32 2139095040, %v4592_v29 }
 0x195   : > { %3680 = vsinq.f32 %v869_v28  ;;  %v1357_v47 = vadd.s32 536870912, %v1356_v22  ;;  %v1207_v16 = vand.u32 31, %v1205_v59  ;;  %v4612_v55 = vadd.f32 %v4184_v15, %v344_v45 }
 0x196   : > { %v1043_v60 = vadd.s32 %v4470_v3, %v4468_v63  ;;  %v4620_v50 = vadd.f32 %v4254_v23, %v359_v43  ;;  %v4623_v46 = vadd.f32 %v4325_v4, %v354_v37  ;;  %v4627_v28 = vpop.eup %3676  ;;  %v1174_v19 = vxor.u32 2147483648, %v1173_v27 }
 0x197   : > { %5976 = vst [vmem:[#allocation20_spill] sm:$0xff] %v4627_v28  ;;  %v4629_v15 = vshrl.u32 %v1357_v47, 30  ;;  %v1208_v45 = vsub.s32 32, %v1207_v16  ;;  %v1059_v3 = vsub.s32 32, %v4594_v7  ;;  %v1065_v18 = vshll.u32 %v1064_v31, 23 }
 0x198   : > { %5975 = vst [vmem:[#allocation19_spill] sm:$0xff] %v4620_v50  ;;  %v1201_v48 = vor.u32 8388608, %v1200_v57  ;;  %v1506_v2 = vshrl.u32 %v1505_v0, 23  ;;  %v1210_v4 = vshll.u32 %v5907_v11, %v1207_v16  ;;  %v5977_v6 = vmov 2475754826  }
 0x199   : > { %v1359_v23 = vshll.u32 %v4629_v15, 30  ;;  %v1211_v42 = vshrl.u32 %v5977_v6, %v1208_v45  ;;  %v1213_v1 = vshll.u32 %v5977_v6, %v1207_v16  ;;  %v1214_v53 = vshrl.u32 %v5964_v51, %v1208_v45 }
 0x19a   : > { %v1216_v37 = vshll.u32 %v5964_v51, %v1207_v16  ;;  %v5978_v43 = vmov 2102212464   ;;  %v5979_v40 = vmov 920167782   ;;  %v1175_v31 = vsel %vm1092_vm3, %v1174_v19, %v1173_v27 }
 0x19b   : > { %v1217_v47 = vshrl.u32 %v5978_v43, %v1208_v45  ;;  %v1220_v44 = vshrl.u32 %v5979_v40, %v1208_v45  ;;  %v4643_v57 = vsub.s32 %v1356_v22, %v1359_v23  ;;  %v1206_v0 = vshrl.u32 %v1205_v59, 5 }
 0x19c   : > { %v1219_v11 = vshll.u32 %v5978_v43, %v1207_v16  ;;  %v4646_v63 = vpop.eup %3678  ;;  %v1212_v13 = vor.u32 %v1211_v42, %v1210_v4  ;;  %v1215_v26 = vor.u32 %v1214_v53, %v1213_v1  ;;  %v5981_v9 = vand.u32 2147483647, %v4592_v29 }
 0x19d   : > { %5980 = vst [vmem:[#allocation21_spill] sm:$0xff] %v4646_v63  ;;  %v1218_v49 = vor.u32 %v1217_v47, %v1216_v37  ;;  %v1362_v30 = vsub.s32 0, %v4643_v57  ;;  %v1222_v5 = vshll.u32 %v5979_v40, %v1207_v16  ;;  %v1223_v27 = vshrl.u32 %v5965_v61, %v1208_v45 }
 0x19e   : > { %v1509_v28 = vand.u32 8388607, %v5981_v9  ;;  %v1221_v36 = vor.u32 %v1220_v44, %v1219_v11  ;;  %v1061_v22 = vshrl.u32 %v1043_v60, %v1059_v3  ;;  %v1066_v19 = vor.u32 4788187, %v1065_v18 }
 0x19f   : > { %v1241_v59 = vshll.u32 %v1201_v48, 8  ;;  %v3190_v23 = vadd.s32 4294967169, %v1506_v2  ;;  %v4653_v25 = vpop.eup %3680  ;;  %v3183_v4 = vmin.u32 %v1362_v30, %v4643_v57  ;;  %v1224_v42 = vor.u32 %v1223_v27, %v1222_v5 }
 0x1a0   : > { %5982 = vst [vmem:[#allocation22_spill] sm:$0xff] %v4653_v25  ;;  %vm1225_vm14 = vcmp.lt.s32.totalorder %v1206_v0, 1  ;;  %vm1228_vm0 = vcmp.lt.s32.totalorder %v1206_v0, 4  ;;  %vm1227_vm1 = vcmp.lt.s32.totalorder %v1206_v0, 3  ;;  %v5983_v16 = vmov 683565275  }
 0x1a1   : > { %v1230_v9 = vsel %vm1228_vm0, %v1218_v49, 2102212464  ;;  %v1233_v1 = vsel %vm1225_vm14, %v1212_v13, %v1215_v26  ;;  %v1234_v11 = vsel %vm1228_vm0, %v1221_v36, 920167782  ;;  %v1364_v44 = vclz %v3183_v4 }
 0x1a2   : > { %v1209_v53 = vshrl.u32 %v5983_v16, %v1208_v45  ;;  %vm1226_vm15 = vcmp.lt.s32.totalorder %v1206_v0, 2  ;;  %v1235_v60 = vsel %vm1227_vm1, %v1218_v49, %v1234_v11  ;;  %v1060_v3 = vshll.u32 %v4548_v54, %v4594_v7 }
 0x1a3   : > { %v1236_v30 = vsel %vm1226_vm15, %v1233_v1, %v1235_v60  ;;  %v1237_v5 = vsel %vm1225_vm14, %v1215_v26, %v1218_v49  ;;  %v1510_v18 = vor.u32 8388608, %v1509_v28  ;;  %v3184_v48 = vadd.s32 4294967294, %v1364_v44 }
 0x1a4   : > { %v1229_v2 = vsel %vm1225_vm14, %v1209_v53, %v1212_v13  ;;  %v1231_v37 = vsel %vm1227_vm1, %v1215_v26, %v1230_v9  ;;  %v1238_v47 = vsel %vm1228_vm0, %v1224_v42, 1326507024  ;;  %v1512_v11 = vadd.s32 1, %v3190_v23  ;;  %v4675_v9 = vpop.f32.mrb[15].mxu0 }
 0x1a5   : > { %v1239_v27 = vsel %vm1227_vm1, %v1221_v36, %v1238_v47  ;;  %v4666_v4 = vmul.u32.u64.low %v1241_v59, %v1236_v30  ;;  %v4667_v45 = vmul.u32.u64.high %v1241_v59, %v1236_v30, %v4666_v4  ;;  %v1062_v63 = vor.u32 %v1061_v22, %v1060_v3 }
 0x1a6   : > { %v1067_v25 = vand.u32 2147483647, %v1066_v19  ;;  %vm3185_vm2 = vcmp.lt.s32.totalorder %v3184_v48, 0  ;;  %v1240_v54 = vsel %vm1226_vm15, %v1237_v5, %v1239_v27  ;;  %vm1513_vm3 = vcmp.gt.s32.totalorder %v1512_v11, 0 }
 0x1a7   : > { %v1367_v49 = vsel %vm3185_vm2, 0, %v3184_v48  ;;  %v4671_v7 = vmul.u32.u64.low %v1241_v59, %v1240_v54  ;;  %v4672_v28 = vmul.u32.u64.high %v1241_v59, %v1240_v54, %v4671_v7  ;;  %v1232_v42 = vsel %vm1226_vm15, %v1229_v2, %v1231_v37 }
 0x1a8   : > { %v1368_v13 = vsub.s32 32, %v1367_v49  ;;  %v1372_v26 = vsub.s32 4294967266, %v1367_v49  ;;  %v1514_v36 = vsel %vm1513_vm3, %v1512_v11, 0  ;;  %v4680_v22 = vsel %vm4534_vm4, %v4245_v8, %v1175_v31 }
 0x1a9   : > { %v1352_v19 = vadd.s32 %v4563_v20, %v4580_v12  ;;  %v1251_v23 = vadd.s32 1, %v4667_v45  ;;  %v1516_v1 = vand.u32 31, %v1514_v36  ;;  %v1069_v44 = vcvt.s32.f32 %v1062_v63 }
 0x1aa   : > { %v1373_v53 = vadd.s32 127, %v1372_v26  ;;  %v4685_v60 = vshll.u32 %v1510_v18, 8  ;;  %v5921_v0 = vand.u32 2147483647, %v4612_v55  ;;  %v1248_v30 = vmul.u32 %v1241_v59, %v1232_v42 }
 0x1ab   : > { %v1370_v3 = vshrl.u32 %v1352_v19, %v1368_v13  ;;  %vm1250_vm5 = vc.u32 %v4672_v28, %v4666_v4  ;;  %v1517_v24 = vsub.s32 32, %v1516_v1  ;;  %v1070_v31 = vmul.f32 %v1069_v44, %v1067_v25 }
 0x1ac   : > { %v1374_v5 = vshll.u32 %v1373_v53, 23  ;;  %v1382_v48 = vsub.s32 4, %v4629_v15  ;;  %v1252_v20 = vsel %vm1250_vm5, %v1251_v23, %v4667_v45  ;;  %v1369_v12 = vshll.u32 %v4643_v57, %v1367_v49 }
 0x1ad   : > { %v1253_v63 = vadd.s32 %v1252_v20, %v1248_v30  ;;  %v1520_v18 = vshrl.u32 %v5977_v6, %v1517_v24  ;;  %v1523_v2 = vshrl.u32 %v5964_v51, %v1517_v24  ;;  %vm1298_vm4 = vcmp.lt.s32.totalorder %v4331_v32, 0 }
 0x1ae   : > { %v1375_v59 = vor.u32 4788187, %v1374_v5  ;;  %v1519_v37 = vshll.u32 %v5983_v16, %v1516_v1  ;;  %v1522_v47 = vshll.u32 %v5977_v6, %v1516_v1  ;;  %v1526_v25 = vshrl.u32 %v5978_v43, %v1517_v24 }
 0x1af   : > { %v1371_v27 = vor.u32 %v1370_v3, %v1369_v12  ;;  %v1254_v11 = vadd.s32 536870912, %v1253_v63  ;;  %v1515_v54 = vshrl.u32 %v1514_v36, 5  ;;  %v1525_v45 = vshll.u32 %v5964_v51, %v1516_v1 }
 0x1b0   : > { %v1521_v57 = vor.u32 %v1520_v18, %v1519_v37  ;;  %v1524_v49 = vor.u32 %v1523_v2, %v1522_v47  ;;  %v1528_v7 = vshll.u32 %v5978_v43, %v1516_v1  ;;  %v1529_v13 = vshrl.u32 %v5979_v40, %v1517_v24 }
 0x1b1   : > { %v1071_v26 = vxor.u32 2147483648, %v1070_v31  ;;  %v1255_v42 = vshrl.u32 %v1254_v11, 30  ;;  %v1527_v19 = vor.u32 %v1526_v25, %v1525_v45  ;;  %v1532_v23 = vshrl.u32 %v5965_v61, %v1517_v24 }
 0x1b2   : > { %v1376_v44 = vand.u32 2147483647, %v1375_v59  ;;  %v1530_v53 = vor.u32 %v1529_v13, %v1528_v7  ;;  %v1531_v30 = vshll.u32 %v5979_v40, %v1516_v1  ;;  %v1402_v3 = vand.u32 2139095040, %v4612_v55 }
 0x1b3   : > { %v1378_v36 = vcvt.s32.f32 %v1371_v27  ;;  %v1256_v5 = vshll.u32 %v1255_v42, 30  ;;  %vm1534_vm6 = vcmp.lt.s32.totalorder %v1515_v54, 1  ;;  %vm1537_vm7 = vcmp.lt.s32.totalorder %v1515_v54, 4 }
 0x1b4   : > { %v5984_v20 = vand.u32 2147483647, %v4331_v32  ;;  %v1533_v18 = vor.u32 %v1532_v23, %v1531_v30  ;;  %vm1536_vm8 = vcmp.lt.s32.totalorder %v1515_v54, 3  ;;  %v1542_v2 = vsel %vm1534_vm6, %v1521_v57, %v1524_v49 }
 0x1b5   : > { %v1543_v59 = vsel %vm1537_vm7, %v1530_v53, 920167782  ;;  %v1072_v1 = vsel %vm989_vm10, %v1071_v26, %v1070_v31  ;;  %vm1195_vm11 = vcmp.lt.s32.totalorder %v4514_v52, 0  ;;  %v4716_v37 = vsub.s32 %v1253_v63, %v1256_v5 }
 0x1b6   : > { %vm4707_vm9 = vcmp.le.f32.partialorder %v5984_v20, 0.7853982  ;;  %vm1535_vm13 = vcmp.lt.s32.totalorder %v1515_v54, 2  ;;  %v1544_v47 = vsel %vm1536_vm8, %v1527_v19, %v1543_v59  ;;  %v1379_v25 = vmul.f32 %v1378_v36, %v1376_v44 }
 0x1b7   : > { %v1539_v27 = vsel %vm1537_vm7, %v1527_v19, 2102212464  ;;  %v1545_v11 = vsel %vm1535_vm13, %v1542_v2, %v1544_v47  ;;  %v1403_v45 = vshrl.u32 %v1402_v3, 23  ;;  %v4724_v7 = vsel %vm1298_vm4, %v1382_v48, %v4629_v15 }
 0x1b8   : > { %v1259_v31 = vsub.s32 0, %v4716_v37  ;;  %v1518_v13 = vshrl.u32 %v5983_v16, %v1517_v24  ;;  %v1546_v63 = vsel %vm1534_vm6, %v1524_v49, %v1527_v19  ;;  %v1075_v26 = vsel %vm4574_vm12, %v4252_v21, %v1072_v1 }
 0x1b9   : > { %v1547_v23 = vsel %vm1537_vm7, %v1533_v18, 1326507024  ;;  %v4734_v44 = vmul.u32.u64.low %v4685_v60, %v1545_v11  ;;  %v4735_v30 = vmul.u32.u64.high %v4685_v60, %v1545_v11, %v4734_v44  ;;  %v5987_v15 = vand.u32 2147483647, %v4514_v52 }
 0x1ba   : > { %v3179_v24 = vmin.u32 %v1259_v31, %v4716_v37  ;;  %v1538_v19 = vsel %vm1534_vm6, %v1518_v13, %v1521_v57  ;;  %v1540_v3 = vsel %vm1536_vm8, %v1524_v49, %v1539_v27  ;;  %v1548_v36 = vsel %vm1536_vm8, %v1530_v53, %v1547_v23 }
 0x1bb   : > { %vm4740_vm10 = vcmp.le.f32.partialorder %v5987_v15, 0.7853982  ;;  %v1380_v5 = vxor.u32 2147483648, %v1379_v25  ;;  %v1279_v20 = vsub.s32 4, %v1255_v42  ;;  %v1549_v18 = vsel %vm1535_vm13, %v1546_v63, %v1548_v36 }
 0x1bc   : > { %v3186_v2 = vadd.s32 4294967169, %v1403_v45  ;;  %3682 = vcosq.f32 %v4680_v22  ;;  %v1261_v59 = vclz %v3179_v24  ;;  %v1541_v57 = vsel %vm1535_vm13, %v1538_v19, %v1540_v3 }
 0x1bd   : > { %v4751_v1 = vmul.u32.u64.low %v4685_v60, %v1549_v18  ;;  %v4752_v47 = vmul.u32.u64.high %v4685_v60, %v1549_v18, %v4751_v1  ;;  %3684 = vsinq.f32 %v4680_v22  ;;  %v1560_v49 = vadd.s32 1, %v4735_v30 }
 0x1be   : > { %v1409_v27 = vadd.s32 1, %v3186_v2  ;;  %3686 = vcosq.f32 %v1075_v26  ;;  %v5990_v53 = vsel %vm4574_vm12, 0, %v4606_v56  ;;  %v3180_v31 = vadd.s32 4294967294, %v1261_v59 }
 0x1bf   : > { %v4761_v11 = vand.u32 3, %v5990_v53  ;;  %v1381_v22 = vsel %vm1298_vm4, %v1380_v5, %v1379_v25  ;;  %v4770_v54 = vsel %vm1195_vm11, %v1279_v20, %v1255_v42  ;;  %v1406_v13 = vand.u32 8388607, %v5921_v0 }
 0x1c0   : > { %vm1410_vm14 = vcmp.gt.s32.totalorder %v1409_v27, 0  ;;  %vm3181_vm0 = vcmp.lt.s32.totalorder %v3180_v31, 0  ;;  %v1557_v14 = vmul.u32 %v4685_v60, %v1541_v57  ;;  %vm1559_vm12 = vc.u32 %v4752_v47, %v4734_v44 }
 0x1c1   : > { %v1411_v56 = vsel %vm1410_vm14, %v1409_v27, 0  ;;  %3688 = vsinq.f32 %v1075_v26  ;;  %v1264_v63 = vsel %vm3181_vm0, 0, %v3180_v31  ;;  %v1561_v23 = vsel %vm1559_vm12, %v1560_v49, %v4735_v30 }
 0x1c2   : > { %v1413_v25 = vand.u32 31, %v1411_v56  ;;  %v1249_v42 = vadd.s32 %v4666_v4, %v4672_v28  ;;  %v1269_v15 = vsub.s32 4294967266, %v1264_v63  ;;  %v1562_v24 = vadd.s32 %v1561_v23, %v1557_v14 }
 0x1c3   : > { %v4784_v60 = vsel %vm4707_vm9, %v4331_v32, %v1381_v22  ;;  %v1265_v3 = vsub.s32 32, %v1264_v63  ;;  %v1407_v20 = vor.u32 8388608, %v1406_v13  ;;  %v1711_v4 = vand.u32 2139095040, %v4620_v50 }
 0x1c4   : > { %v1414_v36 = vsub.s32 32, %v1413_v25  ;;  %v1270_v30 = vadd.s32 127, %v1269_v15  ;;  %v1563_v5 = vadd.s32 536870912, %v1562_v24  ;;  %v1416_v28 = vshll.u32 %v5983_v16, %v1413_v25 }
 0x1c5   : > { %v1419_v2 = vshll.u32 %v5977_v6, %v1413_v25  ;;  %v1266_v22 = vshll.u32 %v4716_v37, %v1264_v63  ;;  %v1267_v13 = vshrl.u32 %v1249_v42, %v1265_v3  ;;  %v1412_v14 = vshrl.u32 %v1411_v56, 5 }
 0x1c6   : > { %v1417_v18 = vshrl.u32 %v5977_v6, %v1414_v36  ;;  %v1420_v59 = vshrl.u32 %v5964_v51, %v1414_v36  ;;  %v4794_v1 = vpop.eup %3682  ;;  %v1271_v57 = vshll.u32 %v1270_v30, 23  ;;  %v4796_v49 = vshrl.u32 %v1563_v5, 30 }
 0x1c7   : > { %5991 = vst [vmem:[#allocation23_spill] sm:$0xff] %v4794_v1  ;;  %v1423_v27 = vshrl.u32 %v5978_v43, %v1414_v36  ;;  %v1426_v53 = vshrl.u32 %v5979_v40, %v1414_v36  ;;  %v4800_v31 = vpop.eup %3684  ;;  %v1425_v23 = vshll.u32 %v5978_v43, %v1413_v25  ;;  %v1422_v5 = vshll.u32 %v5964_v51, %v1413_v25 }
 0x1c8   : > { %5992 = vst [vmem:[#allocation24_spill] sm:$0xff] %v4800_v31  ;;  %v4804_v15 = vpop.eup %3686  ;;  %v1565_v0 = vshll.u32 %v4796_v49, 30  ;;  %v1418_v26 = vor.u32 %v1417_v18, %v1416_v28  ;;  %v1421_v30 = vor.u32 %v1420_v59, %v1419_v2  ;;  %v1272_v45 = vor.u32 4788187, %v1271_v57 }
 0x1c9   : > { %v1427_v19 = vor.u32 %v1426_v53, %v1425_v23  ;;  %v1428_v32 = vshll.u32 %v5979_v40, %v1413_v25  ;;  %v1429_v1 = vshrl.u32 %v5965_v61, %v1414_v36  ;;  %v1424_v37 = vor.u32 %v1423_v27, %v1422_v5 }
 0x1ca   : > { %v4810_v31 = vsub.s32 %v1562_v24, %v1565_v0  ;;  %v4812_v56 = vshll.u32 %v1407_v20, 8  ;;  %v5993_v63 = vand.u32 2147483647, %v4620_v50  ;;  %v1268_v28 = vor.u32 %v1267_v13, %v1266_v22 }
 0x1cb   : > { %v4818_v3 = vpop.eup %3688  ;;  %v1415_v18 = vshrl.u32 %v5983_v16, %v1414_v36  ;;  %v1430_v2 = vor.u32 %v1429_v1, %v1428_v32  ;;  %v1712_v59 = vshrl.u32 %v1711_v4, 23  ;;  %vm1431_vm1 = vcmp.lt.s32.totalorder %v1412_v14, 1 }
 0x1cc   : > { %v4816_v42 = vand.u32 8388607, %v5993_v63  ;;  %v1568_v25 = vsub.s32 0, %v4810_v31  ;;  %vm1432_vm15 = vcmp.lt.s32.totalorder %v1412_v14, 2  ;;  %vm1434_vm2 = vcmp.lt.s32.totalorder %v1412_v14, 4 }
 0x1cd   : > { %v1273_v0 = vand.u32 2147483647, %v1272_v45  ;;  %vm1504_vm3 = vcmp.lt.s32.totalorder %v4592_v29, 0  ;;  %vm1433_vm5 = vcmp.lt.s32.totalorder %v1412_v14, 3  ;;  %v1439_v24 = vsel %vm1431_vm1, %v1418_v26, %v1421_v30 }
 0x1ce   : > { %v1440_v20 = vsel %vm1434_vm2, %v1427_v19, 920167782  ;;  %v3191_v57 = vmin.u32 %v1568_v25, %v4810_v31  ;;  %v1436_v27 = vsel %vm1434_vm2, %v1424_v37, 2102212464  ;;  %v1443_v32 = vsel %vm1431_vm1, %v1421_v30, %v1424_v37 }
 0x1cf   : > { %v1441_v53 = vsel %vm1433_vm5, %v1424_v37, %v1440_v20  ;;  %v1275_v36 = vcvt.s32.f32 %v1268_v28  ;;  %v1444_v1 = vsel %vm1434_vm2, %v1430_v2, 1326507024  ;;  %v3198_v22 = vadd.s32 4294967169, %v1712_v59 }
 0x1d0   : > { %v1442_v4 = vsel %vm1432_vm15, %v1439_v24, %v1441_v53  ;;  %v5994_v45 = vand.u32 2147483647, %v4592_v29  ;;  %v1570_v23 = vclz %v3191_v57  ;;  %v1588_v5 = vsub.s32 4, %v4796_v49 }
 0x1d1   : > { %v1435_v63 = vsel %vm1431_vm1, %v1415_v18, %v1418_v26  ;;  %v1445_v25 = vsel %vm1433_vm5, %v1427_v19, %v1444_v1  ;;  %v1437_v37 = vsel %vm1433_vm5, %v1421_v30, %v1436_v27  ;;  %v1276_v24 = vmul.f32 %v1275_v36, %v1273_v0 }
 0x1d2   : > { %vm4830_vm4 = vcmp.le.f32.partialorder %v5994_v45, 0.7853982  ;;  %v1446_v28 = vsel %vm1432_vm15, %v1443_v32, %v1445_v25  ;;  %v4840_v2 = vmul.u32.u64.low %v4812_v56, %v1442_v4  ;;  %v4841_v59 = vmul.u32.u64.high %v4812_v56, %v1442_v4, %v4840_v2 }
 0x1d3   : > { %v3192_v20 = vadd.s32 4294967294, %v1570_v23  ;;  %v4845_v53 = vmul.u32.u64.low %v4812_v56, %v1446_v28  ;;  %v4846_v57 = vmul.u32.u64.high %v4812_v56, %v1446_v28, %v4845_v53  ;;  %3690 = vcosq.f32 %v4784_v60 }
 0x1d4   : > { %v5997_v19 = vsel %vm4707_vm9, 0, %v4724_v7  ;;  %v5999_v30 = vsel %vm4740_vm10, 0, %v4770_v54  ;;  %v1718_v0 = vadd.s32 1, %v3198_v22  ;;  %3692 = vsinq.f32 %v4784_v60  ;;  %v369_v22 = vpop.permute.xlu1 %368 }
 0x1d5   : > { %v4853_v26 = vand.u32 3, %v5997_v19  ;;  %v4859_v18 = vand.u32 3, %v5999_v30  ;;  %vm3193_vm6 = vcmp.lt.s32.totalorder %v3192_v20, 0  ;;  %v1438_v27 = vsel %vm1432_vm15, %v1435_v63, %v1437_v37 }
 0x1d6   : > { %v1608_v32 = vand.u32 2139095040, %v4623_v46  ;;  %v1573_v36 = vsel %vm3193_vm6, 0, %v3192_v20  ;;  %v1457_v12 = vadd.s32 1, %v4841_v59  ;;  %vm1719_vm7 = vcmp.gt.s32.totalorder %v1718_v0, 0 }
 0x1d7   : > { %5998 = vst [vmem:[#allocation25_spill] sm:$0xff] %v4853_v26  ;;  %6000 = vst [vmem:[#allocation26_spill] sm:$0xff] %v4859_v18  ;;  %v5925_v7 = vand.u32 2147483647, %v4623_v46  ;;  %v1277_v4 = vxor.u32 2147483648, %v1276_v24  ;;  %v1578_v1 = vsub.s32 4294967266, %v1573_v36  ;;  %v4869_v54 = vsel %vm1504_vm3, %v1588_v5, %v4796_v49 }
 0x1d8   : > { %v1716_v60 = vor.u32 8388608, %v4816_v42  ;;  %v1574_v14 = vsub.s32 32, %v1573_v36  ;;  %v1454_v45 = vmul.u32 %v4812_v56, %v1438_v27  ;;  %vm1456_vm9 = vc.u32 %v4846_v57, %v4840_v2 }
 0x1d9   : > { %v1720_v23 = vsel %vm1719_vm7, %v1718_v0, 0  ;;  %v1579_v63 = vadd.s32 127, %v1578_v1  ;;  %v1458_v25 = vsel %vm1456_vm9, %v1457_v12, %v4841_v59  ;;  %v1609_v37 = vshrl.u32 %v1608_v32, 23 }
 0x1da   : > { %v4877_v28 = vadd.f32 %v4395_v34, %v369_v22  ;;  %v1558_v49 = vadd.s32 %v4734_v44, %v4752_v47  ;;  %v1459_v5 = vadd.s32 %v1458_v25, %v1454_v45  ;;  %v1722_v56 = vand.u32 31, %v1720_v23 }
 0x1db   : > { %v4886_v20 = vsel %vm1195_vm11, %v1277_v4, %v1276_v24  ;;  %v1580_v53 = vshll.u32 %v1579_v63, 23  ;;  %v4888_v19 = vshll.u32 %v1716_v60, 8  ;;  %v4892_v34 = vand.u32 8388607, %v5925_v7 }
 0x1dc   : > { %v1575_v59 = vshll.u32 %v4810_v31, %v1573_v36  ;;  %v1576_v44 = vshrl.u32 %v1558_v49, %v1574_v14  ;;  %v1460_v47 = vadd.s32 536870912, %v1459_v5  ;;  %v1723_v30 = vsub.s32 32, %v1722_v56 }
 0x1dd   : > { %v1721_v0 = vshrl.u32 %v1720_v23, 5  ;;  %v1725_v27 = vshll.u32 %v5983_v16, %v1722_v56  ;;  %v1728_v32 = vshll.u32 %v5977_v6, %v1722_v56  ;;  %v3194_v12 = vadd.s32 4294967169, %v1609_v37  ;;  %v4897_v24 = vpop.eup %3690 }
 0x1de   : > { %6001 = vst [vmem:[#allocation27_spill] sm:$0xff] %v4897_v24  ;;  %v1581_v4 = vor.u32 4788187, %v1580_v53  ;;  %v1461_v1 = vshrl.u32 %v1460_v47, 30  ;;  %v1726_v60 = vshrl.u32 %v5977_v6, %v1723_v30  ;;  %v1729_v22 = vshrl.u32 %v5964_v51, %v1723_v30  ;;  %v4901_v45 = vpop.eup %3692 }
 0x1df   : > { %6002 = vst [vmem:[#allocation28_spill] sm:$0xff] %v4901_v45  ;;  %v1731_v31 = vshll.u32 %v5964_v51, %v1722_v56  ;;  %v1732_v36 = vshrl.u32 %v5978_v43, %v1723_v30  ;;  %v1734_v14 = vshll.u32 %v5978_v43, %v1722_v56  ;;  %v1735_v23 = vshrl.u32 %v5979_v40, %v1723_v30 }
 0x1e0   : > { %v1577_v63 = vor.u32 %v1576_v44, %v1575_v59  ;;  %v1462_v25 = vshll.u32 %v1461_v1, 30  ;;  %v1727_v37 = vor.u32 %v1726_v60, %v1725_v27  ;;  %v1730_v49 = vor.u32 %v1729_v22, %v1728_v32 }
 0x1e1   : > { %v1733_v53 = vor.u32 %v1732_v36, %v1731_v31  ;;  %v1736_v47 = vor.u32 %v1735_v23, %v1734_v14  ;;  %v1737_v7 = vshll.u32 %v5979_v40, %v1722_v56  ;;  %v1738_v42 = vshrl.u32 %v5965_v61, %v1723_v30 }
 0x1e2   : > { %v4909_v24 = vsub.s32 %v1459_v5, %v1462_v25  ;;  %vm1740_vm8 = vcmp.lt.s32.totalorder %v1721_v0, 1  ;;  %v1613_v45 = vor.u32 8388608, %v4892_v34  ;;  %v1615_v26 = vadd.s32 1, %v3194_v12 }
 0x1e3   : > { %v1582_v18 = vand.u32 2147483647, %v1581_v4  ;;  %vm1401_vm11 = vcmp.lt.s32.totalorder %v4612_v55, 0  ;;  %v1724_v59 = vshrl.u32 %v5983_v16, %v1723_v30  ;;  %v1739_v44 = vor.u32 %v1738_v42, %v1737_v7 }
 0x1e4   : > { %vm1743_vm13 = vcmp.lt.s32.totalorder %v1721_v0, 4  ;;  %v1465_v27 = vsub.s32 0, %v4909_v24  ;;  %vm1742_vm14 = vcmp.lt.s32.totalorder %v1721_v0, 3  ;;  %v1748_v32 = vsel %vm1740_vm8, %v1727_v37, %v1730_v49 }
 0x1e5   : > { %v1745_v56 = vsel %vm1743_vm13, %v1733_v53, 2102212464  ;;  %v1584_v5 = vcvt.s32.f32 %v1577_v63  ;;  %v1744_v60 = vsel %vm1740_vm8, %v1724_v59, %v1727_v37  ;;  %v1749_v12 = vsel %vm1743_vm13, %v1736_v47, 920167782 }
 0x1e6   : > { %v1746_v34 = vsel %vm1742_vm14, %v1730_v49, %v1745_v56  ;;  %v3187_v4 = vmin.u32 %v1465_v27, %v4909_v24  ;;  %vm1741_vm0 = vcmp.lt.s32.totalorder %v1721_v0, 2  ;;  %v1750_v7 = vsel %vm1742_vm14, %v1733_v53, %v1749_v12 }
 0x1e7   : > { %v1752_v42 = vsel %vm1740_vm8, %v1730_v49, %v1733_v53  ;;  %v4923_v30 = vmul.f32 %v1584_v5, %v1582_v18  ;;  %v1485_v22 = vsub.s32 4, %v1461_v1  ;;  %v1751_v31 = vsel %vm1741_vm0, %v1748_v32, %v1750_v7 }
 0x1e8   : > { %v1753_v36 = vsel %vm1743_vm13, %v1739_v44, 1326507024  ;;  %v1467_v14 = vclz %v3187_v4  ;;  %v1747_v23 = vsel %vm1741_vm0, %v1744_v60, %v1746_v34  ;;  %vm1616_vm12 = vcmp.gt.s32.totalorder %v1615_v26, 0 }
 0x1e9   : > { %v1754_v63 = vsel %vm1742_vm14, %v1736_v47, %v1753_v36  ;;  %v4928_v37 = vmul.u32.u64.low %v4888_v19, %v1751_v31  ;;  %v4929_v59 = vmul.u32.u64.high %v4888_v19, %v1751_v31, %v4928_v37  ;;  %v1617_v27 = vsel %vm1616_vm12, %v1615_v26, 0 }
 0x1ea   : > { %v1755_v25 = vsel %vm1741_vm0, %v1752_v42, %v1754_v63  ;;  %v4936_v18 = vsel %vm4740_vm10, %v4514_v52, %v4886_v20  ;;  %v3188_v49 = vadd.s32 4294967294, %v1467_v14  ;;  %v1455_v0 = vadd.s32 %v4840_v2, %v4846_v57 }
 0x1eb   : > { %v4939_v53 = vmul.u32.u64.low %v4888_v19, %v1755_v25  ;;  %v4940_v44 = vmul.u32.u64.high %v4888_v19, %v1755_v25, %v4939_v53  ;;  %v1619_v47 = vand.u32 31, %v1617_v27  ;;  %v4944_v56 = vshll.u32 %v1613_v45, 8 }
 0x1ec   : > { %v5930_v32 = vand.u32 2147483647, %v4877_v28  ;;  %v1586_v26 = vxor.u32 2147483648, %v4923_v30  ;;  %vm3189_vm1 = vcmp.lt.s32.totalorder %v3188_v49, 0  ;;  %v4950_v48 = vsel %vm1401_vm11, %v1485_v22, %v1461_v1 }
 0x1ed   : > { %v1763_v20 = vmul.u32 %v4888_v19, %v1747_v23  ;;  %v1470_v5 = vsel %vm3189_vm1, 0, %v3188_v49  ;;  %v1766_v60 = vadd.s32 1, %v4929_v59  ;;  %v4954_v34 = vshrl.u32 %v1617_v27, 5 }
 0x1ee   : > { %v1620_v2 = vsub.s32 32, %v1619_v47  ;;  %v1471_v57 = vsub.s32 32, %v1470_v5  ;;  %v1475_v45 = vsub.s32 4294967266, %v1470_v5  ;;  %v1622_v12 = vshll.u32 %v5983_v16, %v1619_v47 }
 0x1ef   : > { %v1917_v4 = vand.u32 2139095040, %v4877_v28  ;;  %v1472_v7 = vshll.u32 %v4909_v24, %v1470_v5  ;;  %vm1765_vm10 = vc.u32 %v4940_v44, %v4928_v37  ;;  %v1625_v19 = vshll.u32 %v5977_v6, %v1619_v47 }
 0x1f0   : > { %v1623_v1 = vshrl.u32 %v5977_v6, %v1620_v2  ;;  %v1473_v42 = vshrl.u32 %v1455_v0, %v1471_v57  ;;  %v1476_v22 = vadd.s32 127, %v1475_v45  ;;  %v1767_v31 = vsel %vm1765_vm10, %v1766_v60, %v4929_v59 }
 0x1f1   : > { %v1626_v36 = vshrl.u32 %v5964_v51, %v1620_v2  ;;  %v1768_v14 = vadd.s32 %v1767_v31, %v1763_v20  ;;  %v1628_v23 = vshll.u32 %v5964_v51, %v1619_v47  ;;  %v1629_v63 = vshrl.u32 %v5978_v43, %v1620_v2 }
 0x1f2   : > { %vm1637_vm15 = vcmp.lt.s32.totalorder %v4954_v34, 1  ;;  %v1474_v24 = vor.u32 %v1473_v42, %v1472_v7  ;;  %v1477_v25 = vshll.u32 %v1476_v22, 23  ;;  %v1624_v27 = vor.u32 %v1623_v1, %v1622_v12 }
 0x1f3   : > { %v1627_v49 = vor.u32 %v1626_v36, %v1625_v19  ;;  %v1769_v53 = vadd.s32 536870912, %v1768_v14  ;;  %v1630_v5 = vor.u32 %v1629_v63, %v1628_v23  ;;  %v1631_v0 = vshll.u32 %v5978_v43, %v1619_v47 }
 0x1f4   : > { %v1632_v57 = vshrl.u32 %v5979_v40, %v1620_v2  ;;  %v6003_v59 = vand.u32 2147483647, %v4612_v55  ;;  %v1478_v60 = vor.u32 4788187, %v1477_v25  ;;  %v1634_v45 = vshll.u32 %v5979_v40, %v1619_v47 }
 0x1f5   : > { %v1635_v7 = vshrl.u32 %v5965_v61, %v1620_v2  ;;  %vm1638_vm5 = vcmp.lt.s32.totalorder %v4954_v34, 2  ;;  %v1481_v12 = vcvt.s32.f32 %v1474_v24  ;;  %vm1710_vm6 = vcmp.lt.s32.totalorder %v4620_v50, 0 }
 0x1f6   : > { %vm4972_vm2 = vcmp.le.f32.partialorder %v6003_v59, 0.7853982  ;;  %v1770_v1 = vshrl.u32 %v1769_v53, 30  ;;  %v1633_v19 = vor.u32 %v1632_v57, %v1631_v0  ;;  %vm1639_vm7 = vcmp.lt.s32.totalorder %v4954_v34, 3 }
 0x1f7   : > { %v1479_v42 = vand.u32 2147483647, %v1478_v60  ;;  %v1636_v22 = vor.u32 %v1635_v7, %v1634_v45  ;;  %vm1640_vm9 = vcmp.lt.s32.totalorder %v4954_v34, 4  ;;  %v1645_v31 = vsel %vm1637_vm15, %v1624_v27, %v1627_v49 }
 0x1f8   : > { %v1771_v36 = vshll.u32 %v1770_v1, 30  ;;  %v1621_v47 = vshrl.u32 %v5983_v16, %v1620_v2  ;;  %v1642_v23 = vsel %vm1640_vm9, %v1630_v5, 2102212464  ;;  %v1646_v63 = vsel %vm1640_vm9, %v1633_v19, 920167782 }
 0x1f9   : > { %v1482_v25 = vmul.f32 %v1481_v12, %v1479_v42  ;;  %v6006_v24 = vand.u32 2147483647, %v4620_v50  ;;  %v1647_v0 = vsel %vm1639_vm7, %v1630_v5, %v1646_v63  ;;  %v1649_v57 = vsel %vm1637_vm15, %v1627_v49, %v1630_v5 }
 0x1fa   : > { %v1650_v59 = vsel %vm1640_vm9, %v1636_v22, 1326507024  ;;  %v1587_v2 = vsel %vm1504_vm3, %v1586_v26, %v4923_v30  ;;  %v4998_v60 = vsub.s32 %v1768_v14, %v1771_v36  ;;  %v1648_v45 = vsel %vm1638_vm5, %v1645_v31, %v1647_v0 }
 0x1fb   : > { %vm4987_vm8 = vcmp.le.f32.partialorder %v6006_v24, 0.7853982  ;;  %v1651_v7 = vsel %vm1639_vm7, %v1633_v19, %v1650_v59  ;;  %v1483_v12 = vxor.u32 2147483648, %v1482_v25  ;;  %v1794_v42 = vsub.s32 4, %v1770_v1 }
 0x1fc   : > { %v1641_v63 = vsel %vm1637_vm15, %v1621_v47, %v1624_v27  ;;  %v1652_v5 = vsel %vm1638_vm5, %v1649_v57, %v1651_v7  ;;  %v1774_v22 = vsub.s32 0, %v4998_v60  ;;  %v1643_v30 = vsel %vm1639_vm7, %v1627_v49, %v1642_v23 }
 0x1fd   : > { %v5012_v26 = vmul.u32.u64.low %v4944_v56, %v1652_v5  ;;  %v5013_v14 = vmul.u32.u64.high %v4944_v56, %v1652_v5, %v5012_v26  ;;  %3694 = vcosq.f32 %v4936_v18  ;;  %v1918_v27 = vshrl.u32 %v1917_v4, 23 }
 0x1fe   : > { %v5017_v19 = vmul.u32.u64.low %v4944_v56, %v1648_v45  ;;  %v5018_v31 = vmul.u32.u64.high %v4944_v56, %v1648_v45, %v5017_v19  ;;  %v1590_v36 = vsel %vm4830_vm4, %v4592_v29, %v1587_v2  ;;  %v1488_v49 = vsel %vm4972_vm2, 0, %v4950_v48  ;;  %v364_v45 = vpop.permute.xlu0 %363 }
 0x1ff   : > { %v3199_v47 = vmin.u32 %v1774_v22, %v4998_v60  ;;  %v1921_v23 = vand.u32 8388607, %v5930_v32  ;;  %v1484_v24 = vsel %vm1401_vm11, %v1483_v12, %v1482_v25  ;;  %v1795_v0 = vsel %vm1710_vm6, %v1794_v42, %v1770_v1 }
 0x200   : > { %v1644_v4 = vsel %vm1638_vm5, %v1641_v63, %v1643_v30  ;;  %v3206_v57 = vadd.s32 4294967169, %v1918_v27  ;;  %3696 = vsinq.f32 %v4936_v18  ;;  %v6009_v48 = vsel %vm4830_vm4, 0, %v4869_v54 }
 0x201   : > { %v5041_v59 = vand.u32 3, %v6009_v48  ;;  %v1776_v2 = vclz %v3199_v47  ;;  %vm1662_vm3 = vc.u32 %v5013_v14, %v5017_v19  ;;  %3698 = vcosq.f32 %v1590_v36 }
 0x202   : > { %v5045_v25 = vand.u32 3, %v1488_v49  ;;  %v1663_v1 = vadd.s32 1, %v5018_v31  ;;  %v1924_v34 = vadd.s32 1, %v3206_v57  ;;  %v5051_v18 = vsel %vm4972_vm2, %v4612_v55, %v1484_v24  ;;  %v379_v49 = vpop.permute.xlu1 %378 }
 0x203   : > { %6010 = vst [vmem:[#allocation29_spill] sm:$0xff] %v5041_v59  ;;  %v3200_v13 = vadd.s32 4294967294, %v1776_v2  ;;  %v1797_v54 = vsel %vm4987_vm8, 0, %v1795_v0  ;;  %v1660_v7 = vmul.u32 %v4944_v56, %v1644_v4  ;;  %v1922_v42 = vor.u32 8388608, %v1921_v23 }
 0x204   : > { %6011 = vst [vmem:[#allocation30_spill] sm:$0xff] %v5045_v25  ;;  %v1664_v12 = vsel %vm1662_vm3, %v1663_v1, %v5018_v31  ;;  %vm1925_vm4 = vcmp.gt.s32.totalorder %v1924_v34, 0  ;;  %v5058_v63 = vadd.f32 %v4506_v62, %v364_v45  ;;  %3700 = vsinq.f32 %v1590_v36 }
 0x205   : > { %vm3201_vm11 = vcmp.lt.s32.totalorder %v3200_v13, 0  ;;  %v1665_v5 = vadd.s32 %v1664_v12, %v1660_v7  ;;  %v1926_v22 = vsel %vm1925_vm4, %v1924_v34, 0  ;;  %v1764_v20 = vadd.s32 %v4928_v37, %v4940_v44 }
 0x206   : > { %v1779_v30 = vsel %vm3201_vm11, 0, %v3200_v13  ;;  %v5062_v26 = vand.u32 3, %v1797_v54  ;;  %v1928_v27 = vand.u32 31, %v1926_v22  ;;  %3702 = vcosq.f32 %v5051_v18 }
 0x207   : > { %v1780_v56 = vsub.s32 32, %v1779_v30  ;;  %v1784_v31 = vsub.s32 4294967266, %v1779_v30  ;;  %v1666_v47 = vadd.s32 536870912, %v1665_v5  ;;  %v5065_v23 = vpop.eup %3694  ;;  %v5067_v36 = vshll.u32 %v1922_v42, 8 }
 0x208   : > { %6012 = vst [vmem:[#allocation31_spill] sm:$0xff] %v5062_v26  ;;  %v1929_v62 = vsub.s32 32, %v1928_v27  ;;  %v1814_v24 = vand.u32 2139095040, %v5058_v63  ;;  %v5071_v0 = vadd.f32 %v4625_v35, %v379_v49  ;;  %v1781_v37 = vshll.u32 %v4998_v60, %v1779_v30 }
 0x209   : > { %v1782_v44 = vshrl.u32 %v1764_v20, %v1780_v56  ;;  %v1785_v4 = vadd.s32 127, %v1784_v31  ;;  %v1667_v57 = vshrl.u32 %v1666_v47, 30  ;;  %v1931_v48 = vshll.u32 %v5983_v16, %v1928_v27 }
 0x20a   : > { %v1932_v2 = vshrl.u32 %v5977_v6, %v1929_v62  ;;  %v1935_v1 = vshrl.u32 %v5964_v51, %v1929_v62  ;;  %v1938_v34 = vshrl.u32 %v5978_v43, %v1929_v62  ;;  %v5078_v45 = vpop.eup %3696  ;;  %v1934_v35 = vshll.u32 %v5977_v6, %v1928_v27 }
 0x20b   : > { %v1783_v13 = vor.u32 %v1782_v44, %v1781_v37  ;;  %v1786_v54 = vshll.u32 %v1785_v4, 23  ;;  %v1668_v7 = vshll.u32 %v1667_v57, 30  ;;  %v5081_v12 = vpop.eup %3698  ;;  %v1927_v60 = vshrl.u32 %v1926_v22, 5 }
 0x20c   : > { %6013 = vst [vmem:[#allocation32_spill] sm:$0xff] %v5081_v12  ;;  %v1937_v42 = vshll.u32 %v5964_v51, %v1928_v27  ;;  %v1940_v20 = vshll.u32 %v5978_v43, %v1928_v27  ;;  %v1941_v30 = vshrl.u32 %v5979_v40, %v1929_v62  ;;  %v1933_v31 = vor.u32 %v1932_v2, %v1931_v48 }
 0x20d   : > { %v1787_v49 = vor.u32 4788187, %v1786_v54  ;;  %v5086_v56 = vsub.s32 %v1665_v5, %v1668_v7  ;;  %v1936_v47 = vor.u32 %v1935_v1, %v1934_v35  ;;  %vm1607_vm13 = vcmp.lt.s32.totalorder %v4623_v46, 0 }
 0x20e   : > { %v1939_v37 = vor.u32 %v1938_v34, %v1937_v42  ;;  %v1942_v44 = vor.u32 %v1941_v30, %v1940_v20  ;;  %v1943_v4 = vshll.u32 %v5979_v40, %v1928_v27  ;;  %v1944_v32 = vshrl.u32 %v5965_v61, %v1929_v62  ;;  %v5091_v22 = vpop.eup %3700 }
 0x20f   : > { %6014 = vst [vmem:[#allocation33_spill] sm:$0xff] %v5091_v22  ;;  %v1788_v26 = vand.u32 2147483647, %v1787_v49  ;;  %v1790_v29 = vcvt.s32.f32 %v1783_v13  ;;  %v1671_v12 = vsub.s32 0, %v5086_v56  ;;  %v1691_v5 = vsub.s32 4, %v1667_v57 }
 0x210   : > { %v1930_v48 = vshrl.u32 %v5983_v16, %v1929_v62  ;;  %v1945_v2 = vor.u32 %v1944_v32, %v1943_v4  ;;  %v1815_v1 = vshrl.u32 %v1814_v24, 23  ;;  %v5096_v7 = vpop.eup %3702  ;;  %v6016_v27 = vand.u32 2147483647, %v4623_v46 }
 0x211   : > { %6015 = vst [vmem:[#allocation34_spill] sm:$0xff] %v5096_v7  ;;  %v1791_v34 = vmul.f32 %v1790_v29, %v1788_v26  ;;  %v3195_v13 = vmin.u32 %v1671_v12, %v5086_v56  ;;  %vm1946_vm0 = vcmp.lt.s32.totalorder %v1927_v60, 1  ;;  %vm1949_vm12 = vcmp.lt.s32.totalorder %v1927_v60, 4 }
 0x212   : > { %vm5100_vm14 = vcmp.le.f32.partialorder %v6016_v27, 0.7853982  ;;  %vm1948_vm1 = vcmp.lt.s32.totalorder %v1927_v60, 3  ;;  %v1951_v42 = vsel %vm1949_vm12, %v1939_v37, 2102212464  ;;  %v1954_v20 = vsel %vm1946_vm0, %v1933_v31, %v1936_v47 }
 0x213   : > { %v1955_v30 = vsel %vm1949_vm12, %v1942_v44, 920167782  ;;  %v1673_v62 = vclz %v3195_v13  ;;  %vm1947_vm10 = vcmp.lt.s32.totalorder %v1927_v60, 2  ;;  %v1958_v24 = vsel %vm1946_vm0, %v1936_v47, %v1939_v37  ;;  %v374_v60 = vpop.permute.xlu0 %373 }
 0x214   : > { %v1956_v32 = vsel %vm1948_vm1, %v1939_v37, %v1955_v30  ;;  %v1950_v49 = vsel %vm1946_vm0, %v1930_v48, %v1933_v31  ;;  %v1959_v26 = vsel %vm1949_vm12, %v1945_v2, 1326507024  ;;  %v3202_v4 = vadd.s32 4294967169, %v1815_v1 }
 0x215   : > { %v1957_v29 = vsel %vm1947_vm10, %v1954_v20, %v1956_v32  ;;  %v1792_v27 = vxor.u32 2147483648, %v1791_v34  ;;  %v3196_v54 = vadd.s32 4294967294, %v1673_v62  ;;  %v1952_v22 = vsel %vm1948_vm1, %v1936_v47, %v1951_v42 }
 0x216   : > { %v1960_v59 = vsel %vm1948_vm1, %v1942_v44, %v1959_v26  ;;  %v5108_v7 = vmul.u32.u64.low %v5067_v36, %v1957_v29  ;;  %v5109_v25 = vmul.u32.u64.high %v5067_v36, %v1957_v29, %v5108_v7  ;;  %v6019_v13 = vand.u32 2147483647, %v5058_v63 }
 0x217   : > { %v1961_v12 = vsel %vm1947_vm10, %v1958_v24, %v1960_v59  ;;  %vm3197_vm15 = vcmp.lt.s32.totalorder %v3196_v54, 0  ;;  %v1692_v31 = vsel %vm1607_vm13, %v1691_v5, %v1667_v57  ;;  %v1661_v47 = vadd.s32 %v5017_v19, %v5013_v14 }
 0x218   : > { %v1818_v30 = vand.u32 8388607, %v6019_v13  ;;  %v5117_v37 = vmul.u32.u64.low %v5067_v36, %v1961_v12  ;;  %v5118_v48 = vmul.u32.u64.high %v5067_v36, %v1961_v12, %v5117_v37  ;;  %v1676_v59 = vsel %vm3197_vm15, 0, %v3196_v54 }
 0x219   : > { %v1953_v44 = vsel %vm1947_vm10, %v1950_v49, %v1952_v22  ;;  %v1821_v2 = vadd.s32 1, %v3202_v4  ;;  %v1793_v1 = vsel %vm1710_vm6, %v1792_v27, %v1791_v34  ;;  %v1677_v42 = vsub.s32 32, %v1676_v59 }
 0x21a   : > { %v1681_v20 = vsub.s32 4294967266, %v1676_v59  ;;  %v5938_v62 = vand.u32 2147483647, %v5071_v0  ;;  %v1694_v57 = vsel %vm5100_vm14, 0, %v1692_v31  ;;  %v1972_v5 = vadd.s32 1, %v5109_v25 }
 0x21b   : > { %v1819_v32 = vor.u32 8388608, %v1818_v30  ;;  %vm1822_vm2 = vcmp.gt.s32.totalorder %v1821_v2, 0  ;;  %v1679_v24 = vshrl.u32 %v1661_v47, %v1677_v42  ;;  %v1969_v19 = vmul.u32 %v5067_v36, %v1953_v44 }
 0x21c   : > { %v1682_v14 = vadd.s32 127, %v1681_v20  ;;  %vm1971_vm5 = vc.u32 %v5118_v48, %v5108_v7  ;;  %v1796_v22 = vsel %vm4987_vm8, %v4620_v50, %v1793_v1  ;;  %v1823_v34 = vsel %vm1822_vm2, %v1821_v2, 0 }
 0x21d   : > { %v1973_v54 = vsel %vm1971_vm5, %v1972_v5, %v5109_v25  ;;  %v2123_v49 = vand.u32 2139095040, %v5071_v0  ;;  %v1678_v29 = vshll.u32 %v5086_v56, %v1676_v59  ;;  %v5139_v27 = vadd.f32 %v4675_v9, %v374_v60 }
 0x21e   : > { %v1683_v26 = vshll.u32 %v1682_v14, 23  ;;  %v1974_v4 = vadd.s32 %v1973_v54, %v1969_v19  ;;  %3704 = vsinq.f32 %v5051_v18  ;;  %v5142_v36 = vand.u32 3, %v1694_v57 }
 0x21f   : > { %v1825_v12 = vand.u32 31, %v1823_v34  ;;  %v5144_v13 = vshll.u32 %v1819_v32, 8  ;;  %3706 = vcosq.f32 %v1796_v22  ;;  %v1680_v53 = vor.u32 %v1679_v24, %v1678_v29 }
 0x220   : > { %6020 = vst [vmem:[#allocation35_spill] sm:$0xff] %v5142_v36  ;;  %v1684_v25 = vor.u32 4788187, %v1683_v26  ;;  %v1975_v30 = vadd.s32 536870912, %v1974_v4  ;;  %v1824_v31 = vshrl.u32 %v1823_v34, 5  ;;  %v2124_v47 = vshrl.u32 %v2123_v49, 23 }
 0x221   : > { %v1826_v37 = vsub.s32 32, %v1825_v12  ;;  %v2127_v56 = vand.u32 8388607, %v5938_v62  ;;  %v1828_v44 = vshll.u32 %v5983_v16, %v1825_v12  ;;  %v1831_v18 = vshll.u32 %v5977_v6, %v1825_v12 }
 0x222   : > { %v1685_v59 = vand.u32 2147483647, %v1684_v25  ;;  %v1976_v9 = vshrl.u32 %v1975_v30, 30  ;;  %v1834_v42 = vshll.u32 %v5964_v51, %v1825_v12  ;;  %v1687_v57 = vcvt.s32.f32 %v1680_v53 }
 0x223   : > { %v1829_v2 = vshrl.u32 %v5977_v6, %v1826_v37  ;;  %v1832_v1 = vshrl.u32 %v5964_v51, %v1826_v37  ;;  %v1835_v20 = vshrl.u32 %v5978_v43, %v1826_v37  ;;  %v1837_v32 = vshll.u32 %v5978_v43, %v1825_v12 }
 0x224   : > { %v1977_v5 = vshll.u32 %v1976_v9, 30  ;;  %v1838_v24 = vshrl.u32 %v5979_v40, %v1826_v37  ;;  %v1841_v54 = vshrl.u32 %v5965_v61, %v1826_v37  ;;  %v1688_v34 = vmul.f32 %v1687_v57, %v1685_v59 }
 0x225   : > { %v1830_v14 = vor.u32 %v1829_v2, %v1828_v44  ;;  %v1833_v19 = vor.u32 %v1832_v1, %v1831_v18  ;;  %v1836_v60 = vor.u32 %v1835_v20, %v1834_v42  ;;  %v1840_v26 = vshll.u32 %v5979_v40, %v1825_v12 }
 0x226   : > { %v5157_v49 = vsub.s32 %v1974_v4, %v1977_v5  ;;  %v1839_v29 = vor.u32 %v1838_v24, %v1837_v32  ;;  %3708 = vsinq.f32 %v1796_v22  ;;  %vm1916_vm6 = vcmp.lt.s32.totalorder %v4877_v28, 0 }
 0x227   : > { %v1970_v53 = vadd.s32 %v5108_v7, %v5118_v48  ;;  %v3214_v25 = vadd.s32 4294967169, %v2124_v47  ;;  %v2128_v30 = vor.u32 8388608, %v2127_v56  ;;  %v1842_v18 = vor.u32 %v1841_v54, %v1840_v26 }
 0x228   : > { %v1980_v44 = vsub.s32 0, %v5157_v49  ;;  %vm1843_vm7 = vcmp.lt.s32.totalorder %v1824_v31, 1  ;;  %vm1846_vm9 = vcmp.lt.s32.totalorder %v1824_v31, 4  ;;  %v5164_v2 = vpop.eup %3704  ;;  %v2000_v4 = vsub.s32 4, %v1976_v9 }
 0x229   : > { %v1827_v59 = vshrl.u32 %v5983_v16, %v1826_v37  ;;  %v1848_v12 = vsel %vm1846_vm9, %v1836_v60, 2102212464  ;;  %v1851_v22 = vsel %vm1843_vm7, %v1830_v14, %v1833_v19  ;;  %v5168_v1 = vpop.eup %3706  ;;  %v1689_v42 = vxor.u32 2147483648, %v1688_v34 }
 0x22a   : > { %6021 = vst [vmem:[#allocation36_spill] sm:$0xff] %v5168_v1  ;;  %v3207_v7 = vmin.u32 %v1980_v44, %v5157_v49  ;;  %vm1845_vm8 = vcmp.lt.s32.totalorder %v1824_v31, 3  ;;  %v1852_v48 = vsel %vm1846_vm9, %v1839_v29, 920167782  ;;  %vm1844_vm3 = vcmp.lt.s32.totalorder %v1824_v31, 2 }
 0x22b   : > { %v1847_v47 = vsel %vm1843_vm7, %v1827_v59, %v1830_v14  ;;  %v1853_v56 = vsel %vm1845_vm8, %v1836_v60, %v1852_v48  ;;  %v1855_v20 = vsel %vm1843_vm7, %v1833_v19, %v1836_v60  ;;  %v1849_v5 = vsel %vm1845_vm8, %v1833_v19, %v1848_v12 }
 0x22c   : > { %v1982_v57 = vclz %v3207_v7  ;;  %v1854_v32 = vsel %vm1844_vm3, %v1851_v22, %v1853_v56  ;;  %v1856_v37 = vsel %vm1846_vm9, %v1842_v18, 1326507024  ;;  %v2130_v62 = vadd.s32 1, %v3214_v25 }
 0x22d   : > { %v1857_v24 = vsel %vm1845_vm8, %v1839_v29, %v1856_v37  ;;  %v5174_v54 = vmul.u32.u64.low %v5144_v13, %v1854_v32  ;;  %v5175_v26 = vmul.u32.u64.high %v5144_v13, %v1854_v32, %v5174_v54  ;;  %v5178_v1 = vshll.u32 %v2128_v30, 8 }
 0x22e   : > { %v3208_v44 = vadd.s32 4294967294, %v1982_v57  ;;  %v1858_v50 = vsel %vm1844_vm3, %v1855_v20, %v1857_v24  ;;  %v5943_v14 = vand.u32 2147483647, %v5139_v27  ;;  %v1850_v59 = vsel %vm1844_vm3, %v1847_v47, %v1849_v5 }
 0x22f   : > { %v5182_v60 = vmul.u32.u64.low %v5144_v13, %v1858_v50  ;;  %v5183_v19 = vmul.u32.u64.high %v5144_v13, %v1858_v50, %v5182_v60  ;;  %vm2131_vm4 = vcmp.gt.s32.totalorder %v2130_v62, 0  ;;  %v5187_v31 = vsel %vm1916_vm6, %v2000_v4, %v1976_v9 }
 0x230   : > { %vm3209_vm11 = vcmp.lt.s32.totalorder %v3208_v44, 0  ;;  %v2132_v29 = vsel %vm2131_vm4, %v2130_v62, 0  ;;  %v5189_v18 = vpop.eup %3708  ;;  %v5193_v25 = vsel %vm1607_vm13, %v1689_v42, %v1688_v34  ;;  %v1869_v12 = vadd.s32 1, %v5175_v26 }
 0x231   : > { %6022 = vst [vmem:[#allocation37_spill] sm:$0xff] %v5189_v18  ;;  %v1985_v30 = vsel %vm3209_vm11, 0, %v3208_v44  ;;  %v2134_v22 = vand.u32 31, %v2132_v29  ;;  %v5941_v7 = vmov 0.0   ;;  %v1866_v9 = vmul.u32 %v5144_v13, %v1850_v59 }
 0x232   : > { %3343 = vmatprep.subr.bf16.mxu0 %v5941_v7  ;;  %3491 = vmatprep.subr.bf16.mxu1 %v5941_v7  ;;  %v1986_v50 = vsub.s32 32, %v1985_v30  ;;  %v1990_v48 = vsub.s32 4294967266, %v1985_v30  ;;  %v2020_v62 = vand.u32 2139095040, %v5139_v27  ;;  %v1987_v4 = vshll.u32 %v5157_v49, %v1985_v30 }
 0x233   : > { %vm1868_vm13 = vc.u32 %v5183_v19, %v5174_v54  ;;  %v2135_v34 = vsub.s32 32, %v2134_v22  ;;  %v5205_v42 = vand.u32 8388607, %v5943_v14  ;;  %v2137_v57 = vshll.u32 %v5983_v16, %v2134_v22 }
 0x234   : > { %v1988_v47 = vshrl.u32 %v1970_v53, %v1986_v50  ;;  %v1991_v56 = vadd.s32 127, %v1990_v48  ;;  %v1870_v20 = vsel %vm1868_vm13, %v1869_v12, %v5175_v26  ;;  %vm1813_vm0 = vcmp.lt.s32.totalorder %v5058_v63, 0 }
 0x235   : > { %v1871_v13 = vadd.s32 %v1870_v20, %v1866_v9  ;;  %v2138_v5 = vshrl.u32 %v5977_v6, %v2135_v34  ;;  %v2140_v49 = vshll.u32 %v5977_v6, %v2134_v22  ;;  %v2141_v32 = vshrl.u32 %v5964_v51, %v2135_v34 }
 0x236   : > { %v1989_v37 = vor.u32 %v1988_v47, %v1987_v4  ;;  %v1992_v24 = vshll.u32 %v1991_v56, 23  ;;  %v2143_v44 = vshll.u32 %v5964_v51, %v2134_v22  ;;  %v2144_v53 = vshrl.u32 %v5978_v43, %v2135_v34 }
 0x237   : > { %v1872_v59 = vadd.s32 536870912, %v1871_v13  ;;  %v2133_v60 = vshrl.u32 %v2132_v29, 5  ;;  %v2139_v26 = vor.u32 %v2138_v5, %v2137_v57  ;;  %v2142_v30 = vor.u32 %v2141_v32, %v2140_v49 }
 0x238   : > { %v6023_v12 = vand.u32 2147483647, %v4877_v28  ;;  %v1993_v48 = vor.u32 4788187, %v1992_v24  ;;  %v2145_v9 = vor.u32 %v2144_v53, %v2143_v44  ;;  %v2146_v20 = vshll.u32 %v5978_v43, %v2134_v22 }
 0x239   : > { %v2147_v4 = vshrl.u32 %v5979_v40, %v2135_v34  ;;  %v6026_v47 = vand.u32 2147483647, %v5058_v63  ;;  %v1873_v29 = vshrl.u32 %v1872_v59, 30  ;;  %v2136_v57 = vshrl.u32 %v5983_v16, %v2135_v34 }
 0x23a   : > { %vm5217_vm12 = vcmp.le.f32.partialorder %v6023_v12, 0.7853982  ;;  %v2150_v5 = vshrl.u32 %v5965_v61, %v2135_v34  ;;  %v2021_v49 = vshrl.u32 %v2020_v62, 23  ;;  %v1994_v32 = vand.u32 2147483647, %v1993_v48 }
 0x23b   : > { %vm5225_vm1 = vcmp.le.f32.partialorder %v6026_v47, 0.7853982  ;;  %v1996_v12 = vcvt.s32.f32 %v1989_v37  ;;  %v2148_v24 = vor.u32 %v2147_v4, %v2146_v20  ;;  %v2149_v44 = vshll.u32 %v5979_v40, %v2134_v22 }
 0x23c   : > { %v1874_v53 = vshll.u32 %v1873_v29, 30  ;;  %v1897_v7 = vsub.s32 4, %v1873_v29  ;;  %vm2152_vm10 = vcmp.lt.s32.totalorder %v2133_v60, 1  ;;  %vm2155_vm15 = vcmp.lt.s32.totalorder %v2133_v60, 4 }
 0x23d   : > { %v1997_v14 = vmul.f32 %v1996_v12, %v1994_v32  ;;  %v2151_v47 = vor.u32 %v2150_v5, %v2149_v44  ;;  %v2157_v18 = vsel %vm2155_vm15, %v2145_v9, 2102212464  ;;  %v2160_v59 = vsel %vm2152_vm10, %v2139_v26, %v2142_v30 }
 0x23e   : > { %v5234_v36 = vsub.s32 %v1871_v13, %v1874_v53  ;;  %vm2153_vm2 = vcmp.lt.s32.totalorder %v2133_v60, 2  ;;  %vm2154_vm5 = vcmp.lt.s32.totalorder %v2133_v60, 3  ;;  %v2161_v62 = vsel %vm2155_vm15, %v2148_v24, 920167782 }
 0x23f   : > { %v1998_v34 = vxor.u32 2147483648, %v1997_v14  ;;  %v1898_v22 = vsel %vm1813_vm0, %v1897_v7, %v1873_v29  ;;  %v2156_v37 = vsel %vm2152_vm10, %v2136_v57, %v2139_v26  ;;  %v2162_v48 = vsel %vm2154_vm5, %v2145_v9, %v2161_v62 }
 0x240   : > { %v1877_v20 = vsub.s32 0, %v5234_v36  ;;  %v2158_v4 = vsel %vm2154_vm5, %v2142_v30, %v2157_v18  ;;  %v2163_v5 = vsel %vm2153_vm2, %v2160_v59, %v2162_v48  ;;  %v2164_v13 = vsel %vm2152_vm10, %v2142_v30, %v2145_v9 }
 0x241   : > { %v1999_v32 = vsel %vm1916_vm6, %v1998_v34, %v1997_v14  ;;  %v2165_v12 = vsel %vm2155_vm15, %v2151_v47, 1326507024  ;;  %v5249_v44 = vmul.u32.u64.low %v5178_v1, %v2163_v5  ;;  %v5250_v7 = vmul.u32.u64.high %v5178_v1, %v2163_v5, %v5249_v44 }
 0x242   : > { %v1693_v26 = vsel %vm5100_vm14, %v4623_v46, %v5193_v25  ;;  %v2003_v18 = vsel %vm5217_vm12, 0, %v5187_v31  ;;  %v3203_v30 = vmin.u32 %v1877_v20, %v5234_v36  ;;  %v2166_v14 = vsel %vm2154_vm5, %v2148_v24, %v2165_v12 }
 0x243   : > { %v1900_v9 = vsel %vm5225_vm1, 0, %v1898_v22  ;;  %v2159_v29 = vsel %vm2153_vm2, %v2156_v37, %v2158_v4  ;;  %v2167_v57 = vsel %vm2153_vm2, %v2164_v13, %v2166_v14  ;;  %v3210_v53 = vadd.s32 4294967169, %v2021_v49 }
 0x244   : > { %v2002_v35 = vsel %vm5217_vm12, %v4877_v28, %v1999_v32  ;;  %v1879_v25 = vclz %v3203_v30  ;;  %v5270_v47 = vmul.u32.u64.low %v5178_v1, %v2167_v57  ;;  %v5271_v31 = vmul.u32.u64.high %v5178_v1, %v2167_v57, %v5270_v47 }
 0x245   : > { %3710 = vcosq.f32 %v1693_v26  ;;  %v2178_v24 = vadd.s32 1, %v5250_v7  ;;  %v2025_v59 = vor.u32 8388608, %v5205_v42  ;;  %v2027_v62 = vadd.s32 1, %v3210_v53 }
 0x246   : > { %3712 = vsinq.f32 %v1693_v26  ;;  %v5275_v34 = vand.u32 3, %v2003_v18  ;;  %v1867_v60 = vadd.s32 %v5174_v54, %v5183_v19  ;;  %v3204_v49 = vadd.s32 4294967294, %v1879_v25 }
 0x247   : > { %3714 = vcosq.f32 %v2002_v35  ;;  %v5279_v50 = vand.u32 3, %v1900_v9  ;;  %v2175_v22 = vmul.u32 %v5178_v1, %v2159_v29  ;;  %vm2028_vm14 = vcmp.gt.s32.totalorder %v2027_v62, 0 }
 0x248   : > { %3716 = vsinq.f32 %v2002_v35  ;;  %vm3205_vm6 = vcmp.lt.s32.totalorder %v3204_v49, 0  ;;  %vm2177_vm7 = vc.u32 %v5271_v31, %v5249_v44  ;;  %v2029_v42 = vsel %vm2028_vm14, %v2027_v62, 0 }
 0x249   : > { %v1882_v37 = vsel %vm3205_vm6, 0, %v3204_v49  ;;  %v2179_v48 = vsel %vm2177_vm7, %v2178_v24, %v5250_v7  ;;  %v2031_v20 = vand.u32 31, %v2029_v42  ;;  %v5285_v4 = vshll.u32 %v2025_v59, 8 }
 0x24a   : > { %v1883_v54 = vsub.s32 32, %v1882_v37  ;;  %v1887_v19 = vsub.s32 4294967266, %v1882_v37  ;;  %v2180_v5 = vadd.s32 %v2179_v48, %v2175_v22  ;;  %v671_v13 = vxor.u32 2147483648, %v4550_v58 }
 0x24b   : > { %v1884_v1 = vshll.u32 %v5234_v36, %v1882_v37  ;;  %v5289_v32 = vshrl.u32 %v2029_v42, 5  ;;  %v2032_v12 = vsub.s32 32, %v2031_v20  ;;  %v2034_v26 = vshll.u32 %v5983_v16, %v2031_v20 }
 0x24c   : > { %v1885_v18 = vshrl.u32 %v1867_v60, %v1883_v54  ;;  %v1888_v30 = vadd.s32 127, %v1887_v19  ;;  %vm2122_vm9 = vcmp.lt.s32.totalorder %v5071_v0, 0  ;;  %v2181_v7 = vadd.s32 536870912, %v2180_v5 }
 0x24d   : > { %v2037_v14 = vshll.u32 %v5977_v6, %v2031_v20  ;;  %v2035_v9 = vshrl.u32 %v5977_v6, %v2032_v12  ;;  %v2038_v29 = vshrl.u32 %v5964_v51, %v2032_v12  ;;  %v2040_v57 = vshll.u32 %v5964_v51, %v2031_v20 }
 0x24e   : > { %v2041_v36 = vshrl.u32 %v5978_v43, %v2032_v12  ;;  %v1886_v53 = vor.u32 %v1885_v18, %v1884_v1  ;;  %v1889_v35 = vshll.u32 %v1888_v30, 23  ;;  %v2182_v25 = vshrl.u32 %v2181_v7, 30  ;;  %v6045_v7 = vld [vmem:[#allocation18_spill] sm:$0xff] }
 0x24f   : > { %v2044_v47 = vshrl.u32 %v5979_v40, %v2032_v12  ;;  %vm670_vm8 = vcmp.eq.s32.totalorder %v4392_v38, 0  ;;  %v5300_v24 = vpop.eup %3710  ;;  %v2033_v59 = vshrl.u32 %v5983_v16, %v2032_v12  ;;  %v2036_v62 = vor.u32 %v2035_v9, %v2034_v26 }
 0x250   : > { %v2043_v6 = vshll.u32 %v5978_v43, %v2031_v20  ;;  %vm673_vm3 = vcmp.eq.s32.totalorder %v4392_v38, 2  ;;  %v674_v51 = vxor.u32 2147483648, %v4544_v17  ;;  %v5306_v60 = vpop.eup %3712  ;;  %v1890_v49 = vor.u32 4788187, %v1889_v35 }
 0x251   : > { %v2183_v22 = vshll.u32 %v2182_v25, 30  ;;  %v2039_v42 = vor.u32 %v2038_v29, %v2037_v14  ;;  %v2042_v37 = vor.u32 %v2041_v36, %v2040_v57  ;;  %v5308_v48 = vpop.eup %3714  ;;  %v2206_v54 = vsub.s32 4, %v2182_v25 }
 0x252   : > { %v2045_v19 = vor.u32 %v2044_v47, %v2043_v6  ;;  %v2046_v1 = vshll.u32 %v5979_v40, %v2031_v20  ;;  %v2047_v16 = vshrl.u32 %v5965_v61, %v2032_v12  ;;  %v5312_v26 = vpop.eup %3716  ;;  %v1891_v43 = vand.u32 2147483647, %v1890_v49 }
 0x253   : > { %v1893_v18 = vcvt.s32.f32 %v1886_v53  ;;  %v6029_v30 = vand.u32 2147483647, %v5071_v0  ;;  %v5320_v14 = vsub.s32 %v2180_v5, %v2183_v22  ;;  %vm2049_vm11 = vcmp.lt.s32.totalorder %v5289_v32, 1 }
 0x254   : > { %vm669_vm13 = vcmp.lt.s32.totalorder %v4392_v38, 2  ;;  %v2048_v9 = vor.u32 %v2047_v16, %v2046_v1  ;;  %vm2050_vm12 = vcmp.lt.s32.totalorder %v5289_v32, 2  ;;  %vm2051_vm10 = vcmp.lt.s32.totalorder %v5289_v32, 3 }
 0x255   : > { %vm5316_vm4 = vcmp.le.f32.partialorder %v6029_v30, 0.7853982  ;;  %vm2052_vm15 = vcmp.lt.s32.totalorder %v5289_v32, 4  ;;  %vm667_vm2 = vweird.f32 %v4076_v41  ;;  %v1894_v61 = vmul.f32 %v1893_v18, %v1891_v43 }
 0x256   : > { %v2186_v40 = vsub.s32 0, %v5320_v14  ;;  %v2053_v20 = vsel %vm2049_vm11, %v2033_v59, %v2036_v62  ;;  %v2054_v5 = vsel %vm2052_vm15, %v2042_v37, 2102212464  ;;  %v2207_v12 = vsel %vm2122_vm9, %v2206_v54, %v2182_v25 }
 0x257   : > { %v2055_v29 = vsel %vm2051_vm10, %v2039_v42, %v2054_v5  ;;  %v2057_v57 = vsel %vm2049_vm11, %v2036_v62, %v2039_v42  ;;  %v2058_v36 = vsel %vm2052_vm15, %v2045_v19, 920167782  ;;  %v1895_v53 = vxor.u32 2147483648, %v1894_v61 }
 0x258   : > { %v3215_v35 = vmin.u32 %v2186_v40, %v5320_v14  ;;  %v2059_v47 = vsel %vm2051_vm10, %v2042_v37, %v2058_v36  ;;  %v2061_v59 = vsel %vm2049_vm11, %v2039_v42, %v2042_v37  ;;  %v2056_v25 = vsel %vm2050_vm12, %v2053_v20, %v2055_v29 }
 0x259   : > { %v2060_v6 = vsel %vm2050_vm12, %v2057_v57, %v2059_v47  ;;  %v2062_v62 = vsel %vm2052_vm15, %v2048_v9, 1326507024  ;;  %v672_v49 = vsel %vm670_vm8, %v4544_v17, %v671_v13  ;;  %v1896_v22 = vsel %vm1813_vm0, %v1895_v53, %v1894_v61  ;;  %v6032_v61 = vld [vmem:[#allocation13_spill] sm:$0xff] }
 0x25a   : > { %v2188_v54 = vclz %v3215_v35  ;;  %v2063_v42 = vsel %vm2051_vm10, %v2045_v19, %v2062_v62  ;;  %v675_v37 = vsel %vm673_vm3, %v674_v51, %v4550_v58  ;;  %vm770_vm5 = vweird.f32 %v4074_v39 }
 0x25b   : > { %v1899_v1 = vsel %vm5225_vm1, %v5058_v63, %v1896_v22  ;;  %v2064_v17 = vsel %vm2050_vm12, %v2061_v59, %v2063_v42  ;;  %v5371_v13 = vmul.u32.u64.low %v5285_v4, %v2060_v6  ;;  %v5372_v16 = vmul.u32.u64.high %v5285_v4, %v2060_v6, %v5371_v13  ;;  %v6034_v22 = vld [vmem:[#allocation11_spill] sm:$0xff] }
 0x25c   : > { %v2176_v19 = vadd.s32 %v5249_v44, %v5271_v31  ;;  %v3216_v43 = vadd.s32 4294967294, %v2188_v54  ;;  %v5378_v58 = vmul.u32.u64.low %v5285_v4, %v2064_v17  ;;  %v5379_v51 = vmul.u32.u64.high %v5285_v4, %v2064_v17, %v5378_v58  ;;  %v6035_v54 = vld [vmem:[#allocation15_spill] sm:$0xff] }
 0x25d   : > { %3718 = vcosq.f32 %v1899_v1  ;;  %v2209_v56 = vsel %vm5316_vm4, 0, %v2207_v12  ;;  %v2072_v32 = vmul.u32 %v5285_v4, %v2056_v25  ;;  %v676_v18 = vsel %vm669_vm13, %v672_v49, %v675_v37 }
 0x25e   : > { %vm3217_vm0 = vcmp.lt.s32.totalorder %v3216_v43, 0  ;;  %v677_v30 = vsel %vm667_vm2, nan, %v676_v18  ;;  %vm772_vm1 = vcmp.lt.s32.totalorder %v4333_v33, 2  ;;  %v774_v44 = vxor.u32 2147483648, %v4522_v10 }
 0x25f   : > { %v2191_v31 = vsel %vm3217_vm0, 0, %v3216_v43  ;;  %v2075_v9 = vadd.s32 1, %v5372_v16  ;;  %vm773_vm14 = vcmp.eq.s32.totalorder %v4333_v33, 0  ;;  %v777_v40 = vxor.u32 2147483648, %v6032_v61 }
 0x260   : > { %v2192_v20 = vsub.s32 32, %v2191_v31  ;;  %v2196_v4 = vsub.s32 4294967266, %v2191_v31  ;;  %vm776_vm6 = vcmp.eq.s32.totalorder %v4333_v33, 2  ;;  %v2223_v38 = vmul.f32 0.125, %v677_v30  ;;  %v6036_v33 = vld [vmem:[#allocation21_spill] sm:$0xff]  ;;  %v6040_v30 = vld [vmem:[#allocation14_spill] sm:$0xff] }
 0x261   : > { %v2193_v5 = vshll.u32 %v5320_v14, %v2191_v31  ;;  %vm2074_vm7 = vc.u32 %v5379_v51, %v5371_v13  ;;  %v775_v41 = vsel %vm773_vm14, %v6032_v61, %v774_v44  ;;  %v778_v12 = vsel %vm776_vm6, %v777_v40, %v4522_v10  ;;  %v6033_v10 = vld [vmem:[#allocation22_spill] sm:$0xff]  ;;  %v6041_v44 = vld [vmem:[#allocation20_spill] sm:$0xff] }
 0x262   : > { %v2194_v29 = vshrl.u32 %v2176_v19, %v2192_v20  ;;  %v2197_v57 = vadd.s32 127, %v2196_v4  ;;  %v2076_v36 = vsel %vm2074_vm7, %v2075_v9, %v5372_v16  ;;  %v779_v53 = vsel %vm772_vm1, %v775_v41, %v778_v12  ;;  %v6043_v4 = vld [vmem:[#allocation16_spill] sm:$0xff] }
 0x263   : > { %3720 = vsinq.f32 %v1899_v1  ;;  %v5402_v35 = vand.u32 3, %v2209_v56  ;;  %v2077_v47 = vadd.s32 %v2076_v36, %v2072_v32  ;;  %v780_v14 = vsel %vm770_vm5, nan, %v779_v53 }
 0x264   : > { %v2195_v59 = vor.u32 %v2194_v29, %v2193_v5  ;;  %v2198_v25 = vshll.u32 %v2197_v57, 23  ;;  %vm2019_vm8 = vcmp.lt.s32.totalorder %v5139_v27, 0  ;;  %v2224_v6 = vmul.f32 0.125, %v780_v14  ;;  %v6044_v57 = vld [vmem:[#allocation10_spill] sm:$0xff] }
 0x265   : > { %v877_v62 = vxor.u32 2147483648, %v6033_v10  ;;  %v2078_v49 = vadd.s32 536870912, %v2077_v47  ;;  %vm873_vm3 = vweird.f32 %v6034_v22  ;;  %vm876_vm11 = vcmp.eq.s32.totalorder %v6035_v54, 0 }
 0x266   : > { %v880_v42 = vxor.u32 2147483648, %v6036_v33  ;;  %v2199_v37 = vor.u32 4788187, %v2198_v25  ;;  %v2304_v1 = vpack.c.bf16 %v2224_v6, %v2223_v38  ;;  %vm879_vm13 = vcmp.eq.s32.totalorder %v6035_v54, 2 }
 0x267   : > { %v878_v17 = vsel %vm876_vm11, %v6036_v33, %v877_v62  ;;  %v5413_v39 = vpop.eup %3718  ;;  %v2202_v16 = vcvt.s32.f32 %v2195_v59  ;;  %v6037_v19 = vand.u32 2147483647, %v5139_v27  ;;  %v2079_v58 = vshrl.u32 %v2078_v49, 30 }
 0x268   : > { %vm875_vm10 = vcmp.lt.s32.totalorder %v6035_v54, 2  ;;  %v881_v56 = vsel %vm879_vm13, %v880_v42, %v6033_v10  ;;  %v2200_v32 = vand.u32 2147483647, %v2199_v37  ;;  %3344 = vmatpush3.bf16.msra.mxu0 %v2304_v1  ;;  %3499 = vmatpush3.bf16.msra.mxu1 %v2304_v1  ;;  %vm979_vm15 = vcmp.eq.s32.totalorder %v6040_v30, 0 }
 0x269   : > { %vm5417_vm12 = vcmp.le.f32.partialorder %v6037_v19, 0.7853982  ;;  %v882_v18 = vsel %vm875_vm10, %v878_v17, %v881_v56  ;;  %v980_v31 = vxor.u32 2147483648, %v6041_v44  ;;  %v2080_v9 = vshll.u32 %v2079_v58, 30  ;;  %v6046_v19 = vld [vmem:[#allocation24_spill] sm:$0xff]  ;;  %v6047_v56 = vld [vmem:[#allocation23_spill] sm:$0xff] }
 0x26a   : > { %v2103_v61 = vsub.s32 4, %v2079_v58  ;;  %v6042_v40 = vmov 0.0   ;;  %v883_v20 = vsel %vm873_vm3, nan, %v882_v18  ;;  %v983_v38 = vxor.u32 2147483648, %v6043_v4 }
 0x26b   : > { %3345 = vmatprep.subr.bf16.mxu0 %v6042_v40  ;;  %3492 = vmatprep.subr.bf16.mxu1 %v6042_v40  ;;  %v2203_v5 = vmul.f32 %v2202_v16, %v2200_v32  ;;  %v5432_v41 = vadd.s32 %v5371_v13, %v5379_v51  ;;  %v981_v12 = vsel %vm979_vm15, %v6043_v4, %v980_v31  ;;  %vm982_vm2 = vcmp.eq.s32.totalorder %v6040_v30, 2  ;;  %v6048_v31 = vld [vmem:[#allocation26_spill] sm:$0xff] }
 0x26c   : > { %v5436_v29 = vsub.s32 %v2077_v47, %v2080_v9  ;;  %vm976_vm5 = vweird.f32 %v6044_v57  ;;  %vm978_vm0 = vcmp.lt.s32.totalorder %v6040_v30, 2  ;;  %v984_v36 = vsel %vm982_vm2, %v983_v38, %v6041_v44 }
 0x26d   : > { %v2204_v53 = vxor.u32 2147483648, %v2203_v5  ;;  %v985_v14 = vsel %vm978_vm0, %v981_v12, %v984_v36  ;;  %v2225_v59 = vmul.f32 0.125, %v883_v20  ;;  %vm1079_vm1 = vweird.f32 %v4252_v21  ;;  %v5442_v25 = vpop.eup %3720 }
 0x26e   : > { %v2083_v13 = vsub.s32 0, %v5436_v29  ;;  %v5447_v51 = vsel %vm2019_vm8, %v2103_v61, %v2079_v58  ;;  %v986_v47 = vsel %vm976_vm5, nan, %v985_v14  ;;  %v1083_v6 = vxor.u32 2147483648, %v4818_v3  ;;  %v6050_v14 = vld [vmem:[#allocation28_spill] sm:$0xff] }
 0x26f   : > { %v2205_v10 = vsel %vm2122_vm9, %v2204_v53, %v2203_v5  ;;  %v2226_v62 = vmul.f32 0.125, %v986_v47  ;;  %vm1082_vm14 = vcmp.eq.s32.totalorder %v4761_v11, 0  ;;  %v1086_v49 = vxor.u32 2147483648, %v4804_v15  ;;  %v6049_v53 = vld [vmem:[#allocation25_spill] sm:$0xff] }
 0x270   : > { %v2208_v22 = vsel %vm5316_vm4, %v5071_v0, %v2205_v10  ;;  %v3211_v54 = vmin.u32 %v2083_v13, %v5436_v29  ;;  %v1084_v33 = vsel %vm1082_vm14, %v4804_v15, %v1083_v6  ;;  %vm1085_vm6 = vcmp.eq.s32.totalorder %v4761_v11, 2  ;;  %v6051_v10 = vld [vmem:[#allocation27_spill] sm:$0xff] }
 0x271   : > { %v2106_v42 = vsel %vm5417_vm12, 0, %v5447_v51  ;;  %v2305_v37 = vpack.c.bf16 %v2226_v62, %v2225_v59  ;;  %vm1081_vm9 = vcmp.lt.s32.totalorder %v4761_v11, 2  ;;  %v1087_v1 = vsel %vm1085_vm6, %v1086_v49, %v4818_v3 }
 0x272   : > { %3722 = vcosq.f32 %v2208_v22  ;;  %v2085_v17 = vclz %v3211_v54  ;;  %v1088_v16 = vsel %vm1081_vm9, %v1084_v33, %v1087_v1  ;;  %vm1182_vm4 = vweird.f32 %v4245_v8  ;;  %v6052_v33 = vld [vmem:[#allocation12_spill] sm:$0xff] }
 0x273   : > { %3346 = vmatpush3.bf16.msra.mxu0 %v2305_v37  ;;  %3500 = vmatpush3.bf16.msra.mxu1 %v2305_v37  ;;  %v1089_v15 = vsel %vm1079_vm1, nan, %v1088_v16  ;;  %vm1184_vm7 = vcmp.lt.s32.totalorder %v6045_v7, 2  ;;  %v1186_v58 = vxor.u32 2147483648, %v6046_v19  ;;  %v1189_v32 = vxor.u32 2147483648, %v6047_v56 }
 0x274   : > { %v3212_v18 = vadd.s32 4294967294, %v2085_v17  ;;  %3347 = vmatprep.subr.bf16.mxu0 %v6042_v40  ;;  %3493 = vmatprep.subr.bf16.mxu1 %v6042_v40  ;;  %vm1185_vm3 = vcmp.eq.s32.totalorder %v6045_v7, 0  ;;  %vm1188_vm11 = vcmp.eq.s32.totalorder %v6045_v7, 2  ;;  %v2227_v11 = vmul.f32 0.125, %v1089_v15  ;;  %v6053_v17 = vld [vmem:[#allocation30_spill] sm:$0xff] }
 0x275   : > { %v1187_v3 = vsel %vm1185_vm3, %v6047_v56, %v1186_v58  ;;  %v1190_v21 = vsel %vm1188_vm11, %v1189_v32, %v6046_v19  ;;  %vm1285_vm13 = vweird.f32 %v4514_v52  ;;  %v1289_v30 = vxor.u32 2147483648, %v5078_v45  ;;  %v6054_v15 = vld [vmem:[#allocation34_spill] sm:$0xff] }
 0x276   : > { %vm3213_vm10 = vcmp.lt.s32.totalorder %v3212_v18, 0  ;;  %v1191_v44 = vsel %vm1184_vm7, %v1187_v3, %v1190_v21  ;;  %vm1288_vm15 = vcmp.eq.s32.totalorder %v6048_v31, 0  ;;  %v1292_v9 = vxor.u32 2147483648, %v5065_v23  ;;  %v6056_v3 = vld [vmem:[#allocation33_spill] sm:$0xff] }
 0x277   : > { %v2088_v61 = vsel %vm3213_vm10, 0, %v3212_v18  ;;  %v1192_v20 = vsel %vm1182_vm4, nan, %v1191_v44  ;;  %vm1287_vm2 = vcmp.lt.s32.totalorder %v6048_v31, 2  ;;  %v1290_v4 = vsel %vm1288_vm15, %v5065_v23, %v1289_v30  ;;  %v6057_v30 = vld [vmem:[#allocation32_spill] sm:$0xff] }
 0x278   : > { %v2089_v38 = vsub.s32 32, %v2088_v61  ;;  %v2093_v5 = vsub.s32 4294967266, %v2088_v61  ;;  %v2228_v12 = vmul.f32 0.125, %v1192_v20  ;;  %vm1291_vm5 = vcmp.eq.s32.totalorder %v6048_v31, 2 }
 0x279   : > { %v2090_v57 = vshll.u32 %v5436_v29, %v2088_v61  ;;  %v1293_v36 = vsel %vm1291_vm5, %v1292_v9, %v5078_v45  ;;  %vm1391_vm0 = vcmp.eq.s32.totalorder %v6049_v53, 0  ;;  %v1392_v59 = vxor.u32 2147483648, %v6050_v14 }
 0x27a   : > { %v2091_v8 = vshrl.u32 %v5432_v41, %v2089_v38  ;;  %v2094_v13 = vadd.s32 127, %v2093_v5  ;;  %v2306_v47 = vpack.c.bf16 %v2228_v12, %v2227_v11  ;;  %v1294_v6 = vsel %vm1287_vm2, %v1290_v4, %v1293_v36  ;;  %v6055_v11 = vld [vmem:[#allocation29_spill] sm:$0xff] }
 0x27b   : > { %3724 = vsinq.f32 %v2208_v22  ;;  %v1295_v23 = vsel %vm1285_vm13, nan, %v1294_v6  ;;  %v1393_v62 = vsel %vm1391_vm0, %v6051_v10, %v1392_v59  ;;  %v1395_v49 = vxor.u32 2147483648, %v6051_v10  ;;  %v6058_v5 = vld [vmem:[#allocation17_spill] sm:$0xff] }
 0x27c   : > { %v5495_v29 = vpop.eup %3722  ;;  %v2092_v45 = vor.u32 %v2091_v8, %v2090_v57  ;;  %v2095_v54 = vshll.u32 %v2094_v13, 23  ;;  %3348 = vmatpush3.bf16.msra.mxu0 %v2306_v47  ;;  %3501 = vmatpush3.bf16.msra.mxu1 %v2306_v47  ;;  %vm1388_vm1 = vweird.f32 %v6052_v33  ;;  %vm1394_vm14 = vcmp.eq.s32.totalorder %v6049_v53, 2  ;;  %v6059_v13 = vld [vmem:[#allocation35_spill] sm:$0xff] }
 0x27d   : > { %3349 = vmatprep.subr.bf16.mxu0 %v6042_v40  ;;  %3494 = vmatprep.subr.bf16.mxu1 %v6042_v40  ;;  %vm1390_vm6 = vcmp.lt.s32.totalorder %v6049_v53, 2  ;;  %v1396_v52 = vsel %vm1394_vm14, %v1395_v49, %v6050_v14  ;;  %v2229_v41 = vmul.f32 0.125, %v1295_v23  ;;  %v1495_v22 = vxor.u32 2147483648, %v5164_v2  ;;  %v6060_v49 = vld [vmem:[#allocation37_spill] sm:$0xff]  ;;  %v6061_v33 = vld [vmem:[#allocation31_spill] sm:$0xff] }
 0x27e   : > { %v2096_v37 = vor.u32 4788187, %v2095_v54  ;;  %v1397_v1 = vsel %vm1390_vm6, %v1393_v62, %v1396_v52  ;;  %vm1491_vm9 = vweird.f32 %v4612_v55  ;;  %vm1494_vm4 = vcmp.eq.s32.totalorder %v6053_v17, 0  ;;  %v6062_v52 = vld [vmem:[#allocation36_spill] sm:$0xff] }
 0x27f   : > { %v1398_v16 = vsel %vm1388_vm1, nan, %v1397_v1  ;;  %vm1493_vm7 = vcmp.lt.s32.totalorder %v6053_v17, 2  ;;  %v1496_v7 = vsel %vm1494_vm4, %v6054_v15, %v1495_v22  ;;  %v1498_v19 = vxor.u32 2147483648, %v6054_v15 }
 0x280   : > { %v2097_v58 = vand.u32 2147483647, %v2096_v37  ;;  %v2099_v56 = vcvt.s32.f32 %v2092_v45  ;;  %v2230_v32 = vmul.f32 0.125, %v1398_v16  ;;  %vm1497_vm3 = vcmp.eq.s32.totalorder %v6053_v17, 2 }
 0x281   : > { %v1499_v18 = vsel %vm1497_vm3, %v1498_v19, %v5164_v2  ;;  %vm1597_vm11 = vcmp.eq.s32.totalorder %v6055_v11, 0  ;;  %v1598_v21 = vxor.u32 2147483648, %v6056_v3  ;;  %v1601_v44 = vxor.u32 2147483648, %v6057_v30 }
 0x282   : > { %v2100_v31 = vmul.f32 %v2099_v56, %v2097_v58  ;;  %v2307_v9 = vpack.c.bf16 %v2230_v32, %v2229_v41  ;;  %v1500_v61 = vsel %vm1493_vm7, %v1496_v7, %v1499_v18  ;;  %vm1600_vm13 = vcmp.eq.s32.totalorder %v6055_v11, 2 }
 0x283   : > { %v1501_v20 = vsel %vm1491_vm9, nan, %v1500_v61  ;;  %vm1596_vm10 = vcmp.lt.s32.totalorder %v6055_v11, 2  ;;  %v1599_v4 = vsel %vm1597_vm11, %v6057_v30, %v1598_v21  ;;  %v1602_v2 = vsel %vm1600_vm13, %v1601_v44, %v6056_v3 }
 0x284   : > { %v2101_v38 = vxor.u32 2147483648, %v2100_v31  ;;  %3350 = vmatpush3.bf16.msra.mxu0 %v2307_v9  ;;  %3502 = vmatpush3.bf16.msra.mxu1 %v2307_v9  ;;  %vm1594_vm15 = vweird.f32 %v6058_v5  ;;  %v1603_v12 = vsel %vm1596_vm10, %v1599_v4, %v1602_v2  ;;  %v2231_v57 = vmul.f32 0.125, %v1501_v20 }
 0x285   : > { %v5521_v36 = vpop.eup %3724  ;;  %3351 = vmatprep.subr.bf16.mxu0 %v6042_v40  ;;  %3495 = vmatprep.subr.bf16.mxu1 %v6042_v40  ;;  %v1604_v55 = vsel %vm1594_vm15, nan, %v1603_v12  ;;  %vm1697_vm2 = vweird.f32 %v4623_v46  ;;  %v1701_v53 = vxor.u32 2147483648, %v5306_v60  ;;  %v1704_v14 = vxor.u32 2147483648, %v5300_v24  ;;  %v3631_v12 = vld [vmem:[%s5889_s3] sm:$0xff]  }
 0x286   : > { %v2102_v59 = vsel %vm2019_vm8, %v2101_v38, %v2100_v31  ;;  %v2232_v8 = vmul.f32 0.125, %v1604_v55  ;;  %vm1700_vm5 = vcmp.eq.s32.totalorder %v6059_v13, 0  ;;  %vm1703_vm0 = vcmp.eq.s32.totalorder %v6059_v13, 2  ;;  %v3636_v55 = vld [vmem:[%s5889_s3 + $0x90] sm:$0xff]  }
 0x287   : > { %v2105_v47 = vsel %vm5417_vm12, %v5139_v27, %v2102_v59  ;;  %vm1699_vm1 = vcmp.lt.s32.totalorder %v6059_v13, 2  ;;  %v1702_v6 = vsel %vm1700_vm5, %v5300_v24, %v1701_v53  ;;  %v1705_v23 = vsel %vm1703_vm0, %v1704_v14, %v5306_v60  ;;  %v6063_v60 = vld [vmem:[#allocation19_spill] sm:$0xff]  ;;  %v3637_v53 = vld [vmem:[%s5889_s3 + $0x18] sm:$0xff]   ;;  %v3639_v59 = vld [vmem:[%s5889_s3 + $0x20] sm:$0xff]  }
 0x288   : > { %3726 = vcosq.f32 %v2105_v47  ;;  %v2308_v10 = vpack.c.bf16 %v2232_v8, %v2231_v57  ;;  %v1706_v62 = vsel %vm1699_vm1, %v1702_v6, %v1705_v23  ;;  %v1804_v45 = vxor.u32 2147483648, %v6060_v49  ;;  %v3634_v57 = vld [vmem:[%s5889_s3 + $0x88] sm:$0xff]   ;;  %v3638_v14 = vld [vmem:[%s5889_s3 + $0x98] sm:$0xff]   ;;  %v3640_v8 = vld [vmem:[%s5889_s3 + $0xa0] sm:$0xff]  }
 0x289   : > { %3728 = vsinq.f32 %v2105_v47  ;;  %v1707_v54 = vsel %vm1697_vm2, nan, %v1706_v62  ;;  %vm1803_vm8 = vcmp.eq.s32.totalorder %v6061_v33, 0  ;;  %v1807_v41 = vxor.u32 2147483648, %v6062_v52  ;;  %v3641_v13 = vld [vmem:[%s5889_s3 + $0x28] sm:$0xff]   ;;  %v3643_v6 = vld [vmem:[%s5889_s3 + $0x30] sm:$0xff]   ;;  %v3646_v62 = vld [vmem:[%s5889_s3 + $0xb8] sm:$0xff]  }
 0x28a   : > { %v5547_v24 = vand.u32 3, %v2106_v42  ;;  %3352 = vmatpush3.bf16.msra.mxu0 %v2308_v10  ;;  %3503 = vmatpush3.bf16.msra.mxu1 %v2308_v10  ;;  %vm1800_vm14 = vweird.f32 %v6063_v60  ;;  %v1805_v22 = vsel %vm1803_vm8, %v6062_v52, %v1804_v45  ;;  %vm1806_vm6 = vcmp.eq.s32.totalorder %v6061_v33, 2  ;;  %v3642_v47 = vld [vmem:[%s5889_s3 + $0xa8] sm:$0xff]   ;;  %v3644_v23 = vld [vmem:[%s5889_s3 + $0xb0] sm:$0xff]   ;;  %v3645_v10 = vld [vmem:[%s5889_s3 + $0x38] sm:$0xff]  }
 0x28b   : > { %3353 = vmatprep.subr.bf16.mxu0 %v6042_v40  ;;  %3496 = vmatprep.subr.bf16.mxu1 %v6042_v40  ;;  %vm1802_vm9 = vcmp.lt.s32.totalorder %v6061_v33, 2  ;;  %v1808_v46 = vsel %vm1806_vm6, %v1807_v41, %v6060_v49  ;;  %v2233_v43 = vmul.f32 0.125, %v1707_v54  ;;  %v1907_v51 = vxor.u32 2147483648, %v5442_v25  ;;  %v3647_v49 = vld [vmem:[%s5889_s3 + $0x40] sm:$0xff]   ;;  %v3649_v54 = vld [vmem:[%s5889_s3 + $0x48] sm:$0xff]   ;;  %v3651_v52 = vld [vmem:[%s5889_s3 + $0x50] sm:$0xff]  }
 0x28c   : > { %v1809_v42 = vsel %vm1802_vm9, %v1805_v22, %v1808_v46  ;;  %vm1905_vm12 = vcmp.lt.s32.totalorder %v5279_v50, 2  ;;  %vm1906_vm4 = vcmp.eq.s32.totalorder %v5279_v50, 0  ;;  %v1910_v37 = vxor.u32 2147483648, %v5413_v39  ;;  %v3648_v45 = vld [vmem:[%s5889_s3 + $0xc0] sm:$0xff]   ;;  %v3650_v33 = vld [vmem:[%s5889_s3 + $0xc8] sm:$0xff]   ;;  %v3652_v41 = vld [vmem:[%s5889_s3 + $0xd0] sm:$0xff]  }
 0x28d   : > { %v1810_v1 = vsel %vm1800_vm14, nan, %v1809_v42  ;;  %v1908_v17 = vsel %vm1906_vm4, %v5413_v39, %v1907_v51  ;;  %vm1909_vm7 = vcmp.eq.s32.totalorder %v5279_v50, 2  ;;  %v2010_v16 = vxor.u32 2147483648, %v5312_v26  ;;  %v3654_v60 = vld [vmem:[%s5889_s3 + $0xd8] sm:$0xff]   ;;  %v3655_v22 = vld [vmem:[%s5889_s3 + $0x60] sm:$0xff]   ;;  %v3658_v51 = vld [vmem:[%s5889_s3 + $0xe8] sm:$0xff]  }
 0x28e   : > { %v2234_v15 = vmul.f32 0.125, %v1810_v1  ;;  %v1911_v7 = vsel %vm1909_vm7, %v1910_v37, %v5442_v25  ;;  %vm2009_vm3 = vcmp.eq.s32.totalorder %v5275_v34, 0  ;;  %v2013_v19 = vxor.u32 2147483648, %v5308_v48  ;;  %v3656_v46 = vld [vmem:[%s5889_s3 + $0xe0] sm:$0xff]   ;;  %v3659_v42 = vld [vmem:[%s5889_s3 + $0x70] sm:$0xff]   ;;  %v3661_v1 = vld [vmem:[%s5889_s3 + $0x78] sm:$0xff]  }
 0x28f   : > { %vm1903_vm11 = vweird.f32 %v5058_v63  ;;  %v1912_v58 = vsel %vm1905_vm12, %v1908_v17, %v1911_v7  ;;  %v2011_v56 = vsel %vm2009_vm3, %v5308_v48, %v2010_v16  ;;  %vm2012_vm13 = vcmp.eq.s32.totalorder %v5275_v34, 2  ;;  %v3660_v37 = vld [vmem:[%s5889_s3 + $0xf0] sm:$0xff]   ;;  %v3662_v17 = vld [vmem:[%s5889_s3 + $0xf8] sm:$0xff]   ;;  %v3663_v16 = vld [vmem:[%s5889_s3 + $0x100] ss:$0 sps:$4 sm:$0xff]  }
 0x290   : > { %v2309_v32 = vpack.c.bf16 %v2234_v15, %v2233_v43  ;;  %v1913_v39 = vsel %vm1903_vm11, nan, %v1912_v58  ;;  %vm2008_vm10 = vcmp.lt.s32.totalorder %v5275_v34, 2  ;;  %v2014_v50 = vsel %vm2012_vm13, %v2013_v19, %v5312_v26  ;;  %v3657_v43 = vld [vmem:[%s5889_s3 + $0x68] sm:$0xff]  }
 0x291   : > { %vm2006_vm15 = vweird.f32 %v4877_v28  ;;  %v2015_v25 = vsel %vm2008_vm10, %v2011_v56, %v2014_v50  ;;  %v2235_v18 = vmul.f32 0.125, %v1913_v39  ;;  %vm2112_vm2 = vcmp.eq.s32.totalorder %v5547_v24, 0 }
 0x292   : > { %v3727_v11 = vpop.eup %3726  ;;  %3354 = vmatpush3.bf16.msra.mxu0 %v2309_v32  ;;  %3504 = vmatpush3.bf16.msra.mxu1 %v2309_v32  ;;  %v2016_v3 = vsel %vm2006_vm15, nan, %v2015_v25  ;;  %vm2115_vm5 = vcmp.eq.s32.totalorder %v5547_v24, 2  ;;  %v2216_v63 = vxor.u32 2147483648, %v5521_v36  ;;  %vm2215_vm0 = vcmp.eq.s32.totalorder %v5402_v35, 0 }
 0x293   : > { %v3729_v48 = vpop.eup %3728  ;;  %3355 = vmatprep.subr.bf16.mxu0 %v6042_v40  ;;  %3497 = vmatprep.subr.bf16.mxu1 %v6042_v40  ;;  %v2236_v34 = vmul.f32 0.125, %v2016_v3  ;;  %v2116_v26 = vxor.u32 2147483648, %v3727_v11  ;;  %v2219_v28 = vxor.u32 2147483648, %v5495_v29  ;;  %vm2218_vm1 = vcmp.eq.s32.totalorder %v5402_v35, 2 }
 0x294   : > { %v2113_v21 = vxor.u32 2147483648, %v3729_v48  ;;  %v2217_v30 = vsel %vm2215_vm0, %v5495_v29, %v2216_v63  ;;  %vm2214_vm8 = vcmp.lt.s32.totalorder %v5402_v35, 2  ;;  %vm3862_vm14 = vmmov 0  }
 0x295   : > { %v2310_v44 = vpack.c.bf16 %v2236_v34, %v2235_v18  ;;  %v2117_v31 = vsel %vm2115_vm5, %v2116_v26, %v3729_v48  ;;  %v2220_v9 = vsel %vm2218_vm1, %v2219_v28, %v5521_v36  ;;  %3359 = vmatprep.mubr.msk.bf16.mxu0 %vm3862_vm14, %v6042_v40  ;;  %3423 = vmatprep.mubr.msk.bf16.mxu1 %vm3862_vm14, %v6042_v40  ;;  %vm2111_vm6 = vcmp.lt.s32.totalorder %v5547_v24, 2  ;;  %v3635_v36 = vld [vmem:[%s5889_s3 + $0x10] sm:$0xff]   ;;  %v3653_v24 = vld [vmem:[%s5889_s3 + $0x58] sm:$0xff]  }
 0x296   : > { %v2114_v29 = vsel %vm2112_vm2, %v3727_v11, %v2113_v21  ;;  %vm2212_vm9 = vweird.f32 %v5071_v0  ;;  %v2221_v61 = vsel %vm2214_vm8, %v2217_v30, %v2220_v9  ;;  %vm2109_vm12 = vweird.f32 %v5139_v27  ;;  %v3632_v0 = vld [vmem:[%s5889_s3 + $0x80] sm:$0xff]   ;;  %v3633_v27 = vld [vmem:[%s5889_s3 + $0x8] sm:$0xff]  }
 0x297   : > { %3356 = vmatpush3.bf16.msra.mxu0 %v2310_v44  ;;  %3505 = vmatpush3.bf16.msra.mxu1 %v2310_v44  ;;  %v2118_v35 = vsel %vm2111_vm6, %v2114_v29, %v2117_v31  ;;  %v2222_v20 = vsel %vm2212_vm9, nan, %v2221_v61 }
 0x298   : > { %3357 = vmatprep.subr.bf16.mxu0 %v6042_v40  ;;  %3498 = vmatprep.subr.bf16.mxu1 %v6042_v40  ;;  %v2119_v4 = vsel %vm2109_vm12, nan, %v2118_v35  ;;  %v2238_v2 = vmul.f32 0.125, %v2222_v20 }
 0x299   : > { %v2237_v38 = vmul.f32 0.125, %v2119_v4 }
 0x29b   : > { %v2311_v5 = vpack.c.bf16 %v2238_v2, %v2237_v38 }
 0x29d   : > { %3358 = vmatpush3.bf16.msra.mxu0 %v2311_v5  ;;  %3506 = vmatpush3.bf16.msra.mxu1 %v2311_v5 }
 0x2a0   : > { %3360 = vmatmul.mubr.bf16.vlgmr.msra.gmra.mrb[16].mxu0 %v3631_v12  ;;  %3424 = vmatmul.mubr.bf16.vlgmr.msra.gmra.mrb[0].mxu1 %v3632_v0 }
 0x2a1   : > { %3363 = vmatprep.mubr.msk.bf16.mxu0 %vm3862_vm14, %v6042_v40  ;;  %3427 = vmatprep.mubr.msk.bf16.mxu1 %vm3862_vm14, %v6042_v40 }
 0x2a8   : > { %3364 = vmatmul.mubr.bf16.gmra.mrb[20].mxu0 %v3633_v27  ;;  %3428 = vmatmul.mubr.bf16.gmra.mrb[4].mxu1 %v3634_v57 }
 0x2a9   : > { %3367 = vmatprep.mubr.msk.bf16.mxu0 %vm3862_vm14, %v6042_v40  ;;  %3431 = vmatprep.mubr.msk.bf16.mxu1 %vm3862_vm14, %v6042_v40 }
 0x2b0   : > { %3368 = vmatmul.mubr.bf16.gmra.mrb[24].mxu0 %v3635_v36  ;;  %3432 = vmatmul.mubr.bf16.gmra.mrb[8].mxu1 %v3636_v55 }
 0x2b1   : > { %3371 = vmatprep.mubr.msk.bf16.mxu0 %vm3862_vm14, %v6042_v40  ;;  %3435 = vmatprep.mubr.msk.bf16.mxu1 %vm3862_vm14, %v6042_v40 }
 0x2b8   : > { %3372 = vmatmul.mubr.bf16.gmra.mrb[28].mxu0 %v3637_v53  ;;  %3436 = vmatmul.mubr.bf16.gmra.mrb[12].mxu1 %v3638_v14 }
 0x2b9   : > { %3375 = vmatprep.mubr.msk.bf16.mxu0 %vm3862_vm14, %v6042_v40  ;;  %3439 = vmatprep.mubr.msk.bf16.mxu1 %vm3862_vm14, %v6042_v40 }
 0x2c0   : > { %3376 = vmatmul.mubr.bf16.gmra.mrb[32].mxu0 %v3639_v59  ;;  %3440 = vmatmul.mubr.bf16.gmra.mrb[16].mxu1 %v3640_v8 }
 0x2c1   : > { %3379 = vmatprep.mubr.msk.bf16.mxu0 %vm3862_vm14, %v6042_v40  ;;  %3443 = vmatprep.mubr.msk.bf16.mxu1 %vm3862_vm14, %v6042_v40 }
 0x2c8   : > { %3380 = vmatmul.mubr.bf16.gmra.mrb[36].mxu0 %v3641_v13  ;;  %3444 = vmatmul.mubr.bf16.gmra.mrb[20].mxu1 %v3642_v47 }
 0x2c9   : > { %3383 = vmatprep.mubr.msk.bf16.mxu0 %vm3862_vm14, %v6042_v40  ;;  %3447 = vmatprep.mubr.msk.bf16.mxu1 %vm3862_vm14, %v6042_v40 }
 0x2d0   : > { %3384 = vmatmul.mubr.bf16.gmra.mrb[40].mxu0 %v3643_v6  ;;  %3448 = vmatmul.mubr.bf16.gmra.mrb[24].mxu1 %v3644_v23 }
 0x2d1   : > { %3387 = vmatprep.mubr.msk.bf16.mxu0 %vm3862_vm14, %v6042_v40  ;;  %3451 = vmatprep.mubr.msk.bf16.mxu1 %vm3862_vm14, %v6042_v40 }
 0x2d8   : > { %3388 = vmatmul.mubr.bf16.gmra.mrb[44].mxu0 %v3645_v10  ;;  %3452 = vmatmul.mubr.bf16.gmra.mrb[28].mxu1 %v3646_v62 }
 0x2d9   : > { %3391 = vmatprep.mubr.msk.bf16.mxu0 %vm3862_vm14, %v6042_v40  ;;  %3455 = vmatprep.mubr.msk.bf16.mxu1 %vm3862_vm14, %v6042_v40 }
 0x2e0   : > { %3392 = vmatmul.mubr.bf16.gmra.mrb[48].mxu0 %v3647_v49  ;;  %3456 = vmatmul.mubr.bf16.gmra.mrb[32].mxu1 %v3648_v45 }
 0x2e1   : > { %3395 = vmatprep.mubr.msk.bf16.mxu0 %vm3862_vm14, %v6042_v40  ;;  %3459 = vmatprep.mubr.msk.bf16.mxu1 %vm3862_vm14, %v6042_v40 }
 0x2e8   : > { %3396 = vmatmul.mubr.bf16.gmra.mrb[52].mxu0 %v3649_v54  ;;  %3460 = vmatmul.mubr.bf16.gmra.mrb[36].mxu1 %v3650_v33 }
 0x2e9   : > { %3399 = vmatprep.mubr.msk.bf16.mxu0 %vm3862_vm14, %v6042_v40  ;;  %3463 = vmatprep.mubr.msk.bf16.mxu1 %vm3862_vm14, %v6042_v40 }
 0x2f0   : > { %3400 = vmatmul.mubr.bf16.gmra.mrb[56].mxu0 %v3651_v52  ;;  %3464 = vmatmul.mubr.bf16.gmra.mrb[40].mxu1 %v3652_v41 }
 0x2f1   : > { %3403 = vmatprep.mubr.msk.bf16.mxu0 %vm3862_vm14, %v6042_v40  ;;  %3467 = vmatprep.mubr.msk.bf16.mxu1 %vm3862_vm14, %v6042_v40 }
 0x2f8   : > { %3404 = vmatmul.mubr.bf16.gmra.mrb[60].mxu0 %v3653_v24  ;;  %3468 = vmatmul.mubr.bf16.gmra.mrb[44].mxu1 %v3654_v60 }
 0x2f9   : > { %3407 = vmatprep.mubr.msk.bf16.mxu0 %vm3862_vm14, %v6042_v40  ;;  %3471 = vmatprep.mubr.msk.bf16.mxu1 %vm3862_vm14, %v6042_v40 }
 0x300   : > { %3408 = vmatmul.mubr.bf16.gmra.mrb[64].mxu0 %v3655_v22  ;;  %3472 = vmatmul.mubr.bf16.gmra.mrb[48].mxu1 %v3656_v46 }
 0x301   : > { %3411 = vmatprep.mubr.msk.bf16.mxu0 %vm3862_vm14, %v6042_v40  ;;  %3475 = vmatprep.mubr.msk.bf16.mxu1 %vm3862_vm14, %v6042_v40 }
 0x308   : > { %3412 = vmatmul.mubr.bf16.gmra.mrb[68].mxu0 %v3657_v43  ;;  %3476 = vmatmul.mubr.bf16.gmra.mrb[52].mxu1 %v3658_v51 }
 0x309   : > { %3415 = vmatprep.mubr.msk.bf16.mxu0 %vm3862_vm14, %v6042_v40  ;;  %3479 = vmatprep.mubr.msk.bf16.mxu1 %vm3862_vm14, %v6042_v40 }
 0x310   : > { %3416 = vmatmul.mubr.bf16.gmra.mrb[72].mxu0 %v3659_v42  ;;  %3480 = vmatmul.mubr.bf16.gmra.mrb[56].mxu1 %v3660_v37 }
 0x311   : > { %3419 = vmatprep.mubr.msk.bf16.mxu0 %vm3862_vm14, %v6042_v40  ;;  %3483 = vmatprep.mubr.msk.bf16.mxu1 %vm3862_vm14, %v6042_v40 }
 0x318   : > { %3420 = vmatmul.mubr.bf16.gmra.mrb[76].mxu0 %v3661_v1  ;;  %3484 = vmatmul.mubr.bf16.gmra.mrb[60].mxu1 %v3662_v17 }
 0x319   : > { %3487 = vmatprep.mubr.msk.bf16.mxu1 %vm3862_vm14, %v6042_v40 }
 0x320   : > { %3488 = vmatmul.mubr.bf16.gmra.mrb[64].mxu1 %v3663_v16 }
 0x373   : > { %v2542_v15 = vpop.f32.mrb[16].mxu0  ;;  %v5759_v7 = vpop.f32.mrb[0].mxu1 }
 0x374   : > { %2804 = vst [vmem:[%s253_s20] sm:$0xf] %v2542_v15  ;;  %v3361_v19 = vpop.f32.mrb[17].mxu0  ;;  %v3425_v58 = vpop.f32.mrb[1].mxu1 }
 0x375   : > { %v2545_v56 = vpop.f32.mrb[18].mxu0  ;;  %v2673_v40 = vpop.f32.mrb[2].mxu1 }
 0x376   : > { %v3362_v32 = vpop.f32.mrb[19].mxu0  ;;  %v3426_v39 = vpop.f32.mrb[3].mxu1  ;;  %v2805_v18 = vmul.f32 %v2545_v56, %v2545_v56  ;;  %v2879_v11 = vmul.f32 %v2673_v40, %v2673_v40 }
 0x37b   : > { %v2550_v50 = vpop.f32.mrb[20].mxu0  ;;  %v2678_v25 = vpop.f32.mrb[4].mxu1 }
 0x37c   : > { %v2806_v3 = vmul.f32 %v2550_v50, %v2550_v50  ;;  %v2880_v63 = vmul.f32 %v2678_v25, %v2678_v25  ;;  %v3365_v48 = vpop.f32.mrb[21].mxu0  ;;  %v3429_v34 = vpop.f32.mrb[5].mxu1 }
 0x37d   : > { %v2553_v26 = vpop.f32.mrb[22].mxu0  ;;  %v2681_v28 = vpop.f32.mrb[6].mxu1 }
 0x37e   : > { %v2821_v21 = vadd.f32 %v2806_v3, %v2805_v18  ;;  %v2895_v30 = vadd.f32 %v2880_v63, %v2879_v11  ;;  %v2807_v44 = vmul.f32 %v2553_v26, %v2553_v26  ;;  %v2881_v31 = vmul.f32 %v2681_v28, %v2681_v28  ;;  %v3366_v9 = vpop.f32.mrb[23].mxu0  ;;  %v3430_v29 = vpop.f32.mrb[7].mxu1 }
 0x380   : > { %v2822_v61 = vadd.f32 %v2821_v21, %v2807_v44  ;;  %v2896_v35 = vadd.f32 %v2895_v30, %v2881_v31 }
 0x383   : > { %v2558_v20 = vpop.f32.mrb[24].mxu0  ;;  %v2686_v4 = vpop.f32.mrb[8].mxu1 }
 0x384   : > { %v2808_v2 = vmul.f32 %v2558_v20, %v2558_v20  ;;  %v2882_v38 = vmul.f32 %v2686_v4, %v2686_v4  ;;  %v3369_v5 = vpop.f32.mrb[25].mxu0  ;;  %v3433_v12 = vpop.f32.mrb[9].mxu1 }
 0x385   : > { %3743 = shalt.err (!%p3740_p3)
}
 0x386   : > { %s3744_s20 = scalar_lea.hbm %s5772_s12, 64  ;;  %s3748_s11 = scalar_lea.hbm %s5891_s5, 128 }
 0x387   : > { %p3745_p4 = scmp.ne.s32.totalorder %s5772_s12, %s3744_s20  ;;  %p3749_p9 = scmp.lt.u32.totalorder %s5772_s12, %s5891_s5 }
 0x388   : > { %p3750_p10 = scmp.lt.u32.totalorder %s3748_s11, %s3744_s20  ;;  %p3752_p12 = scmp.lt.u32.totalorder %s3744_s20, %s5772_s12 }
 0x389   : > { %p3746_p7 = pnand %p3745_p4, %p3941_p5 }
 0x38a   : > { %p3751_p11 = por %p3750_p10, %p3749_p9 }
 0x38b   : > { %p3747_p8 = pneg %p3746_p7 }
 0x38c   : > { %p3753_p13 = por %p3752_p12, %p3751_p11 }
 0x38e   : > { %p3754_p0 = pnand %p3753_p13, %p3747_p8 }
 0x390   : > { %3757 = shalt.err (!%p3754_p0)
}
 0x391   : > { %3572 = dma.vmem_to_hbm [thread:$0]  (%p3941_p5), %s5763_s28, 64, %s5772_s12, %s5774_s13   ;;  %v2561_v0 = vpop.f32.mrb[26].mxu0  ;;  %v2689_v27 = vpop.f32.mrb[10].mxu1  ;;  %v2823_v57 = vadd.f32 %v2822_v61, %v2808_v2  ;;  %v2897_v36 = vadd.f32 %v2896_v35, %v2882_v38  ;;  %v6064_v8 = vld [vmem:[#allocation9_spill] sm:$0xff] }
 0x392   : > { %s3134_s14 = sshll.u32 %s5756_s18, 3  ;;  %v2809_v55 = vmul.f32 %v2561_v0, %v2561_v0  ;;  %v2883_v53 = vmul.f32 %v2689_v27, %v2689_v27  ;;  %v3370_v14 = vpop.f32.mrb[27].mxu0  ;;  %v3434_v59 = vpop.f32.mrb[11].mxu1  ;;  %s3254_s20 = sshll.u32 %s3922_s25, 7 }
 0x393   : > { %s246_s17 = scalar_lea.vmem [#allocation2], %s3134_s14  ;;  %s5804_s12 = scalar_lea.hbm %s5890_s4, %s3254_s20 }
 0x394   : > { %268 = vst [vmem:[%s246_s17] sm:$0xff] %v6064_v8  ;;  %s2984_s29 = sshll.u32 %s246_s17, 4  ;;  %v2824_v13 = vadd.f32 %v2823_v57, %v2809_v55  ;;  %v2898_v47 = vadd.f32 %v2897_v36, %v2883_v53  ;;  %s2961_s11 = scalar_lea.sflag [#allocation3], %s5756_s18  ;;  %s2985_s29 = int_to_ptr.vmem [resolvable:$true] %s2984_s29 }
 0x395   : > { %s3758_s15 = scalar_lea.vmem %s2985_s29, 128  ;;  %s3864_s16 = smov [#allocation2]  }
 0x396   : > { %p3759_p1 = scmp.ne.s32.totalorder %s2985_s29, %s3758_s15  ;;  %s3762_s14 = sshll.u32 %s3864_s16, 4  ;;  %s3763_s14 = int_to_ptr.vmem [resolvable:$false] %s3762_s14 }
 0x397   : > { %s3764_s26 = scalar_lea.vmem %s3763_s14, 256  ;;  %p3765_p4 = scmp.lt.s32.totalorder %s2985_s29, %s3763_s14 }
 0x398   : > { %p3760_p2 = pnand %p3759_p1, %p3941_p5  ;;  %p3766_p7 = scmp.lt.s32.totalorder %s3764_s26, %s3758_s15 }
 0x39a   : > { %p3761_p3 = pneg %p3760_p2  ;;  %p3767_p8 = por %p3766_p7, %p3765_p4 }
 0x39c   : > { %p3768_p9 = pnand %p3767_p8, %p3761_p3 }
 0x39e   : > { %3771 = shalt.err (!%p3768_p9)
}
 0x39f   : > { %s3772_s17 = scalar_lea.hbm %s5804_s12, 128  ;;  %s3776_s28 = scalar_lea.hbm %s5890_s4, 256 }
 0x3a0   : > { %p3773_p10 = scmp.ne.s32.totalorder %s5804_s12, %s3772_s17  ;;  %p3777_p13 = scmp.lt.u32.totalorder %s5804_s12, %s5890_s4 }
 0x3a1   : > { %p3778_p0 = scmp.lt.u32.totalorder %s3776_s28, %s3772_s17  ;;  %p3780_p2 = scmp.lt.u32.totalorder %s3772_s17, %s5804_s12 }
 0x3a2   : > { %p3774_p11 = pnand %p3773_p10, %p3941_p5 }
 0x3a3   : > { %p3779_p1 = por %p3778_p0, %p3777_p13 }
 0x3a4   : > { %p3775_p12 = pneg %p3774_p11 }
 0x3a5   : > { %p3781_p3 = por %p3780_p2, %p3779_p1 }
 0x3a7   : > { %p3782_p4 = pnand %p3781_p3, %p3775_p12 }
 0x3a9   : > { %3785 = shalt.err (!%p3782_p4)
}
 0x3aa   : > { %3571 = dma.vmem_to_hbm [thread:$0]  (%p3941_p5), %s2985_s29, 128, %s5804_s12, %s2961_s11   ;;  %v2566_v6 = vpop.f32.mrb[28].mxu0  ;;  %v2694_v23 = vpop.f32.mrb[12].mxu1  ;;  %vm2953_vm4 = vcmask 1040384   ;;  %vm2955_vm7 = vcmask 1041408   ;;  %vm2957_vm3 = vcmask 1042432  }
 0x3ab   : > { %v2810_v10 = vmul.f32 %v2566_v6, %v2566_v6  ;;  %v2884_v62 = vmul.f32 %v2694_v23, %v2694_v23  ;;  %v3373_v49 = vpop.f32.mrb[29].mxu0  ;;  %v3437_v45 = vpop.f32.mrb[13].mxu1  ;;  %s260_s26 = scalar_lea.vmem [#allocation6], %s3135_s19  ;;  %s5843_s15 = scalar_lea.hbm %s5892_s6, %s3255_s9 }
 0x3ac   : > { %v2569_v54 = vpop.f32.mrb[30].mxu0  ;;  %v2697_v33 = vpop.f32.mrb[14].mxu1  ;;  %s3010_s29 = sshll.u32 %s260_s26, 4  ;;  %s3865_s19 = smov [#allocation6]   ;;  %s5836_s29 = int_to_ptr.vmem [resolvable:$true] %s3010_s29 }
 0x3ad   : > { %v2825_v52 = vadd.f32 %v2824_v13, %v2810_v10  ;;  %v2899_v41 = vadd.f32 %v2898_v47, %v2884_v62  ;;  %v2811_v24 = vmul.f32 %v2569_v54, %v2569_v54  ;;  %v2885_v60 = vmul.f32 %v2697_v33, %v2697_v33  ;;  %v3374_v22 = vpop.f32.mrb[31].mxu0  ;;  %v3438_v46 = vpop.f32.mrb[15].mxu1  ;;  %s3786_s18 = scalar_lea.vmem %s5836_s29, 64  ;;  %s3790_s17 = sshll.u32 %s3865_s19, 4  ;;  %s3791_s17 = int_to_ptr.vmem [resolvable:$false] %s3790_s17 }
 0x3ae   : > { %v2574_v42 = vpop.f32.mrb[32].mxu0  ;;  %v2702_v37 = vpop.f32.mrb[16].mxu1  ;;  %p3787_p7 = scmp.ne.s32.totalorder %s5836_s29, %s3786_s18  ;;  %s3792_s20 = scalar_lea.vmem %s3791_s17, 128 }
 0x3af   : > { %v2826_v43 = vadd.f32 %v2825_v52, %v2811_v24  ;;  %v2900_v51 = vadd.f32 %v2899_v41, %v2885_v60  ;;  %v2812_v1 = vmul.f32 %v2574_v42, %v2574_v42  ;;  %v2886_v17 = vmul.f32 %v2702_v37, %v2702_v37  ;;  %v3377_v16 = vpop.f32.mrb[33].mxu0  ;;  %v3441_v15 = vpop.f32.mrb[17].mxu1  ;;  %p3793_p10 = scmp.lt.s32.totalorder %s5836_s29, %s3791_s17  ;;  %p3794_p11 = scmp.lt.s32.totalorder %s3792_s20, %s3786_s18 }
 0x3b0   : > { %v2577_v19 = vpop.f32.mrb[34].mxu0  ;;  %v2705_v58 = vpop.f32.mrb[18].mxu1  ;;  %p3788_p8 = pnand %p3787_p7, %p3941_p5 }
 0x3b1   : > { %v2827_v56 = vadd.f32 %v2826_v43, %v2812_v1  ;;  %v2901_v40 = vadd.f32 %v2900_v51, %v2886_v17  ;;  %v2813_v32 = vmul.f32 %v2577_v19, %v2577_v19  ;;  %v2887_v39 = vmul.f32 %v2705_v58, %v2705_v58  ;;  %v3378_v50 = vpop.f32.mrb[35].mxu0  ;;  %v3442_v25 = vpop.f32.mrb[19].mxu1  ;;  %p3795_p12 = por %p3794_p11, %p3793_p10 }
 0x3b2   : > { %v2582_v3 = vpop.f32.mrb[36].mxu0  ;;  %v2710_v63 = vpop.f32.mrb[20].mxu1  ;;  %p3789_p9 = pneg %p3788_p8 }
 0x3b3   : > { %v2828_v18 = vadd.f32 %v2827_v56, %v2813_v32  ;;  %v2902_v11 = vadd.f32 %v2901_v40, %v2887_v39  ;;  %v2814_v48 = vmul.f32 %v2582_v3, %v2582_v3  ;;  %v2888_v34 = vmul.f32 %v2710_v63, %v2710_v63  ;;  %v3381_v26 = vpop.f32.mrb[37].mxu0  ;;  %v3445_v28 = vpop.f32.mrb[21].mxu1 }
 0x3b4   : > { %v2585_v21 = vpop.f32.mrb[38].mxu0  ;;  %v2713_v30 = vpop.f32.mrb[22].mxu1  ;;  %p3796_p13 = pnand %p3795_p12, %p3789_p9 }
 0x3b5   : > { %v2829_v44 = vadd.f32 %v2828_v18, %v2814_v48  ;;  %v2903_v31 = vadd.f32 %v2902_v11, %v2888_v34  ;;  %v2815_v9 = vmul.f32 %v2585_v21, %v2585_v21  ;;  %v2889_v29 = vmul.f32 %v2713_v30, %v2713_v30  ;;  %v3382_v61 = vpop.f32.mrb[39].mxu0  ;;  %v3446_v35 = vpop.f32.mrb[23].mxu1 }
 0x3b6   : > { %v2590_v2 = vpop.f32.mrb[40].mxu0  ;;  %v2718_v38 = vpop.f32.mrb[24].mxu1 }
 0x3b7   : > { %v2830_v20 = vadd.f32 %v2829_v44, %v2815_v9  ;;  %v2904_v4 = vadd.f32 %v2903_v31, %v2889_v29  ;;  %v2816_v5 = vmul.f32 %v2590_v2, %v2590_v2  ;;  %v2890_v12 = vmul.f32 %v2718_v38, %v2718_v38  ;;  %v3385_v0 = vpop.f32.mrb[41].mxu0  ;;  %v3449_v27 = vpop.f32.mrb[25].mxu1 }
 0x3b8   : > { %v2593_v57 = vpop.f32.mrb[42].mxu0  ;;  %v2721_v36 = vpop.f32.mrb[26].mxu1 }
 0x3b9   : > { %v2831_v55 = vadd.f32 %v2830_v20, %v2816_v5  ;;  %v2905_v53 = vadd.f32 %v2904_v4, %v2890_v12  ;;  %v2817_v14 = vmul.f32 %v2593_v57, %v2593_v57  ;;  %v2891_v59 = vmul.f32 %v2721_v36, %v2721_v36  ;;  %v3386_v8 = vpop.f32.mrb[43].mxu0  ;;  %v3450_v13 = vpop.f32.mrb[27].mxu1 }
 0x3ba   : > { %v2598_v23 = vpop.f32.mrb[44].mxu0  ;;  %v2726_v10 = vpop.f32.mrb[28].mxu1 }
 0x3bb   : > { %v2832_v47 = vadd.f32 %v2831_v55, %v2817_v14  ;;  %v2906_v6 = vadd.f32 %v2905_v53, %v2891_v59  ;;  %v2818_v62 = vmul.f32 %v2598_v23, %v2598_v23  ;;  %v2892_v49 = vmul.f32 %v2726_v10, %v2726_v10  ;;  %v3389_v45 = vpop.f32.mrb[45].mxu0  ;;  %v3453_v54 = vpop.f32.mrb[29].mxu1 }
 0x3bc   : > { %v2601_v33 = vpop.f32.mrb[46].mxu0  ;;  %v2729_v52 = vpop.f32.mrb[30].mxu1 }
 0x3bd   : > { %v2833_v41 = vadd.f32 %v2832_v47, %v2818_v62  ;;  %v2907_v24 = vadd.f32 %v2906_v6, %v2892_v49  ;;  %v2819_v60 = vmul.f32 %v2601_v33, %v2601_v33  ;;  %v2893_v22 = vmul.f32 %v2729_v52, %v2729_v52  ;;  %v3390_v46 = vpop.f32.mrb[47].mxu0  ;;  %v3454_v43 = vpop.f32.mrb[31].mxu1 }
 0x3be   : > { %v2606_v37 = vpop.f32.mrb[48].mxu0  ;;  %v2734_v1 = vpop.f32.mrb[32].mxu1 }
 0x3bf   : > { %v2834_v51 = vadd.f32 %v2833_v41, %v2819_v60  ;;  %v2908_v42 = vadd.f32 %v2907_v24, %v2893_v22  ;;  %v2820_v17 = vmul.f32 %v2606_v37, %v2606_v37  ;;  %v2894_v16 = vmul.f32 %v2734_v1, %v2734_v1  ;;  %v3393_v15 = vpop.f32.mrb[49].mxu0  ;;  %v3457_v19 = vpop.f32.mrb[33].mxu1 }
 0x3c0   : > { %v2609_v58 = vpop.f32.mrb[50].mxu0  ;;  %v2737_v56 = vpop.f32.mrb[34].mxu1 }
 0x3c1   : > { %v5824_v40 = vadd.f32 %v2834_v51, %v2820_v17  ;;  %v5826_v32 = vadd.f32 %v2908_v42, %v2894_v16  ;;  %v3394_v39 = vpop.f32.mrb[51].mxu0  ;;  %v3458_v50 = vpop.f32.mrb[35].mxu1  ;;  %v2842_v11 = vmul.f32 %v2609_v58, %v2609_v58  ;;  %v2916_v3 = vmul.f32 %v2737_v56, %v2737_v56 }
 0x3c2   : > { %v2614_v25 = vpop.f32.mrb[52].mxu0  ;;  %v2742_v18 = vpop.f32.mrb[36].mxu1 }
 0x3c3   : > { %v2843_v63 = vmul.f32 %v2614_v25, %v2614_v25  ;;  %v2917_v48 = vmul.f32 %v2742_v18, %v2742_v18  ;;  %v3397_v34 = vpop.f32.mrb[53].mxu0  ;;  %v3461_v26 = vpop.f32.mrb[37].mxu1 }
 0x3c4   : > { %v2617_v28 = vpop.f32.mrb[54].mxu0  ;;  %v2745_v21 = vpop.f32.mrb[38].mxu1 }
 0x3c5   : > { %v2858_v30 = vadd.f32 %v2843_v63, %v2842_v11  ;;  %v2932_v44 = vadd.f32 %v2917_v48, %v2916_v3  ;;  %v3398_v31 = vpop.f32.mrb[55].mxu0  ;;  %v3462_v9 = vpop.f32.mrb[39].mxu1  ;;  %v2844_v29 = vmul.f32 %v2617_v28, %v2617_v28  ;;  %v2918_v61 = vmul.f32 %v2745_v21, %v2745_v21 }
 0x3c6   : > { %v2622_v4 = vpop.f32.mrb[56].mxu0  ;;  %v2750_v2 = vpop.f32.mrb[40].mxu1 }
 0x3c7   : > { %v2859_v35 = vadd.f32 %v2858_v30, %v2844_v29  ;;  %v2933_v20 = vadd.f32 %v2932_v44, %v2918_v61  ;;  %v2845_v38 = vmul.f32 %v2622_v4, %v2622_v4  ;;  %v2919_v5 = vmul.f32 %v2750_v2, %v2750_v2  ;;  %v3401_v12 = vpop.f32.mrb[57].mxu0  ;;  %v3465_v0 = vpop.f32.mrb[41].mxu1 }
 0x3c8   : > { %v2625_v27 = vpop.f32.mrb[58].mxu0  ;;  %v2753_v57 = vpop.f32.mrb[42].mxu1 }
 0x3c9   : > { %v2860_v36 = vadd.f32 %v2859_v35, %v2845_v38  ;;  %v2934_v55 = vadd.f32 %v2933_v20, %v2919_v5  ;;  %v2846_v53 = vmul.f32 %v2625_v27, %v2625_v27  ;;  %v2920_v14 = vmul.f32 %v2753_v57, %v2753_v57  ;;  %v3402_v59 = vpop.f32.mrb[59].mxu0  ;;  %v3466_v8 = vpop.f32.mrb[43].mxu1 }
 0x3cb   : > { %v2861_v13 = vadd.f32 %v2860_v36, %v2846_v53  ;;  %v2935_v47 = vadd.f32 %v2934_v55, %v2920_v14  ;;  %v2630_v6 = vpop.f32.mrb[60].mxu0  ;;  %v2758_v23 = vpop.f32.mrb[44].mxu1 }
 0x3cc   : > { %v2847_v10 = vmul.f32 %v2630_v6, %v2630_v6  ;;  %v2921_v62 = vmul.f32 %v2758_v23, %v2758_v23  ;;  %v3405_v49 = vpop.f32.mrb[61].mxu0  ;;  %v3469_v45 = vpop.f32.mrb[45].mxu1 }
 0x3cd   : > { %v2633_v54 = vpop.f32.mrb[62].mxu0  ;;  %v2761_v33 = vpop.f32.mrb[46].mxu1  ;;  %v2910_v49 = vrot.slane %v5826_v32, 4 }
 0x3ce   : > { %v2862_v52 = vadd.f32 %v2861_v13, %v2847_v10  ;;  %v2936_v41 = vadd.f32 %v2935_v47, %v2921_v62  ;;  %v2848_v24 = vmul.f32 %v2633_v54, %v2633_v54  ;;  %v2922_v60 = vmul.f32 %v2761_v33, %v2761_v33  ;;  %v3406_v22 = vpop.f32.mrb[63].mxu0  ;;  %v3470_v46 = vpop.f32.mrb[47].mxu1 }
 0x3cf   : > { %v2836_v62 = vrot.slane %v5824_v40, 4 }
 0x3d0   : > { %v2863_v43 = vadd.f32 %v2862_v52, %v2848_v24  ;;  %v2937_v51 = vadd.f32 %v2936_v41, %v2922_v60 }
 0x3d1   : > { %v2837_v60 = vadd.f32 %v2836_v62, %v5824_v40 }
 0x3d3   : > { %v2638_v42 = vpop.f32.mrb[64].mxu0  ;;  %v2766_v37 = vpop.f32.mrb[48].mxu1 }
 0x3d4   : > { %v2849_v1 = vmul.f32 %v2638_v42, %v2638_v42  ;;  %v2923_v17 = vmul.f32 %v2766_v37, %v2766_v37  ;;  %v3409_v16 = vpop.f32.mrb[65].mxu0  ;;  %v3473_v15 = vpop.f32.mrb[49].mxu1 }
 0x3d5   : > { %v2641_v19 = vpop.f32.mrb[66].mxu0  ;;  %v2769_v58 = vpop.f32.mrb[50].mxu1  ;;  %v2911_v16 = vadd.f32 %v2910_v49, %v5826_v32  ;;  %v2857_v15 = vmul.f32 %v5759_v7, %v5759_v7 }
 0x3d6   : > { %v2864_v56 = vadd.f32 %v2863_v43, %v2849_v1  ;;  %v2938_v39 = vadd.f32 %v2937_v51, %v2923_v17  ;;  %v2850_v50 = vmul.f32 %v2641_v19, %v2641_v19  ;;  %v2924_v25 = vmul.f32 %v2769_v58, %v2769_v58  ;;  %v3410_v18 = vpop.f32.mrb[67].mxu0  ;;  %v3474_v11 = vpop.f32.mrb[51].mxu1 }
 0x3d8   : > { %v2865_v3 = vadd.f32 %v2864_v56, %v2850_v50  ;;  %v2939_v63 = vadd.f32 %v2938_v39, %v2924_v25  ;;  %v2838_v56 = vrot.slane %v2837_v60, 2  ;;  %v2912_v50 = vrot.slane %v2911_v16, 2 }
 0x3db   : > { %v2646_v48 = vpop.f32.mrb[68].mxu0  ;;  %v2774_v34 = vpop.f32.mrb[52].mxu1 }
 0x3dc   : > { %v2851_v26 = vmul.f32 %v2646_v48, %v2646_v48  ;;  %v2925_v28 = vmul.f32 %v2774_v34, %v2774_v34  ;;  %v3413_v21 = vpop.f32.mrb[69].mxu0  ;;  %v3477_v30 = vpop.f32.mrb[53].mxu1 }
 0x3dd   : > { %v2649_v44 = vpop.f32.mrb[70].mxu0  ;;  %v2777_v31 = vpop.f32.mrb[54].mxu1 }
 0x3de   : > { %v2866_v9 = vadd.f32 %v2865_v3, %v2851_v26  ;;  %v2940_v29 = vadd.f32 %v2939_v63, %v2925_v28  ;;  %v2852_v61 = vmul.f32 %v2649_v44, %v2649_v44  ;;  %v2926_v35 = vmul.f32 %v2777_v31, %v2777_v31  ;;  %v3414_v20 = vpop.f32.mrb[71].mxu0  ;;  %v3478_v4 = vpop.f32.mrb[55].mxu1 }
 0x3df   : > { %v2839_v63 = vadd.f32 %v2838_v56, %v2837_v60  ;;  %v2913_v28 = vadd.f32 %v2912_v50, %v2911_v16 }
 0x3e0   : > { %v2867_v2 = vadd.f32 %v2866_v9, %v2852_v61  ;;  %v2941_v38 = vadd.f32 %v2940_v29, %v2926_v35 }
 0x3e1   : > { %v2840_v30 = vrot.slane %v2839_v63, 1  ;;  %v2914_v31 = vrot.slane %v2913_v28, 1 }
 0x3e3   : > { %v2654_v5 = vpop.f32.mrb[72].mxu0  ;;  %v2782_v12 = vpop.f32.mrb[56].mxu1  ;;  %v2841_v61 = vadd.f32 %v2840_v30, %v2839_v63  ;;  %v2915_v4 = vadd.f32 %v2914_v31, %v2913_v28 }
 0x3e4   : > { %v2853_v0 = vmul.f32 %v2654_v5, %v2654_v5  ;;  %v2927_v27 = vmul.f32 %v2782_v12, %v2782_v12  ;;  %v3417_v57 = vpop.f32.mrb[73].mxu0  ;;  %v3481_v36 = vpop.f32.mrb[57].mxu1 }
 0x3e5   : > { %v2657_v55 = vpop.f32.mrb[74].mxu0  ;;  %v2785_v53 = vpop.f32.mrb[58].mxu1 }
 0x3e6   : > { %v2868_v14 = vadd.f32 %v2867_v2, %v2853_v0  ;;  %v2942_v59 = vadd.f32 %v2941_v38, %v2927_v27  ;;  %v2854_v8 = vmul.f32 %v2657_v55, %v2657_v55  ;;  %v2928_v13 = vmul.f32 %v2785_v53, %v2785_v53  ;;  %v3418_v47 = vpop.f32.mrb[75].mxu0  ;;  %v3482_v6 = vpop.f32.mrb[59].mxu1 }
 0x3e8   : > { %v2869_v23 = vadd.f32 %v2868_v14, %v2854_v8  ;;  %v2943_v10 = vadd.f32 %v2942_v59, %v2928_v13 }
 0x3eb   : > { %v2662_v45 = vpop.f32.mrb[76].mxu0  ;;  %v2790_v54 = vpop.f32.mrb[60].mxu1 }
 0x3ec   : > { %v2855_v33 = vmul.f32 %v2662_v45, %v2662_v45  ;;  %v2929_v52 = vmul.f32 %v2790_v54, %v2790_v54  ;;  %v3421_v41 = vpop.f32.mrb[77].mxu0  ;;  %v3485_v24 = vpop.f32.mrb[61].mxu1 }
 0x3ed   : > { %v2665_v22 = vpop.f32.mrb[78].mxu0  ;;  %v2793_v46 = vpop.f32.mrb[62].mxu1 }
 0x3ee   : > { %v2870_v43 = vadd.f32 %v2869_v23, %v2855_v33  ;;  %v2944_v51 = vadd.f32 %v2943_v10, %v2929_v52  ;;  %v2856_v42 = vmul.f32 %v2665_v22, %v2665_v22  ;;  %v2930_v37 = vmul.f32 %v2793_v46, %v2793_v46  ;;  %v3422_v1 = vpop.f32.mrb[79].mxu0  ;;  %v3486_v17 = vpop.f32.mrb[63].mxu1 }
 0x3f0   : > { %v2871_v19 = vadd.f32 %v2870_v43, %v2856_v42  ;;  %v2945_v58 = vadd.f32 %v2944_v51, %v2930_v37 }
 0x3f2   : > { %v2872_v39 = vadd.f32 %v2871_v19, %v2857_v15 }
 0x3f3   : > { %v2798_v25 = vpop.f32.mrb[64].mxu1 }
 0x3f4   : > { %v2873_v40 = vrot.slane %v2872_v39, 4  ;;  %v2931_v18 = vmul.f32 %v2798_v25, %v2798_v25  ;;  %v3489_v11 = vpop.f32.mrb[65].mxu1 }
 0x3f5   : > { %v2801_v3 = vpop.f32.mrb[66].mxu1 }
 0x3f6   : > { %v2874_v48 = vadd.f32 %v2873_v40, %v2872_v39  ;;  %v2946_v34 = vadd.f32 %v2945_v58, %v2931_v18  ;;  %v3490_v26 = vpop.f32.mrb[67].mxu1 }
 0x3f8   : > { %v2875_v32 = vrot.slane %v2874_v48, 2  ;;  %v2947_v21 = vrot.slane %v2946_v34, 4 }
 0x3fa   : > { %v2876_v7 = vadd.f32 %v2875_v32, %v2874_v48  ;;  %v2948_v44 = vadd.f32 %v2947_v21, %v2946_v34 }
 0x3fc   : > { %v2877_v9 = vrot.slane %v2876_v7, 1  ;;  %v2949_v29 = vrot.slane %v2948_v44, 2 }
 0x3fe   : > { %v2878_v35 = vadd.f32 %v2877_v9, %v2876_v7  ;;  %v2950_v20 = vadd.f32 %v2949_v29, %v2948_v44 }
 0x400   : > { %v2951_v2 = vrot.slane %v2950_v20, 1  ;;  %v2954_v38 = vsel %vm2953_vm4, %v2841_v61, %v2878_v35 }
 0x401   : > { %v2956_v5 = vsel %vm2955_vm7, %v2954_v38, %v2915_v4 }
 0x402   : > { %v2952_v12 = vadd.f32 %v2951_v2, %v2950_v20 }
 0x404   : > { %v2958_v0 = vsel %vm2957_vm3, %v2956_v5, %v2952_v12 }
 0x405   : > { %2959 = vst [vmem:[%s260_s26] sm:$0xf] %v2958_v0 }
 0x406   : > { %3799 = shalt.err (!%p3796_p13)
}
 0x407   : > { %s3800_s25 = scalar_lea.hbm %s5843_s15, 64  ;;  %s3804_s28 = scalar_lea.hbm %s5892_s6, 128 }
 0x408   : > { %p3801_p0 = scmp.ne.s32.totalorder %s5843_s15, %s3800_s25  ;;  %p3805_p3 = scmp.lt.u32.totalorder %s5843_s15, %s5892_s6 }
 0x409   : > { %p3806_p4 = scmp.lt.u32.totalorder %s3804_s28, %s3800_s25  ;;  %p3808_p8 = scmp.lt.u32.totalorder %s3800_s25, %s5843_s15 }
 0x40a   : > { %p3802_p1 = pnand %p3801_p0, %p3941_p5 }
 0x40b   : > { %p3807_p7 = por %p3806_p4, %p3805_p3 }
 0x40c   : > { %p3803_p2 = pneg %p3802_p1 }
 0x40d   : > { %p3809_p9 = por %p3808_p8, %p3807_p7 }
 0x40f   : > { %p3810_p10 = pnand %p3809_p9, %p3803_p2 }
 0x411   : > { %3813 = shalt.err (!%p3810_p10)
}
 0x412   : > { %3573 = dma.vmem_to_hbm [thread:$0]  (%p3941_p5), %s5836_s29, 64, %s5843_s15, %s5774_s13  }
 0x413 PF: > { %p3587_p11 = scmp.ge.s32.totalorder %s3852_s24, 2  ;;  %s3022_s26 = sand.u32 1, %s3840_s21  }
 0x414   : > { %s3023_s12 = scalar_lea.sflag [#allocation3], %s3022_s26 }
 0x415   : > { %p3578_p12 = pnand %p3587_p11, %p3945_p6 }
 0x417   : > { %3831 = dma.done.wait (!%p3578_p12), %s3023_s12, 128  }
 0x418   : > { %3833 = vsyncadd (!%p3578_p12), %s3023_s12, 4294967168  ;;  %s6065_s11 = sadd.s32 4294967294, %s3852_s24  }
 0x419   : > { %s3031_s18 = sand.u32 1, %s6065_s11  }
 0x41a   : > { %s3032_s19 = scalar_lea.sflag [#allocation5], %s3031_s18 }
 0x41b   : > { %3835 = dma.done.wait (!%p3578_p12), %s3032_s19, 128  }
 0x41c   : > { %3837 = vsyncadd (!%p3578_p12), %s3032_s19, 4294967168  ;;  %p20_p5 = scmp.ge.s32.totalorder %s3926_s27, 4   ;;  %s6066_s21 = smov %s3844_s22 }
 0x41d   : > { %s6067_s22 = smov %s3848_s23  ;;  %s6068_s23 = smov %s3939_s30 }
 0x41e   : > { %s6069_s24 = smov %s3926_s27  ;;  %22 = sbr.rel (!%p20_p5) target bundleno = 5 (0x5), region = 103 }
 0x425   :  { %3046 = vsyncpa [#allocation3], 1 }
 0x426   :  { %3048 = vsyncpa [#allocation3 + $0x1], 1 }
 0x427   :  { %3049 = vsyncpa [#allocation5], 1 }
 0x428   :  { %3051 = vsyncpa [#allocation5 + $0x1], 1 }

</bundles_post_ra>
